<compile_context>
chip_gen: v7x
topology: tpu7x:2x2x1
jax: 0.10.0
libtpu: 0.0.40
codegen_flags: <defaults>
</compile_context>

<pallas_src>
import functools

import jax
import jax.numpy as jnp
from jax.experimental import pallas as pl
from jax.experimental.pallas import tpu as pltpu

LANE = 128
SUBLANE = 8


def _round_up(x, m):
    return (x + m - 1) // m * m


# ----------------------------- Pallas kernels ------------------------------

def _mm_act_kernel(x_ref, w_ref, o_ref, *, act):
    """(TILE_M, K) @ (K, Coutp) on the MXU (bf16 in, f32 acc) + activation."""
    y = jnp.dot(x_ref[...], w_ref[...], preferred_element_type=jnp.float32)
    if act == "lrelu":
        y = jnp.where(y > 0, y, 0.2 * y)
    elif act == "sigmoid":
        # exp on the EUP; approximate reciprocal also on the EUP (free slot).
        y = pl.reciprocal(1.0 + jnp.exp(-y), approx=True)
    o_ref[...] = y.astype(o_ref.dtype)


def _mm_bn_lrelu_kernel(x_ref, w_ref, g_ref, b_ref, o_ref, *, inv_m):
    """Fused conv-matmul + BatchNorm2d (training batch stats) + LeakyReLU(0.2).

    The whole (M, Coutp) activation stays resident in VMEM so the biased batch
    statistics over N*Ho*Wo rows are taken in one pass, in f32, without an HBM
    round-trip.  sum / sum-of-squares (divided by the *real* M) keeps the stats
    exact even when M was zero-padded up to a sublane multiple.
    """
    y = jnp.dot(x_ref[...], w_ref[...], preferred_element_type=jnp.float32)
    s = jnp.sum(y, axis=0, keepdims=True)
    ss = jnp.sum(y * y, axis=0, keepdims=True)
    mean = s * inv_m
    var = jnp.maximum(ss * inv_m - mean * mean, 0.0)
    scale = jax.lax.rsqrt(var + 1e-5) * g_ref[...]
    z = (y - mean) * scale + b_ref[...]
    o_ref[...] = jnp.where(z > 0, z, 0.2 * z).astype(o_ref.dtype)


# --------------------------- pallas_call wrappers ---------------------------

def _matmul_act(patches, w_t, act, out_dtype):
    M, K = patches.shape
    K2, Cp = w_t.shape
    assert K == K2 and K % LANE == 0 and Cp % LANE == 0
    Mp = _round_up(M, SUBLANE)
    tile_m = 256 if Mp >= 256 else Mp
    Mp = _round_up(Mp, tile_m)
    if Mp != M:
        patches = jnp.pad(patches, ((0, Mp - M), (0, 0)))
    out = pl.pallas_call(
        functools.partial(_mm_act_kernel, act=act),
        out_shape=jax.ShapeDtypeStruct((Mp, Cp), out_dtype),
        grid=(Mp // tile_m,),
        in_specs=[pl.BlockSpec((tile_m, K), lambda i: (i, 0)),
                  pl.BlockSpec((K, Cp), lambda i: (0, 0))],
        out_specs=pl.BlockSpec((tile_m, Cp), lambda i: (i, 0)),
        compiler_params=pltpu.CompilerParams(
            dimension_semantics=("parallel",)),
    )(patches.astype(jnp.bfloat16), w_t)
    return out[:M]


def _matmul_bn_lrelu(patches, w_t, gamma, beta, out_dtype):
    # TODO(synk): for large N*Ho*Wo, turn this into a two-pass grid reduction
    # (per-channel sum/sumsq accumulator + pl.when finalize) so M can be tiled.
    M, K = patches.shape
    K2, Cp = w_t.shape
    assert K == K2 and K % LANE == 0 and Cp % LANE == 0
    Mp = _round_up(M, SUBLANE)
    if Mp != M:
        patches = jnp.pad(patches, ((0, Mp - M), (0, 0)))
    out = pl.pallas_call(
        functools.partial(_mm_bn_lrelu_kernel, inv_m=1.0 / float(M)),
        out_shape=jax.ShapeDtypeStruct((Mp, Cp), out_dtype),
        grid=(1,),
        in_specs=[pl.BlockSpec((Mp, K), lambda i: (0, 0)),
                  pl.BlockSpec((K, Cp), lambda i: (0, 0)),
                  pl.BlockSpec((1, Cp), lambda i: (0, 0)),
                  pl.BlockSpec((1, Cp), lambda i: (0, 0))],
        out_specs=pl.BlockSpec((Mp, Cp), lambda i: (0, 0)),
        compiler_params=pltpu.CompilerParams(
            dimension_semantics=("arbitrary",)),
    )(patches.astype(jnp.bfloat16), w_t, gamma, beta)
    return out[:M]


# --------------------------------- glue ------------------------------------

def _im2col_nhwc(x, kh, kw, stride, pad):
    """NHWC patch extraction; feature order (kh, kw, C) with C fastest, which
    matches the (kh, kw, Cin, Cout)-reshaped weights.  No transposes needed."""
    N, H, W, C = x.shape
    xp = jnp.pad(x, ((0, 0), (pad, pad), (pad, pad), (0, 0)))
    Ho = (H + 2 * pad - kh) // stride + 1
    Wo = (W + 2 * pad - kw) // stride + 1
    cols = [xp[:, i:i + stride * Ho:stride, j:j + stride * Wo:stride, :]
            for i in range(kh) for j in range(kw)]
    patches = jnp.concatenate(cols, axis=-1)            # (N, Ho, Wo, kh*kw*C)
    # TODO(synk): the im2col patch matrix is still materialized in HBM by XLA;
    # an in-kernel gather over a VMEM-resident NHWC tile would remove that copy.
    return patches.reshape(N * Ho * Wo, kh * kw * C), Ho, Wo


def _conv_act_layer(x_nhwc, w_t, kh, kw, stride, pad, act, out_dtype):
    N = x_nhwc.shape[0]
    patches, Ho, Wo = _im2col_nhwc(x_nhwc, kh, kw, stride, pad)
    assert patches.shape[1] == w_t.shape[0]
    out2d = _matmul_act(patches, w_t, act, out_dtype)
    return out2d.reshape(N, Ho, Wo, w_t.shape[1])


def _conv_bn_lrelu_layer(x_nhwc, w_t, gamma, beta, kh, kw, stride, pad):
    N = x_nhwc.shape[0]
    patches, Ho, Wo = _im2col_nhwc(x_nhwc, kh, kw, stride, pad)
    assert patches.shape[1] == w_t.shape[0]
    out2d = _matmul_bn_lrelu(patches, w_t, gamma, beta, out_dtype=jnp.bfloat16)
    return out2d.reshape(N, Ho, Wo, w_t.shape[1])


def discriminator_forward(x_nchw, params):
    N, C, H, W = x_nchw.shape
    # NCHW -> NHWC exactly once, pad input channels so K is a 128-multiple,
    # cast to bf16 for the MXU (all accumulation stays f32 inside the kernels).
    cin_p = _round_up(C, SUBLANE)
    x = jnp.transpose(x_nchw, (0, 2, 3, 1))
    x = jnp.pad(x, ((0, 0), (0, 0), (0, 0), (0, cin_p - C))).astype(jnp.bfloat16)

    # Conv(nc->ndf, 4,2,1) + LeakyReLU(0.2)
    y = _conv_act_layer(x, params["w1"], 4, 4, 2, 1,
                        act="lrelu", out_dtype=jnp.bfloat16)
    # 3 x [Conv(4,2,1) + BatchNorm2d + LeakyReLU(0.2)]  -- fully fused per layer
    for i in (2, 3, 4):
        y = _conv_bn_lrelu_layer(y, params[f"w{i}"],
                                 params[f"g{i}"], params[f"b{i}"], 4, 4, 2, 1)
    # Conv(ndf*8 -> 1, 2,2,0) + Sigmoid
    y = _conv_act_layer(y, params["w5"], 2, 2, 2, 0,
                        act="sigmoid", out_dtype=jnp.float32)
    # main(x).view(-1, 1).squeeze(1): spatial is 1x1 and the real Cout is
    # channel 0 of the lane-padded output.
    return y[:, 0, 0, 0]


# ------------------------------ parameters ----------------------------------

def init_raw_params(key, nc=3, ndf=32):
    """PyTorch-layout parameters: Conv weights (Cout, Cin, kh, kw), BN (C,)."""
    ks = jax.random.split(key, 11)

    def w(k, cout, cin, kh, kw):
        return 0.05 * jax.random.normal(k, (cout, cin, kh, kw), jnp.float32)

    return {
        "w1": w(ks[0], ndf, nc, 4, 4),
        "w2": w(ks[1], ndf * 2, ndf, 4, 4),
        "w3": w(ks[2], ndf * 4, ndf * 2, 4, 4),
        "w4": w(ks[3], ndf * 8, ndf * 4, 4, 4),
        "w5": w(ks[4], 1, ndf * 8, 2, 2),
        "g2": 1.0 + 0.1 * jax.random.normal(ks[5], (ndf * 2,), jnp.float32),
        "b2": 0.1 * jax.random.normal(ks[6], (ndf * 2,), jnp.float32),
        "g3": 1.0 + 0.1 * jax.random.normal(ks[7], (ndf * 4,), jnp.float32),
        "b3": 0.1 * jax.random.normal(ks[8], (ndf * 4,), jnp.float32),
        "g4": 1.0 + 0.1 * jax.random.normal(ks[9], (ndf * 8,), jnp.float32),
        "b4": 0.1 * jax.random.normal(ks[10], (ndf * 8,), jnp.float32),
    }


def prepare_params(raw, nc):
    """One-time layout prep: transpose Conv weights to (kh,kw,Cin,Cout), zero-pad
    Cin to the padded channel width of the layer's input and Cout to a multiple
    of 128 (lane-dense MXU output), reshape to (K, Coutp) and cast to bf16.
    BN gamma/beta are zero-padded to (1, Coutp) f32 rows, so padded channels
    stay exactly zero through BN + LeakyReLU and never affect real channels."""
    params = {}
    cin_p = _round_up(nc, SUBLANE)          # kh*kw*cin_p is then a 128-multiple
    for name in ("w1", "w2", "w3", "w4", "w5"):
        w = raw[name]
        cout, cin, kh, kw = w.shape
        cout_p = _round_up(cout, LANE)
        wt = jnp.transpose(w, (2, 3, 1, 0))                     # (kh,kw,Cin,Cout)
        wt = jnp.pad(wt, ((0, 0), (0, 0),
                          (0, cin_p - cin), (0, cout_p - cout)))
        params[name] = wt.reshape(kh * kw * cin_p, cout_p).astype(jnp.bfloat16)
        cin_p = cout_p                                          # next layer input
    for i in (2, 3, 4):
        cp = params[f"w{i}"].shape[1]
        g, b = raw[f"g{i}"], raw[f"b{i}"]
        params[f"g{i}"] = jnp.pad(g, (0, cp - g.shape[0])).reshape(1, cp).astype(jnp.float32)
        params[f"b{i}"] = jnp.pad(b, (0, cp - b.shape[0])).reshape(1, cp).astype(jnp.float32)
    return params


if __name__ == "__main__":
    key = jax.random.PRNGKey(0)
    kx, kp = jax.random.split(key)
    N, nc, ndf, H = 2, 3, 32, 32        # 32x32 input -> one scalar per sample
    x = jax.random.normal(kx, (N, nc, H, H), jnp.float32)
    params = prepare_params(init_raw_params(kp, nc=nc, ndf=ndf), nc=nc)

    fwd = jax.jit(discriminator_forward)
    out = jax.block_until_ready(fwd(x, params))

    assert out.shape == (N,), out.shape
    assert bool(jnp.all(jnp.isfinite(out)))
    # sigmoid output (approx-reciprocal has ~2^-12 relative error headroom)
    assert bool(jnp.all((out >= 0.0) & (out <= 1.0 + 1e-3)))
    print("KERNEL_OK")
</pallas_src>

<mosaic_0001>
module attributes {stable_mosaic.version = 11 : i64} {
  func.func @_mm_act_kernel(%arg0: i32, %arg1: memref<256x128xbf16, #tpu.memory_space<vmem>>, %arg2: memref<128x128xbf16, #tpu.memory_space<vmem>>, %arg3: memref<256x128xbf16, #tpu.memory_space<vmem>>) attributes {dimension_semantics = [#tpu.dimension_semantics<parallel>], iteration_bounds = array<i64: 2>, scalar_prefetch = 0 : i64, scratch_operands = 0 : i64, tpu.core_type = #tpu.core_type<tc>, window_params = [{transform_indices = @transform_0, window_bounds = array<i64: 256, 128>}, {pipeline_mode = #tpu.pipeline_mode<synchronous>, transform_indices = @transform_1, window_bounds = array<i64: 128, 128>}, {transform_indices = @transform_2, window_bounds = array<i64: 256, 128>}]} {
    %c0 = arith.constant 0 : index
    %c0_0 = arith.constant 0 : index
    %0 = vector.load %arg1[%c0, %c0_0] : memref<256x128xbf16, #tpu.memory_space<vmem>>, vector<256x128xbf16>
    %c0_1 = arith.constant 0 : index
    %c0_2 = arith.constant 0 : index
    %1 = vector.load %arg2[%c0_1, %c0_2] : memref<128x128xbf16, #tpu.memory_space<vmem>>, vector<128x128xbf16>
    %cst = arith.constant dense<0.000000e+00> : vector<256x128xf32>
    %2 = tpu.matmul %0, %1, %cst {dimension_numbers = #tpu.dot_dimension_numbers<[1], [0], [0], [1], [0, 0, 1, 1], [], []>} : vector<256x128xbf16>, vector<128x128xbf16>, vector<256x128xf32> -> vector<256x128xf32>
    %cst_3 = arith.constant 0.000000e+00 : f32
    %3 = vector.broadcast %cst_3 : f32 to vector<256x128xf32>
    %4 = arith.cmpf ogt, %2, %3 : vector<256x128xf32>
    %cst_4 = arith.constant 2.000000e-01 : f32
    %5 = vector.broadcast %cst_4 : f32 to vector<256x128xf32>
    %6 = arith.mulf %5, %2 : vector<256x128xf32>
    %7 = arith.select %4, %2, %6 : vector<256x128xi1>, vector<256x128xf32>
    %8 = arith.truncf %7 : vector<256x128xf32> to vector<256x128xbf16>
    %c0_5 = arith.constant 0 : index
    %c0_6 = arith.constant 0 : index
    %9 = vector.load %arg3[%c0_5, %c0_6] : memref<256x128xbf16, #tpu.memory_space<vmem>>, vector<256x128xbf16>
    tpu.vector_store %arg3[%c0_5, %c0_6], %8 {strides = array<i32>} : memref<256x128xbf16, #tpu.memory_space<vmem>>, vector<256x128xbf16>,
    return
  }
  func.func @transform_0(%arg0: i32) -> (i32, i32) {
    %c0_i32 = arith.constant 0 : i32
    %c0_i32_0 = arith.constant 0 : i32
    return %arg0, %c0_i32 : i32, i32
  }
  func.func @transform_1(%arg0: i32) -> (i32, i32) {
    %c0_i32 = arith.constant 0 : i32
    %c0_i32_0 = arith.constant 0 : i32
    %c0_i32_1 = arith.constant 0 : i32
    return %c0_i32, %c0_i32_0 : i32, i32
  }
  func.func @transform_2(%arg0: i32) -> (i32, i32) {
    %c0_i32 = arith.constant 0 : i32
    %c0_i32_0 = arith.constant 0 : i32
    return %arg0, %c0_i32 : i32, i32
  }
}

module attributes {stable_mosaic.version = 11 : i64} {
  func.func @_mm_bn_lrelu_kernel(%arg0: i32, %arg1: memref<128x2048xbf16, #tpu.memory_space<vmem>>, %arg2: memref<2048x128xbf16, #tpu.memory_space<vmem>>, %arg3: memref<1x128xf32, #tpu.memory_space<vmem>>, %arg4: memref<1x128xf32, #tpu.memory_space<vmem>>, %arg5: memref<128x128xbf16, #tpu.memory_space<vmem>>) attributes {dimension_semantics = [#tpu.dimension_semantics<arbitrary>], iteration_bounds = array<i64: 1>, scalar_prefetch = 0 : i64, scratch_operands = 0 : i64, tpu.core_type = #tpu.core_type<tc>, window_params = [{pipeline_mode = #tpu.pipeline_mode<synchronous>, transform_indices = @transform_0, window_bounds = array<i64: 128, 2048>}, {pipeline_mode = #tpu.pipeline_mode<synchronous>, transform_indices = @transform_1, window_bounds = array<i64: 2048, 128>}, {pipeline_mode = #tpu.pipeline_mode<synchronous>, transform_indices = @transform_2, window_bounds = array<i64: 1, 128>}, {pipeline_mode = #tpu.pipeline_mode<synchronous>, transform_indices = @transform_3, window_bounds = array<i64: 1, 128>}, {pipeline_mode = #tpu.pipeline_mode<synchronous>, transform_indices = @transform_4, window_bounds = array<i64: 128, 128>}]} {
    %c0 = arith.constant 0 : index
    %c0_0 = arith.constant 0 : index
    %0 = vector.load %arg1[%c0, %c0_0] : memref<128x2048xbf16, #tpu.memory_space<vmem>>, vector<128x2048xbf16>
    %c0_1 = arith.constant 0 : index
    %c0_2 = arith.constant 0 : index
    %1 = vector.load %arg2[%c0_1, %c0_2] : memref<2048x128xbf16, #tpu.memory_space<vmem>>, vector<2048x128xbf16>
    %cst = arith.constant dense<0.000000e+00> : vector<128x128xf32>
    %2 = tpu.matmul %0, %1, %cst {dimension_numbers = #tpu.dot_dimension_numbers<[1], [0], [0], [1], [0, 0, 1, 1], [], []>} : vector<128x2048xbf16>, vector<2048x128xbf16>, vector<128x128xf32> -> vector<128x128xf32>
    %cst_3 = arith.constant dense<0.000000e+00> : vector<128xf32>
    %3 = vector.multi_reduction <add>, %2, %cst_3 [0] : vector<128x128xf32> to vector<128xf32>
    %4 = vector.shape_cast %3 : vector<128xf32> to vector<1x128xf32>
    %5 = arith.mulf %2, %2 : vector<128x128xf32>
    %cst_4 = arith.constant dense<0.000000e+00> : vector<128xf32>
    %6 = vector.multi_reduction <add>, %5, %cst_4 [0] : vector<128x128xf32> to vector<128xf32>
    %7 = vector.shape_cast %6 : vector<128xf32> to vector<1x128xf32>
    %cst_5 = arith.constant 7.812500e-03 : f32
    %8 = vector.broadcast %cst_5 : f32 to vector<1x128xf32>
    %9 = arith.mulf %4, %8 : vector<1x128xf32>
    %cst_6 = arith.constant 7.812500e-03 : f32
    %10 = vector.broadcast %cst_6 : f32 to vector<1x128xf32>
    %11 = arith.mulf %7, %10 : vector<1x128xf32>
    %12 = arith.mulf %9, %9 : vector<1x128xf32>
    %13 = arith.subf %11, %12 : vector<1x128xf32>
    %cst_7 = arith.constant 0.000000e+00 : f32
    %14 = vector.broadcast %cst_7 : f32 to vector<1x128xf32>
    %15 = arith.maximumf %13, %14 : vector<1x128xf32>
    %cst_8 = arith.constant 9.99999974E-6 : f32
    %16 = vector.broadcast %cst_8 : f32 to vector<1x128xf32>
    %17 = arith.addf %15, %16 : vector<1x128xf32>
    %18 = math.rsqrt %17 : vector<1x128xf32>
    %c0_9 = arith.constant 0 : index
    %c0_10 = arith.constant 0 : index
    %19 = vector.load %arg3[%c0_9, %c0_10] : memref<1x128xf32, #tpu.memory_space<vmem>>, vector<1x128xf32>
    %20 = arith.mulf %18, %19 : vector<1x128xf32>
    %21 = vector.broadcast %9 : vector<1x128xf32> to vector<128x128xf32>
    %22 = arith.subf %2, %21 : vector<128x128xf32>
    %23 = vector.broadcast %20 : vector<1x128xf32> to vector<128x128xf32>
    %24 = arith.mulf %22, %23 : vector<128x128xf32>
    %c0_11 = arith.constant 0 : index
    %c0_12 = arith.constant 0 : index
    %25 = vector.load %arg4[%c0_11, %c0_12] : memref<1x128xf32, #tpu.memory_space<vmem>>, vector<1x128xf32>
    %26 = vector.broadcast %25 : vector<1x128xf32> to vector<128x128xf32>
    %27 = arith.addf %24, %26 : vector<128x128xf32>
    %cst_13 = arith.constant 0.000000e+00 : f32
    %28 = vector.broadcast %cst_13 : f32 to vector<128x128xf32>
    %29 = arith.cmpf ogt, %27, %28 : vector<128x128xf32>
    %cst_14 = arith.constant 2.000000e-01 : f32
    %30 = vector.broadcast %cst_14 : f32 to vector<128x128xf32>
    %31 = arith.mulf %30, %27 : vector<128x128xf32>
    %32 = arith.select %29, %27, %31 : vector<128x128xi1>, vector<128x128xf32>
    %33 = arith.truncf %32 : vector<128x128xf32> to vector<128x128xbf16>
    %c0_15 = arith.constant 0 : index
    %c0_16 = arith.constant 0 : index
    %34 = vector.load %arg5[%c0_15, %c0_16] : memref<128x128xbf16, #tpu.memory_space<vmem>>, vector<128x128xbf16>
    tpu.vector_store %arg5[%c0_15, %c0_16], %33 {strides = array<i32>} : memref<128x128xbf16, #tpu.memory_space<vmem>>, vector<128x128xbf16>,
    return
  }
  func.func @transform_0(%arg0: i32) -> (i32, i32) {
    %c0_i32 = arith.constant 0 : i32
    %c0_i32_0 = arith.constant 0 : i32
    %c0_i32_1 = arith.constant 0 : i32
    return %c0_i32, %c0_i32_0 : i32, i32
  }
  func.func @transform_1(%arg0: i32) -> (i32, i32) {
    %c0_i32 = arith.constant 0 : i32
    %c0_i32_0 = arith.constant 0 : i32
    %c0_i32_1 = arith.constant 0 : i32
    return %c0_i32, %c0_i32_0 : i32, i32
  }
  func.func @transform_2(%arg0: i32) -> (i32, i32) {
    %c0_i32 = arith.constant 0 : i32
    %c0_i32_0 = arith.constant 0 : i32
    %c0_i32_1 = arith.constant 0 : i32
    return %c0_i32, %c0_i32_0 : i32, i32
  }
  func.func @transform_3(%arg0: i32) -> (i32, i32) {
    %c0_i32 = arith.constant 0 : i32
    %c0_i32_0 = arith.constant 0 : i32
    %c0_i32_1 = arith.constant 0 : i32
    return %c0_i32, %c0_i32_0 : i32, i32
  }
  func.func @transform_4(%arg0: i32) -> (i32, i32) {
    %c0_i32 = arith.constant 0 : i32
    %c0_i32_0 = arith.constant 0 : i32
    %c0_i32_1 = arith.constant 0 : i32
    return %c0_i32, %c0_i32_0 : i32, i32
  }
}

module attributes {stable_mosaic.version = 11 : i64} {
  func.func @_mm_bn_lrelu_kernel(%arg0: i32, %arg1: memref<32x2048xbf16, #tpu.memory_space<vmem>>, %arg2: memref<2048x128xbf16, #tpu.memory_space<vmem>>, %arg3: memref<1x128xf32, #tpu.memory_space<vmem>>, %arg4: memref<1x128xf32, #tpu.memory_space<vmem>>, %arg5: memref<32x128xbf16, #tpu.memory_space<vmem>>) attributes {dimension_semantics = [#tpu.dimension_semantics<arbitrary>], iteration_bounds = array<i64: 1>, scalar_prefetch = 0 : i64, scratch_operands = 0 : i64, tpu.core_type = #tpu.core_type<tc>, window_params = [{pipeline_mode = #tpu.pipeline_mode<synchronous>, transform_indices = @transform_0, window_bounds = array<i64: 32, 2048>}, {pipeline_mode = #tpu.pipeline_mode<synchronous>, transform_indices = @transform_1, window_bounds = array<i64: 2048, 128>}, {pipeline_mode = #tpu.pipeline_mode<synchronous>, transform_indices = @transform_2, window_bounds = array<i64: 1, 128>}, {pipeline_mode = #tpu.pipeline_mode<synchronous>, transform_indices = @transform_3, window_bounds = array<i64: 1, 128>}, {pipeline_mode = #tpu.pipeline_mode<synchronous>, transform_indices = @transform_4, window_bounds = array<i64: 32, 128>}]} {
    %c0 = arith.constant 0 : index
    %c0_0 = arith.constant 0 : index
    %0 = vector.load %arg1[%c0, %c0_0] : memref<32x2048xbf16, #tpu.memory_space<vmem>>, vector<32x2048xbf16>
    %c0_1 = arith.constant 0 : index
    %c0_2 = arith.constant 0 : index
    %1 = vector.load %arg2[%c0_1, %c0_2] : memref<2048x128xbf16, #tpu.memory_space<vmem>>, vector<2048x128xbf16>
    %cst = arith.constant dense<0.000000e+00> : vector<32x128xf32>
    %2 = tpu.matmul %0, %1, %cst {dimension_numbers = #tpu.dot_dimension_numbers<[1], [0], [0], [1], [0, 0, 1, 1], [], []>} : vector<32x2048xbf16>, vector<2048x128xbf16>, vector<32x128xf32> -> vector<32x128xf32>
    %cst_3 = arith.constant dense<0.000000e+00> : vector<128xf32>
    %3 = vector.multi_reduction <add>, %2, %cst_3 [0] : vector<32x128xf32> to vector<128xf32>
    %4 = vector.shape_cast %3 : vector<128xf32> to vector<1x128xf32>
    %5 = arith.mulf %2, %2 : vector<32x128xf32>
    %cst_4 = arith.constant dense<0.000000e+00> : vector<128xf32>
    %6 = vector.multi_reduction <add>, %5, %cst_4 [0] : vector<32x128xf32> to vector<128xf32>
    %7 = vector.shape_cast %6 : vector<128xf32> to vector<1x128xf32>
    %cst_5 = arith.constant 3.125000e-02 : f32
    %8 = vector.broadcast %cst_5 : f32 to vector<1x128xf32>
    %9 = arith.mulf %4, %8 : vector<1x128xf32>
    %cst_6 = arith.constant 3.125000e-02 : f32
    %10 = vector.broadcast %cst_6 : f32 to vector<1x128xf32>
    %11 = arith.mulf %7, %10 : vector<1x128xf32>
    %12 = arith.mulf %9, %9 : vector<1x128xf32>
    %13 = arith.subf %11, %12 : vector<1x128xf32>
    %cst_7 = arith.constant 0.000000e+00 : f32
    %14 = vector.broadcast %cst_7 : f32 to vector<1x128xf32>
    %15 = arith.maximumf %13, %14 : vector<1x128xf32>
    %cst_8 = arith.constant 9.99999974E-6 : f32
    %16 = vector.broadcast %cst_8 : f32 to vector<1x128xf32>
    %17 = arith.addf %15, %16 : vector<1x128xf32>
    %18 = math.rsqrt %17 : vector<1x128xf32>
    %c0_9 = arith.constant 0 : index
    %c0_10 = arith.constant 0 : index
    %19 = vector.load %arg3[%c0_9, %c0_10] : memref<1x128xf32, #tpu.memory_space<vmem>>, vector<1x128xf32>
    %20 = arith.mulf %18, %19 : vector<1x128xf32>
    %21 = vector.broadcast %9 : vector<1x128xf32> to vector<32x128xf32>
    %22 = arith.subf %2, %21 : vector<32x128xf32>
    %23 = vector.broadcast %20 : vector<1x128xf32> to vector<32x128xf32>
    %24 = arith.mulf %22, %23 : vector<32x128xf32>
    %c0_11 = arith.constant 0 : index
    %c0_12 = arith.constant 0 : index
    %25 = vector.load %arg4[%c0_11, %c0_12] : memref<1x128xf32, #tpu.memory_space<vmem>>, vector<1x128xf32>
    %26 = vector.broadcast %25 : vector<1x128xf32> to vector<32x128xf32>
    %27 = arith.addf %24, %26 : vector<32x128xf32>
    %cst_13 = arith.constant 0.000000e+00 : f32
    %28 = vector.broadcast %cst_13 : f32 to vector<32x128xf32>
    %29 = arith.cmpf ogt, %27, %28 : vector<32x128xf32>
    %cst_14 = arith.constant 2.000000e-01 : f32
    %30 = vector.broadcast %cst_14 : f32 to vector<32x128xf32>
    %31 = arith.mulf %30, %27 : vector<32x128xf32>
    %32 = arith.select %29, %27, %31 : vector<32x128xi1>, vector<32x128xf32>
    %33 = arith.truncf %32 : vector<32x128xf32> to vector<32x128xbf16>
    %c0_15 = arith.constant 0 : index
    %c0_16 = arith.constant 0 : index
    %34 = vector.load %arg5[%c0_15, %c0_16] : memref<32x128xbf16, #tpu.memory_space<vmem>>, vector<32x128xbf16>
    tpu.vector_store %arg5[%c0_15, %c0_16], %33 {strides = array<i32>} : memref<32x128xbf16, #tpu.memory_space<vmem>>, vector<32x128xbf16>,
    return
  }
  func.func @transform_0(%arg0: i32) -> (i32, i32) {
    %c0_i32 = arith.constant 0 : i32
    %c0_i32_0 = arith.constant 0 : i32
    %c0_i32_1 = arith.constant 0 : i32
    return %c0_i32, %c0_i32_0 : i32, i32
  }
  func.func @transform_1(%arg0: i32) -> (i32, i32) {
    %c0_i32 = arith.constant 0 : i32
    %c0_i32_0 = arith.constant 0 : i32
    %c0_i32_1 = arith.constant 0 : i32
    return %c0_i32, %c0_i32_0 : i32, i32
  }
  func.func @transform_2(%arg0: i32) -> (i32, i32) {
    %c0_i32 = arith.constant 0 : i32
    %c0_i32_0 = arith.constant 0 : i32
    %c0_i32_1 = arith.constant 0 : i32
    return %c0_i32, %c0_i32_0 : i32, i32
  }
  func.func @transform_3(%arg0: i32) -> (i32, i32) {
    %c0_i32 = arith.constant 0 : i32
    %c0_i32_0 = arith.constant 0 : i32
    %c0_i32_1 = arith.constant 0 : i32
    return %c0_i32, %c0_i32_0 : i32, i32
  }
  func.func @transform_4(%arg0: i32) -> (i32, i32) {
    %c0_i32 = arith.constant 0 : i32
    %c0_i32_0 = arith.constant 0 : i32
    %c0_i32_1 = arith.constant 0 : i32
    return %c0_i32, %c0_i32_0 : i32, i32
  }
}

module attributes {stable_mosaic.version = 11 : i64} {
  func.func @_mm_bn_lrelu_kernel(%arg0: i32, %arg1: memref<8x2048xbf16, #tpu.memory_space<vmem>>, %arg2: memref<2048x256xbf16, #tpu.memory_space<vmem>>, %arg3: memref<1x256xf32, #tpu.memory_space<vmem>>, %arg4: memref<1x256xf32, #tpu.memory_space<vmem>>, %arg5: memref<8x256xbf16, #tpu.memory_space<vmem>>) attributes {dimension_semantics = [#tpu.dimension_semantics<arbitrary>], iteration_bounds = array<i64: 1>, scalar_prefetch = 0 : i64, scratch_operands = 0 : i64, tpu.core_type = #tpu.core_type<tc>, window_params = [{pipeline_mode = #tpu.pipeline_mode<synchronous>, transform_indices = @transform_0, window_bounds = array<i64: 8, 2048>}, {pipeline_mode = #tpu.pipeline_mode<synchronous>, transform_indices = @transform_1, window_bounds = array<i64: 2048, 256>}, {pipeline_mode = #tpu.pipeline_mode<synchronous>, transform_indices = @transform_2, window_bounds = array<i64: 1, 256>}, {pipeline_mode = #tpu.pipeline_mode<synchronous>, transform_indices = @transform_3, window_bounds = array<i64: 1, 256>}, {pipeline_mode = #tpu.pipeline_mode<synchronous>, transform_indices = @transform_4, window_bounds = array<i64: 8, 256>}]} {
    %c0 = arith.constant 0 : index
    %c0_0 = arith.constant 0 : index
    %0 = vector.load %arg1[%c0, %c0_0] : memref<8x2048xbf16, #tpu.memory_space<vmem>>, vector<8x2048xbf16>
    %c0_1 = arith.constant 0 : index
    %c0_2 = arith.constant 0 : index
    %1 = vector.load %arg2[%c0_1, %c0_2] : memref<2048x256xbf16, #tpu.memory_space<vmem>>, vector<2048x256xbf16>
    %cst = arith.constant dense<0.000000e+00> : vector<8x256xf32>
    %2 = tpu.matmul %0, %1, %cst {dimension_numbers = #tpu.dot_dimension_numbers<[1], [0], [0], [1], [0, 0, 1, 1], [], []>} : vector<8x2048xbf16>, vector<2048x256xbf16>, vector<8x256xf32> -> vector<8x256xf32>
    %cst_3 = arith.constant dense<0.000000e+00> : vector<256xf32>
    %3 = vector.multi_reduction <add>, %2, %cst_3 [0] : vector<8x256xf32> to vector<256xf32>
    %4 = vector.shape_cast %3 : vector<256xf32> to vector<1x256xf32>
    %5 = arith.mulf %2, %2 : vector<8x256xf32>
    %cst_4 = arith.constant dense<0.000000e+00> : vector<256xf32>
    %6 = vector.multi_reduction <add>, %5, %cst_4 [0] : vector<8x256xf32> to vector<256xf32>
    %7 = vector.shape_cast %6 : vector<256xf32> to vector<1x256xf32>
    %cst_5 = arith.constant 1.250000e-01 : f32
    %8 = vector.broadcast %cst_5 : f32 to vector<1x256xf32>
    %9 = arith.mulf %4, %8 : vector<1x256xf32>
    %cst_6 = arith.constant 1.250000e-01 : f32
    %10 = vector.broadcast %cst_6 : f32 to vector<1x256xf32>
    %11 = arith.mulf %7, %10 : vector<1x256xf32>
    %12 = arith.mulf %9, %9 : vector<1x256xf32>
    %13 = arith.subf %11, %12 : vector<1x256xf32>
    %cst_7 = arith.constant 0.000000e+00 : f32
    %14 = vector.broadcast %cst_7 : f32 to vector<1x256xf32>
    %15 = arith.maximumf %13, %14 : vector<1x256xf32>
    %cst_8 = arith.constant 9.99999974E-6 : f32
    %16 = vector.broadcast %cst_8 : f32 to vector<1x256xf32>
    %17 = arith.addf %15, %16 : vector<1x256xf32>
    %18 = math.rsqrt %17 : vector<1x256xf32>
    %c0_9 = arith.constant 0 : index
    %c0_10 = arith.constant 0 : index
    %19 = vector.load %arg3[%c0_9, %c0_10] : memref<1x256xf32, #tpu.memory_space<vmem>>, vector<1x256xf32>
    %20 = arith.mulf %18, %19 : vector<1x256xf32>
    %21 = vector.broadcast %9 : vector<1x256xf32> to vector<8x256xf32>
    %22 = arith.subf %2, %21 : vector<8x256xf32>
    %23 = vector.broadcast %20 : vector<1x256xf32> to vector<8x256xf32>
    %24 = arith.mulf %22, %23 : vector<8x256xf32>
    %c0_11 = arith.constant 0 : index
    %c0_12 = arith.constant 0 : index
    %25 = vector.load %arg4[%c0_11, %c0_12] : memref<1x256xf32, #tpu.memory_space<vmem>>, vector<1x256xf32>
    %26 = vector.broadcast %25 : vector<1x256xf32> to vector<8x256xf32>
    %27 = arith.addf %24, %26 : vector<8x256xf32>
    %cst_13 = arith.constant 0.000000e+00 : f32
    %28 = vector.broadcast %cst_13 : f32 to vector<8x256xf32>
    %29 = arith.cmpf ogt, %27, %28 : vector<8x256xf32>
    %cst_14 = arith.constant 2.000000e-01 : f32
    %30 = vector.broadcast %cst_14 : f32 to vector<8x256xf32>
    %31 = arith.mulf %30, %27 : vector<8x256xf32>
    %32 = arith.select %29, %27, %31 : vector<8x256xi1>, vector<8x256xf32>
    %33 = arith.truncf %32 : vector<8x256xf32> to vector<8x256xbf16>
    %c0_15 = arith.constant 0 : index
    %c0_16 = arith.constant 0 : index
    %34 = vector.load %arg5[%c0_15, %c0_16] : memref<8x256xbf16, #tpu.memory_space<vmem>>, vector<8x256xbf16>
    tpu.vector_store %arg5[%c0_15, %c0_16], %33 {strides = array<i32>} : memref<8x256xbf16, #tpu.memory_space<vmem>>, vector<8x256xbf16>,
    return
  }
  func.func @transform_0(%arg0: i32) -> (i32, i32) {
    %c0_i32 = arith.constant 0 : i32
    %c0_i32_0 = arith.constant 0 : i32
    %c0_i32_1 = arith.constant 0 : i32
    return %c0_i32, %c0_i32_0 : i32, i32
  }
  func.func @transform_1(%arg0: i32) -> (i32, i32) {
    %c0_i32 = arith.constant 0 : i32
    %c0_i32_0 = arith.constant 0 : i32
    %c0_i32_1 = arith.constant 0 : i32
    return %c0_i32, %c0_i32_0 : i32, i32
  }
  func.func @transform_2(%arg0: i32) -> (i32, i32) {
    %c0_i32 = arith.constant 0 : i32
    %c0_i32_0 = arith.constant 0 : i32
    %c0_i32_1 = arith.constant 0 : i32
    return %c0_i32, %c0_i32_0 : i32, i32
  }
  func.func @transform_3(%arg0: i32) -> (i32, i32) {
    %c0_i32 = arith.constant 0 : i32
    %c0_i32_0 = arith.constant 0 : i32
    %c0_i32_1 = arith.constant 0 : i32
    return %c0_i32, %c0_i32_0 : i32, i32
  }
  func.func @transform_4(%arg0: i32) -> (i32, i32) {
    %c0_i32 = arith.constant 0 : i32
    %c0_i32_0 = arith.constant 0 : i32
    %c0_i32_1 = arith.constant 0 : i32
    return %c0_i32, %c0_i32_0 : i32, i32
  }
}

module attributes {stable_mosaic.version = 11 : i64} {
  func.func @_mm_act_kernel(%arg0: i32, %arg1: memref<8x1024xbf16, #tpu.memory_space<vmem>>, %arg2: memref<1024x128xbf16, #tpu.memory_space<vmem>>, %arg3: memref<8x128xf32, #tpu.memory_space<vmem>>) attributes {dimension_semantics = [#tpu.dimension_semantics<parallel>], iteration_bounds = array<i64: 1>, scalar_prefetch = 0 : i64, scratch_operands = 0 : i64, tpu.core_type = #tpu.core_type<tc>, window_params = [{transform_indices = @transform_0, window_bounds = array<i64: 8, 1024>}, {pipeline_mode = #tpu.pipeline_mode<synchronous>, transform_indices = @transform_1, window_bounds = array<i64: 1024, 128>}, {transform_indices = @transform_2, window_bounds = array<i64: 8, 128>}]} {
    %c0 = arith.constant 0 : index
    %c0_0 = arith.constant 0 : index
    %0 = vector.load %arg1[%c0, %c0_0] : memref<8x1024xbf16, #tpu.memory_space<vmem>>, vector<8x1024xbf16>
    %c0_1 = arith.constant 0 : index
    %c0_2 = arith.constant 0 : index
    %1 = vector.load %arg2[%c0_1, %c0_2] : memref<1024x128xbf16, #tpu.memory_space<vmem>>, vector<1024x128xbf16>
    %cst = arith.constant dense<0.000000e+00> : vector<8x128xf32>
    %2 = tpu.matmul %0, %1, %cst {dimension_numbers = #tpu.dot_dimension_numbers<[1], [0], [0], [1], [0, 0, 1, 1], [], []>} : vector<8x1024xbf16>, vector<1024x128xbf16>, vector<8x128xf32> -> vector<8x128xf32>
    %cst_3 = arith.constant 0.000000e+00 : f32
    %3 = vector.broadcast %cst_3 : f32 to vector<8x128xf32>
    %4 = arith.subf %3, %2 : vector<8x128xf32>
    %5 = math.exp %4 : vector<8x128xf32>
    %cst_4 = arith.constant 1.000000e+00 : f32
    %6 = vector.broadcast %cst_4 : f32 to vector<8x128xf32>
    %7 = arith.addf %6, %5 : vector<8x128xf32>
    %8 = tpu.reciprocal %7 {approx = true} : vector<8x128xf32> -> vector<8x128xf32>
    %c0_5 = arith.constant 0 : index
    %c0_6 = arith.constant 0 : index
    %9 = vector.load %arg3[%c0_5, %c0_6] : memref<8x128xf32, #tpu.memory_space<vmem>>, vector<8x128xf32>
    tpu.vector_store %arg3[%c0_5, %c0_6], %8 {strides = array<i32>} : memref<8x128xf32, #tpu.memory_space<vmem>>, vector<8x128xf32>,
    return
  }
  func.func @transform_0(%arg0: i32) -> (i32, i32) {
    %c0_i32 = arith.constant 0 : i32
    %c0_i32_0 = arith.constant 0 : i32
    return %arg0, %c0_i32 : i32, i32
  }
  func.func @transform_1(%arg0: i32) -> (i32, i32) {
    %c0_i32 = arith.constant 0 : i32
    %c0_i32_0 = arith.constant 0 : i32
    %c0_i32_1 = arith.constant 0 : i32
    return %c0_i32, %c0_i32_0 : i32, i32
  }
  func.func @transform_2(%arg0: i32) -> (i32, i32) {
    %c0_i32 = arith.constant 0 : i32
    %c0_i32_0 = arith.constant 0 : i32
    return %arg0, %c0_i32 : i32, i32
  }
}

</mosaic_0001>

<bundles_post_ra>
// kernel: discriminator_forward.5
= control target key start
LH: loop header
LB: loop body
LE: loop exit
PB: predicated region body
PF: predicated region fallthrough
CT: control target
= control target key end

     0   :  { %s1150_s9 = smov 0   ;;  %s1237_s0 = inlined_call_operand.vmem [shape: bf16[512,128], index: 0, kind: input, shape index: {}]   ;;  %s1238_s1 = inlined_call_operand.vmem [shape: bf16[128,128], index: 1, kind: input, shape index: {}]   ;;  %s1239_s2 = inlined_call_operand.vmem [shape: bf16[512,128], index: 2, kind: output, shape index: {}]  }
   0x1 LB: > { %s813_s10 = sadd.s32 4294967295, %s1133_s9   ;;  %p817_p0 = scmp.ge.s32.totalorder %s1133_s9, 1  ;;  %s1133_s9 = sphi %s1150_s9, %s12_s9  }
   0x2   : > { %p113_p1 = scmp.lt.s32.totalorder %s1133_s9, 3 }
   0x4   : > { %p114_p2 = pnand %p817_p0, %p113_p1 }
   0x5   : > { %v1103_v0 = vld [vmem:[%s1238_s1] sm:$0xff] (!%p114_p2)   ;;  %s818_s13 = sshll.u32 (!%p114_p2), %s813_s10, 5  ;;  %v1104_v1 = vld [vmem:[%s1238_s1 + $0x8] sm:$0xff] (!%p114_p2)   ;;  %v1105_v2 = vld [vmem:[%s1238_s1 + $0x10] sm:$0xff] (!%p114_p2)  }
   0x6   : > { %117 = sbr.rel (%p114_p2) target bundleno = 285 (0x11d), region = 28  ;;  %p136_p3 = scmp.lt.s32.totalorder (!%p114_p2), %s818_s13, 63  ;;  %1031 = vmatprep.subr.bf16.mxu0 (!%p114_p2), %v1103_v0  ;;  %1079 = vmatprep.subr.bf16.mxu1 (!%p114_p2), %v1103_v0  ;;  %v1106_v3 = vld [vmem:[%s1238_s1 + $0x18] sm:$0xff] (!%p114_p2)   ;;  %v1107_v6 = vld [vmem:[%s1238_s1 + $0x20] sm:$0xff] (!%p114_p2)   ;;  %v1108_v7 = vld [vmem:[%s1238_s1 + $0x28] sm:$0xff] (!%p114_p2)  }
   0x7   : > { %1032 = vmatpush3.bf16.msra.mxu0 (!%p114_p2), %v1103_v0  ;;  %1087 = vmatpush3.bf16.msra.mxu1 (!%p114_p2), %v1103_v0  ;;  %v1109_v8 = vld [vmem:[%s1238_s1 + $0x30] sm:$0xff] (!%p114_p2)   ;;  %v1110_v9 = vld [vmem:[%s1238_s1 + $0x38] sm:$0xff] (!%p114_p2)  }
   0x8   : > { %1033 = vmatprep.subr.bf16.mxu0 (!%p114_p2), %v1104_v1  ;;  %1080 = vmatprep.subr.bf16.mxu1 (!%p114_p2), %v1104_v1 }
   0xb   : > { %1034 = vmatpush3.bf16.msra.mxu0 (!%p114_p2), %v1104_v1  ;;  %1088 = vmatpush3.bf16.msra.mxu1 (!%p114_p2), %v1104_v1 }
   0xc   : > { %1035 = vmatprep.subr.bf16.mxu0 (!%p114_p2), %v1105_v2  ;;  %1081 = vmatprep.subr.bf16.mxu1 (!%p114_p2), %v1105_v2 }
   0xd   : > { %s1241_s13 = smov (!%p136_p3, %s818_s13), 63 }
   0xe   : > { %s819_s18 = sshll.u32 %s1241_s13, 2 }
   0xf   : > { %s1175_s21 = scalar_lea.vmem %s1237_s0, %s819_s18  ;;  %1036 = vmatpush3.bf16.msra.mxu0 %v1105_v2  ;;  %1089 = vmatpush3.bf16.msra.mxu1 %v1105_v2  ;;  %s1213_s6 = scalar_lea.vmem %s1239_s2, %s819_s18 }
  0x10   : > { %v1111_v4 = vld [vmem:[%s1175_s21] sm:$0xff]   ;;  %1037 = vmatprep.subr.bf16.mxu0 %v1106_v3  ;;  %1082 = vmatprep.subr.bf16.mxu1 %v1106_v3  ;;  %v1113_v10 = vld [vmem:[%s1175_s21 + $0x8] sm:$0xff]   ;;  %v1115_v12 = vld [vmem:[%s1175_s21 + $0x10] sm:$0xff]  }
  0x11   : > { %v1112_v5 = vld [vmem:[%s1175_s21 + $0x40] sm:$0xff]   ;;  %1047 = vmatprep.mubr.bf16.mxu0 %v1111_v4  ;;  %v1114_v11 = vld [vmem:[%s1175_s21 + $0x48] sm:$0xff]   ;;  %v1116_v13 = vld [vmem:[%s1175_s21 + $0x50] sm:$0xff]  }
  0x12   : > { %1063 = vmatprep.mubr.bf16.mxu1 %v1112_v5  ;;  %v1117_v14 = vld [vmem:[%s1175_s21 + $0x18] sm:$0xff]   ;;  %v1119_v16 = vld [vmem:[%s1175_s21 + $0x20] sm:$0xff]   ;;  %v1121_v18 = vld [vmem:[%s1175_s21 + $0x28] sm:$0xff]  }
  0x13   : > { %1038 = vmatpush3.bf16.msra.mxu0 %v1106_v3  ;;  %1090 = vmatpush3.bf16.msra.mxu1 %v1106_v3  ;;  %v1118_v15 = vld [vmem:[%s1175_s21 + $0x58] sm:$0xff]   ;;  %v1120_v17 = vld [vmem:[%s1175_s21 + $0x60] sm:$0xff]   ;;  %v1122_v19 = vld [vmem:[%s1175_s21 + $0x68] sm:$0xff]  }
  0x14   : > { %1039 = vmatprep.subr.bf16.mxu0 %v1107_v6  ;;  %1083 = vmatprep.subr.bf16.mxu1 %v1107_v6  ;;  %v1123_v20 = vld [vmem:[%s1175_s21 + $0x30] sm:$0xff]   ;;  %v1125_v22 = vld [vmem:[%s1175_s21 + $0x38] sm:$0xff]  }
  0x15   : > { %v1124_v21 = vld [vmem:[%s1175_s21 + $0x70] sm:$0xff]   ;;  %v1126_v23 = vld [vmem:[%s1175_s21 + $0x78] sm:$0xff]  }
  0x17   : > { %1040 = vmatpush3.bf16.msra.mxu0 %v1107_v6  ;;  %1091 = vmatpush3.bf16.msra.mxu1 %v1107_v6 }
  0x18   : > { %1041 = vmatprep.subr.bf16.mxu0 %v1108_v7  ;;  %1084 = vmatprep.subr.bf16.mxu1 %v1108_v7 }
  0x1b   : > { %1042 = vmatpush3.bf16.msra.mxu0 %v1108_v7  ;;  %1092 = vmatpush3.bf16.msra.mxu1 %v1108_v7 }
  0x1c   : > { %1043 = vmatprep.subr.bf16.mxu0 %v1109_v8  ;;  %1085 = vmatprep.subr.bf16.mxu1 %v1109_v8 }
  0x1f   : > { %1044 = vmatpush3.bf16.msra.mxu0 %v1109_v8  ;;  %1093 = vmatpush3.bf16.msra.mxu1 %v1109_v8 }
  0x20   : > { %1045 = vmatprep.subr.bf16.mxu0 %v1110_v9  ;;  %1086 = vmatprep.subr.bf16.mxu1 %v1110_v9 }
  0x23   : > { %1046 = vmatpush3.bf16.msra.mxu0 %v1110_v9  ;;  %1094 = vmatpush3.bf16.msra.mxu1 %v1110_v9 }
  0x26   : > { %1048 = vmatmul.mubr.bf16.vlgmr.msra.gmra.mrb[0].mxu0 %v1113_v10  ;;  %1064 = vmatmul.mubr.bf16.vlgmr.msra.gmra.mrb[0].mxu1 %v1114_v11 }
  0x27   : > { %1051 = vmatprep.mubr.bf16.mxu0 %v1115_v12  ;;  %1067 = vmatprep.mubr.bf16.mxu1 %v1116_v13 }
  0x2e   : > { %1052 = vmatmul.mubr.bf16.gmra.mrb[4].mxu0 %v1117_v14  ;;  %1068 = vmatmul.mubr.bf16.gmra.mrb[4].mxu1 %v1118_v15 }
  0x2f   : > { %1055 = vmatprep.mubr.bf16.mxu0 %v1119_v16  ;;  %1071 = vmatprep.mubr.bf16.mxu1 %v1120_v17 }
  0x36   : > { %1056 = vmatmul.mubr.bf16.gmra.mrb[8].mxu0 %v1121_v18  ;;  %1072 = vmatmul.mubr.bf16.gmra.mrb[8].mxu1 %v1122_v19 }
  0x37   : > { %1059 = vmatprep.mubr.bf16.mxu0 %v1123_v20  ;;  %1075 = vmatprep.mubr.bf16.mxu1 %v1124_v21 }
  0x3e   : > { %1060 = vmatmul.mubr.bf16.gmra.mrb[12].mxu0 %v1125_v22  ;;  %1076 = vmatmul.mubr.bf16.gmra.mrb[12].mxu1 %v1126_v23 }
  0xf9   : > { %v1049_v24 = vpop.f32.mrb[0].mxu0  ;;  %v1065_v25 = vpop.f32.mrb[0].mxu1 }
  0xfa   : > { %vm503_vm0 = vcmp.gt.f32.partialorder %v1049_v24, 0.0  ;;  %v535_v26 = vmul.f32 0.2, %v1049_v24  ;;  %v551_v27 = vmul.f32 0.2, %v1065_v25  ;;  %vm519_vm1 = vcmp.gt.f32.partialorder %v1065_v25, 0.0 }
  0xfb   : > { %v374_v28 = vpop.f32.mrb[1].mxu0  ;;  %v438_v29 = vpop.f32.mrb[1].mxu1 }
  0xfc   : > { %v533_v30 = vmul.f32 0.2, %v374_v28  ;;  %v1050_v31 = vpop.f32.mrb[2].mxu0  ;;  %v1066_v32 = vpop.f32.mrb[2].mxu1  ;;  %v567_v33 = vsel %vm503_vm0, %v1049_v24, %v535_v26  ;;  %v549_v34 = vmul.f32 0.2, %v438_v29  ;;  %v583_v36 = vsel %vm519_vm1, %v1065_v25, %v551_v27 }
  0xfd   : > { %vm504_vm2 = vcmp.gt.f32.partialorder %v1050_v31, 0.0  ;;  %v536_v35 = vmul.f32 0.2, %v1050_v31  ;;  %vm501_vm3 = vcmp.gt.f32.partialorder %v374_v28, 0.0  ;;  %vm520_vm4 = vcmp.gt.f32.partialorder %v1066_v32, 0.0  ;;  %v377_v38 = vpop.f32.mrb[3].mxu0 }
  0xfe   : > { %v552_v37 = vmul.f32 0.2, %v1066_v32  ;;  %v441_v39 = vpop.f32.mrb[3].mxu1  ;;  %vm517_vm5 = vcmp.gt.f32.partialorder %v438_v29, 0.0  ;;  %vm502_vm6 = vcmp.gt.f32.partialorder %v377_v38, 0.0  ;;  %v565_v45 = vsel %vm501_vm3, %v374_v28, %v533_v30 }
  0xff   : > { %v568_v40 = vsel %vm504_vm2, %v1050_v31, %v536_v35  ;;  %v534_v41 = vmul.f32 0.2, %v377_v38  ;;  %vm518_vm7 = vcmp.gt.f32.partialorder %v441_v39, 0.0  ;;  %v550_v44 = vmul.f32 0.2, %v441_v39 }
 0x100   : > { %v920_v42 = vpack.c.bf16 %v568_v40, %v567_v33  ;;  %v584_v43 = vsel %vm520_vm4, %v1066_v32, %v552_v37  ;;  %v581_v50 = vsel %vm517_vm5, %v438_v29, %v549_v34 }
 0x101   : > { %v960_v46 = vpack.c.bf16 %v584_v43, %v583_v36  ;;  %v566_v47 = vsel %vm502_vm6, %v377_v38, %v534_v41  ;;  %v1053_v48 = vpop.f32.mrb[4].mxu0  ;;  %v1069_v49 = vpop.f32.mrb[4].mxu1  ;;  %v582_v52 = vsel %vm518_vm7, %v441_v39, %v550_v44 }
 0x102   : > { %992 = vst [vmem:[%s1213_s6 + $0x8] sm:$0xff] %v920_v42   ;;  %v915_v51 = vpack.c.bf16 %v566_v47, %v565_v45  ;;  %v539_v53 = vmul.f32 0.2, %v1053_v48  ;;  %v390_v54 = vpop.f32.mrb[5].mxu0  ;;  %v454_v55 = vpop.f32.mrb[5].mxu1  ;;  %v955_v56 = vpack.c.bf16 %v582_v52, %v581_v50  ;;  %vm507_vm8 = vcmp.gt.f32.partialorder %v1053_v48, 0.0 }
 0x103   : > { %1000 = vst [vmem:[%s1213_s6 + $0x48] sm:$0xff] %v960_v46   ;;  %v555_v57 = vmul.f32 0.2, %v1069_v49  ;;  %v1054_v58 = vpop.f32.mrb[6].mxu0  ;;  %v1070_v59 = vpop.f32.mrb[6].mxu1  ;;  %vm523_vm9 = vcmp.gt.f32.partialorder %v1069_v49, 0.0 }
 0x104   : > { %916 = vst [vmem:[%s1213_s6] sm:$0xff] %v915_v51   ;;  %v537_v60 = vmul.f32 0.2, %v390_v54  ;;  %v553_v61 = vmul.f32 0.2, %v454_v55  ;;  %v393_v62 = vpop.f32.mrb[7].mxu0  ;;  %999 = vst [vmem:[%s1213_s6 + $0x40] sm:$0xff] %v955_v56   ;;  %v571_v1 = vsel %vm507_vm8, %v1053_v48, %v539_v53 }
 0x105   : > { %vm505_vm10 = vcmp.gt.f32.partialorder %v390_v54, 0.0  ;;  %vm508_vm11 = vcmp.gt.f32.partialorder %v1054_v58, 0.0  ;;  %v540_v63 = vmul.f32 0.2, %v1054_v58  ;;  %vm524_vm12 = vcmp.gt.f32.partialorder %v1070_v59, 0.0  ;;  %v457_v0 = vpop.f32.mrb[7].mxu1 }
 0x106   : > { %vm521_vm13 = vcmp.gt.f32.partialorder %v454_v55, 0.0  ;;  %v556_v2 = vmul.f32 0.2, %v1070_v59  ;;  %vm506_vm14 = vcmp.gt.f32.partialorder %v393_v62, 0.0  ;;  %v538_v4 = vmul.f32 0.2, %v393_v62 }
 0x107   : > { %v572_v3 = vsel %vm508_vm11, %v1054_v58, %v540_v63  ;;  %vm522_vm15 = vcmp.gt.f32.partialorder %v457_v0, 0.0  ;;  %v554_v5 = vmul.f32 0.2, %v457_v0  ;;  %v587_v6 = vsel %vm523_vm9, %v1069_v49, %v555_v57 }
 0x108   : > { %v569_v7 = vsel %vm505_vm10, %v390_v54, %v537_v60  ;;  %v930_v8 = vpack.c.bf16 %v572_v3, %v571_v1  ;;  %v588_v9 = vsel %vm524_vm12, %v1070_v59, %v556_v2  ;;  %v585_v10 = vsel %vm521_vm13, %v454_v55, %v553_v61 }
 0x109   : > { %v970_v11 = vpack.c.bf16 %v588_v9, %v587_v6  ;;  %v570_v12 = vsel %vm506_vm14, %v393_v62, %v538_v4  ;;  %v586_v13 = vsel %vm522_vm15, %v457_v0, %v554_v5  ;;  %v1057_v14 = vpop.f32.mrb[8].mxu0  ;;  %v1073_v15 = vpop.f32.mrb[8].mxu1 }
 0x10a   : > { %994 = vst [vmem:[%s1213_s6 + $0x18] sm:$0xff] %v930_v8   ;;  %v925_v16 = vpack.c.bf16 %v570_v12, %v569_v7  ;;  %v965_v17 = vpack.c.bf16 %v586_v13, %v585_v10  ;;  %vm511_vm0 = vcmp.gt.f32.partialorder %v1057_v14, 0.0  ;;  %v543_v18 = vmul.f32 0.2, %v1057_v14  ;;  %v406_v19 = vpop.f32.mrb[9].mxu0  ;;  %v470_v20 = vpop.f32.mrb[9].mxu1 }
 0x10b   : > { %1002 = vst [vmem:[%s1213_s6 + $0x58] sm:$0xff] %v970_v11   ;;  %vm527_vm1 = vcmp.gt.f32.partialorder %v1073_v15, 0.0  ;;  %v559_v21 = vmul.f32 0.2, %v1073_v15  ;;  %v541_v22 = vmul.f32 0.2, %v406_v19 }
 0x10c   : > { %993 = vst [vmem:[%s1213_s6 + $0x10] sm:$0xff] %v925_v16   ;;  %1001 = vst [vmem:[%s1213_s6 + $0x50] sm:$0xff] %v965_v17   ;;  %v557_v23 = vmul.f32 0.2, %v470_v20  ;;  %v1058_v24 = vpop.f32.mrb[10].mxu0  ;;  %v1074_v25 = vpop.f32.mrb[10].mxu1  ;;  %v575_v26 = vsel %vm511_vm0, %v1057_v14, %v543_v18 }
 0x10d   : > { %vm509_vm2 = vcmp.gt.f32.partialorder %v406_v19, 0.0  ;;  %vm512_vm3 = vcmp.gt.f32.partialorder %v1058_v24, 0.0  ;;  %v544_v27 = vmul.f32 0.2, %v1058_v24  ;;  %v409_v28 = vpop.f32.mrb[11].mxu0  ;;  %v473_v29 = vpop.f32.mrb[11].mxu1  ;;  %v591_v34 = vsel %vm527_vm1, %v1073_v15, %v559_v21 }
 0x10e   : > { %vm525_vm4 = vcmp.gt.f32.partialorder %v470_v20, 0.0  ;;  %vm528_vm5 = vcmp.gt.f32.partialorder %v1074_v25, 0.0  ;;  %v560_v30 = vmul.f32 0.2, %v1074_v25  ;;  %vm510_vm6 = vcmp.gt.f32.partialorder %v409_v28, 0.0 }
 0x10f   : > { %v576_v31 = vsel %vm512_vm3, %v1058_v24, %v544_v27  ;;  %v542_v32 = vmul.f32 0.2, %v409_v28  ;;  %vm526_vm7 = vcmp.gt.f32.partialorder %v473_v29, 0.0  ;;  %v558_v33 = vmul.f32 0.2, %v473_v29 }
 0x110   : > { %v573_v35 = vsel %vm509_vm2, %v406_v19, %v541_v22  ;;  %v940_v36 = vpack.c.bf16 %v576_v31, %v575_v26  ;;  %v592_v37 = vsel %vm528_vm5, %v1074_v25, %v560_v30  ;;  %v589_v38 = vsel %vm525_vm4, %v470_v20, %v557_v23 }
 0x111   : > { %v980_v39 = vpack.c.bf16 %v592_v37, %v591_v34  ;;  %v574_v40 = vsel %vm510_vm6, %v409_v28, %v542_v32  ;;  %v590_v41 = vsel %vm526_vm7, %v473_v29, %v558_v33  ;;  %v1061_v42 = vpop.f32.mrb[12].mxu0  ;;  %v1077_v43 = vpop.f32.mrb[12].mxu1 }
 0x112   : > { %996 = vst [vmem:[%s1213_s6 + $0x28] sm:$0xff] %v940_v36   ;;  %v935_v44 = vpack.c.bf16 %v574_v40, %v573_v35  ;;  %v975_v45 = vpack.c.bf16 %v590_v41, %v589_v38  ;;  %vm515_vm8 = vcmp.gt.f32.partialorder %v1061_v42, 0.0  ;;  %v547_v46 = vmul.f32 0.2, %v1061_v42  ;;  %v422_v47 = vpop.f32.mrb[13].mxu0  ;;  %v486_v48 = vpop.f32.mrb[13].mxu1 }
 0x113   : > { %1004 = vst [vmem:[%s1213_s6 + $0x68] sm:$0xff] %v980_v39   ;;  %vm531_vm9 = vcmp.gt.f32.partialorder %v1077_v43, 0.0  ;;  %v563_v49 = vmul.f32 0.2, %v1077_v43  ;;  %v545_v50 = vmul.f32 0.2, %v422_v47 }
 0x114   : > { %995 = vst [vmem:[%s1213_s6 + $0x20] sm:$0xff] %v935_v44   ;;  %1003 = vst [vmem:[%s1213_s6 + $0x60] sm:$0xff] %v975_v45   ;;  %v561_v51 = vmul.f32 0.2, %v486_v48  ;;  %v1062_v52 = vpop.f32.mrb[14].mxu0  ;;  %v1078_v53 = vpop.f32.mrb[14].mxu1  ;;  %v579_v54 = vsel %vm515_vm8, %v1061_v42, %v547_v46 }
 0x115   : > { %vm513_vm10 = vcmp.gt.f32.partialorder %v422_v47, 0.0  ;;  %vm516_vm11 = vcmp.gt.f32.partialorder %v1062_v52, 0.0  ;;  %v548_v55 = vmul.f32 0.2, %v1062_v52  ;;  %v425_v56 = vpop.f32.mrb[15].mxu0  ;;  %v489_v57 = vpop.f32.mrb[15].mxu1  ;;  %v595_v62 = vsel %vm531_vm9, %v1077_v43, %v563_v49 }
 0x116   : > { %vm529_vm12 = vcmp.gt.f32.partialorder %v486_v48, 0.0  ;;  %vm532_vm13 = vcmp.gt.f32.partialorder %v1078_v53, 0.0  ;;  %v564_v58 = vmul.f32 0.2, %v1078_v53  ;;  %vm514_vm14 = vcmp.gt.f32.partialorder %v425_v56, 0.0 }
 0x117   : > { %v580_v59 = vsel %vm516_vm11, %v1062_v52, %v548_v55  ;;  %v546_v60 = vmul.f32 0.2, %v425_v56  ;;  %vm530_vm15 = vcmp.gt.f32.partialorder %v489_v57, 0.0  ;;  %v562_v61 = vmul.f32 0.2, %v489_v57 }
 0x118   : > { %v577_v63 = vsel %vm513_vm10, %v422_v47, %v545_v50  ;;  %v950_v0 = vpack.c.bf16 %v580_v59, %v579_v54  ;;  %v596_v1 = vsel %vm532_vm13, %v1078_v53, %v564_v58  ;;  %v593_v2 = vsel %vm529_vm12, %v486_v48, %v561_v51 }
 0x119   : > { %v990_v3 = vpack.c.bf16 %v596_v1, %v595_v62  ;;  %v578_v4 = vsel %vm514_vm14, %v425_v56, %v546_v60  ;;  %v594_v5 = vsel %vm530_vm15, %v489_v57, %v562_v61 }
 0x11a   : > { %998 = vst [vmem:[%s1213_s6 + $0x38] sm:$0xff] %v950_v0   ;;  %v945_v6 = vpack.c.bf16 %v578_v4, %v577_v63  ;;  %v985_v7 = vpack.c.bf16 %v594_v5, %v593_v2 }
 0x11b   : > { %1006 = vst [vmem:[%s1213_s6 + $0x78] sm:$0xff] %v990_v3  }
 0x11c   : > { %997 = vst [vmem:[%s1213_s6 + $0x30] sm:$0xff] %v945_v6   ;;  %1005 = vst [vmem:[%s1213_s6 + $0x70] sm:$0xff] %v985_v7  }
 0x11d PF: > { %s12_s9 = sadd.s32 1, %s1133_s9  }
 0x11e   : > { %p9_p4 = scmp.ge.s32.totalorder %s12_s9, 4  }
 0x120   :  { %11 = sbr.rel (!%p9_p4) target bundleno = 1 (0x1), region = 58 }

// kernel: discriminator_forward.6
= control target key start
LH: loop header
LB: loop body
LE: loop exit
PB: predicated region body
PF: predicated region fallthrough
CT: control target
= control target key end

     0   :  { %s4901_s1 = inlined_call_operand.vmem [shape: bf16[2048,128], index: 1, kind: input, shape index: {}]   ;;  %s4902_s0 = inlined_call_operand.vmem [shape: bf16[128,2048], index: 0, kind: input, shape index: {}]   ;;  %s4903_s2 = inlined_call_operand.vmem [shape: f32[1,128], index: 2, kind: input, shape index: {}]   ;;  %s4904_s3 = inlined_call_operand.vmem [shape: f32[1,128], index: 3, kind: input, shape index: {}]   ;;  %s4905_s4 = inlined_call_operand.vmem [shape: bf16[128,128], index: 4, kind: output, shape index: {}]  }
   0x1   :  { %v3692_v0 = vld [vmem:[%s4901_s1 + $0x40] sm:$0xff]   ;;  %v3696_v4 = vld [vmem:[%s4901_s1 + $0x48] sm:$0xff]   ;;  %v3700_v8 = vld [vmem:[%s4901_s1 + $0x50] sm:$0xff]  }
   0x2   :  { %v3693_v1 = vld [vmem:[%s4901_s1 + $0xc0] sm:$0xff]   ;;  %3180 = vmatprep.subr.bf16.mxu0 %v3692_v0  ;;  %v3697_v5 = vld [vmem:[%s4901_s1 + $0xc8] sm:$0xff]   ;;  %v3701_v9 = vld [vmem:[%s4901_s1 + $0xd0] sm:$0xff]  }
   0x3   :  { %v3694_v2 = vld [vmem:[%s4901_s1] sm:$0xff]   ;;  %3244 = vmatprep.subr.bf16.mxu1 %v3693_v1  ;;  %v3698_v6 = vld [vmem:[%s4901_s1 + $0x8] sm:$0xff]   ;;  %v3702_v10 = vld [vmem:[%s4901_s1 + $0x10] sm:$0xff]  }
   0x4   :  { %v3695_v3 = vld [vmem:[%s4901_s1 + $0x80] sm:$0xff]   ;;  %3181 = vmatpush3.bf16.msra.mxu0 %v3694_v2  ;;  %v3699_v7 = vld [vmem:[%s4901_s1 + $0x88] sm:$0xff]   ;;  %v3703_v11 = vld [vmem:[%s4901_s1 + $0x90] sm:$0xff]  }
   0x5   :  { %3245 = vmatpush3.bf16.msra.mxu1 %v3695_v3  ;;  %3182 = vmatprep.subr.bf16.mxu0 %v3696_v4  ;;  %v3704_v12 = vld [vmem:[%s4901_s1 + $0x58] sm:$0xff]   ;;  %v3708_v16 = vld [vmem:[%s4901_s1 + $0x60] sm:$0xff]   ;;  %v3712_v20 = vld [vmem:[%s4901_s1 + $0x68] sm:$0xff]  }
   0x6   :  { %3246 = vmatprep.subr.bf16.mxu1 %v3697_v5  ;;  %v3705_v13 = vld [vmem:[%s4901_s1 + $0xd8] sm:$0xff]   ;;  %v3709_v17 = vld [vmem:[%s4901_s1 + $0xe0] sm:$0xff]   ;;  %v3713_v21 = vld [vmem:[%s4901_s1 + $0xe8] sm:$0xff]  }
   0x7   :  { %v3706_v14 = vld [vmem:[%s4901_s1 + $0x18] sm:$0xff]   ;;  %v3710_v18 = vld [vmem:[%s4901_s1 + $0x20] sm:$0xff]   ;;  %v3714_v22 = vld [vmem:[%s4901_s1 + $0x28] sm:$0xff]  }
   0x8   :  { %3183 = vmatpush3.bf16.msra.mxu0 %v3698_v6  ;;  %v3707_v15 = vld [vmem:[%s4901_s1 + $0x98] sm:$0xff]   ;;  %v3711_v19 = vld [vmem:[%s4901_s1 + $0xa0] sm:$0xff]   ;;  %v3715_v23 = vld [vmem:[%s4901_s1 + $0xa8] sm:$0xff]  }
   0x9   :  { %3247 = vmatpush3.bf16.msra.mxu1 %v3699_v7  ;;  %3184 = vmatprep.subr.bf16.mxu0 %v3700_v8  ;;  %v3716_v24 = vld [vmem:[%s4901_s1 + $0x70] sm:$0xff]   ;;  %v3720_v28 = vld [vmem:[%s4901_s1 + $0x78] sm:$0xff]   ;;  %v18_v32 = vld [vmem:[%s4902_s0] sm:$0xff] }
   0xa   :  { %3248 = vmatprep.subr.bf16.mxu1 %v3701_v9  ;;  %v3717_v25 = vld [vmem:[%s4901_s1 + $0xf0] sm:$0xff]   ;;  %v3721_v29 = vld [vmem:[%s4901_s1 + $0xf8] sm:$0xff]   ;;  %v26_v33 = vld [vmem:[%s4902_s0 + $0x40] sm:$0xff] }
   0xb   :  { %v3718_v26 = vld [vmem:[%s4901_s1 + $0x30] sm:$0xff]   ;;  %v3722_v30 = vld [vmem:[%s4901_s1 + $0x38] sm:$0xff]   ;;  %v19_v34 = vld [vmem:[%s4902_s0 + $0x8] sm:$0xff]  ;;  %v2844_v35 = vcombine.low %v18_v32, %v26_v33  ;;  %v2845_v36 = vcombine.high %v18_v32, %v26_v33 }
   0xc   :  { %3185 = vmatpush3.bf16.msra.mxu0 %v3702_v10  ;;  %v3719_v27 = vld [vmem:[%s4901_s1 + $0xb0] sm:$0xff]   ;;  %v3723_v31 = vld [vmem:[%s4901_s1 + $0xb8] sm:$0xff]   ;;  %v27_v37 = vld [vmem:[%s4902_s0 + $0x48] sm:$0xff] }
   0xd   :  { %3249 = vmatpush3.bf16.msra.mxu1 %v3703_v11  ;;  %3186 = vmatprep.subr.bf16.mxu0 %v3704_v12  ;;  %v2846_v38 = vcombine.low %v19_v34, %v27_v37  ;;  %v2847_v39 = vcombine.high %v19_v34, %v27_v37  ;;  %v3724_v40 = vld [vmem:[%s4901_s1 + $0x140] sm:$0xff]   ;;  %v35_v47 = vld [vmem:[%s4902_s0 + $0x88] sm:$0xff]  ;;  %v3732_v62 = vld [vmem:[%s4901_s1 + $0x150] sm:$0xff]  }
   0xe   :  { %3250 = vmatprep.subr.bf16.mxu1 %v3705_v13  ;;  %1842 = vmatprep.mubr.bf16.mxu0 %v2845_v36  ;;  %v3725_v41 = vld [vmem:[%s4901_s1 + $0x100] sm:$0xff]   ;;  %v43_v48 = vld [vmem:[%s4902_s0 + $0xc8] sm:$0xff]  ;;  %v3733_v63 = vld [vmem:[%s4901_s1 + $0x110] sm:$0xff]  }
   0xf   :  { %1939 = vmatprep.mubr.bf16.mxu1 %v2847_v39  ;;  %v3726_v42 = vld [vmem:[%s4901_s1 + $0x1c0] sm:$0xff]   ;;  %v2863_v49 = vcombine.high %v35_v47, %v43_v48  ;;  %v3728_v50 = vld [vmem:[%s4901_s1 + $0x148] sm:$0xff]   ;;  %v2862_v53 = vcombine.low %v35_v47, %v43_v48  ;;  %v3734_v0 = vld [vmem:[%s4901_s1 + $0x1d0] sm:$0xff]  }
  0x10   :  { %3187 = vmatpush3.bf16.msra.mxu0 %v3706_v14  ;;  %v3727_v43 = vld [vmem:[%s4901_s1 + $0x180] sm:$0xff]   ;;  %v3729_v52 = vld [vmem:[%s4901_s1 + $0x108] sm:$0xff]   ;;  %v3735_v1 = vld [vmem:[%s4901_s1 + $0x190] sm:$0xff]  }
  0x11   :  { %3251 = vmatpush3.bf16.msra.mxu1 %v3707_v15  ;;  %3188 = vmatprep.subr.bf16.mxu0 %v3708_v16  ;;  %v34_v44 = vld [vmem:[%s4902_s0 + $0x80] sm:$0xff]  ;;  %v3730_v54 = vld [vmem:[%s4901_s1 + $0x1c8] sm:$0xff]   ;;  %v3736_v10 = vld [vmem:[%s4901_s1 + $0x158] sm:$0xff]  }
  0x12   :  { %3252 = vmatprep.subr.bf16.mxu1 %v3709_v17  ;;  %v42_v45 = vld [vmem:[%s4902_s0 + $0xc0] sm:$0xff]  ;;  %v3731_v55 = vld [vmem:[%s4901_s1 + $0x188] sm:$0xff]   ;;  %v3737_v11 = vld [vmem:[%s4901_s1 + $0x118] sm:$0xff]  }
  0x13   :  { %v2861_v46 = vcombine.high %v34_v44, %v42_v45  ;;  %v2860_v51 = vcombine.low %v34_v44, %v42_v45  ;;  %v50_v56 = vld [vmem:[%s4902_s0 + $0x100] sm:$0xff]  ;;  %v51_v58 = vld [vmem:[%s4902_s0 + $0x108] sm:$0xff]  ;;  %v3738_v12 = vld [vmem:[%s4901_s1 + $0x1d8] sm:$0xff]  }
  0x14   :  { %3189 = vmatpush3.bf16.msra.mxu0 %v3710_v18  ;;  %v58_v57 = vld [vmem:[%s4902_s0 + $0x140] sm:$0xff]  ;;  %v59_v59 = vld [vmem:[%s4902_s0 + $0x148] sm:$0xff]  ;;  %v3739_v13 = vld [vmem:[%s4901_s1 + $0x198] sm:$0xff]  }
  0x15   :  { %3253 = vmatpush3.bf16.msra.mxu1 %v3711_v19  ;;  %3190 = vmatprep.subr.bf16.mxu0 %v3712_v20  ;;  %v2877_v60 = vcombine.high %v50_v56, %v58_v57  ;;  %v2879_v61 = vcombine.high %v51_v58, %v59_v59  ;;  %v2876_v2 = vcombine.low %v50_v56, %v58_v57  ;;  %v66_v3 = vld [vmem:[%s4902_s0 + $0x180] sm:$0xff]  ;;  %v67_v5 = vld [vmem:[%s4902_s0 + $0x188] sm:$0xff]  ;;  %v3749_v39 = vld [vmem:[%s4901_s1 + $0x130] sm:$0xff]  }
  0x16   :  { %3254 = vmatprep.subr.bf16.mxu1 %v3713_v21  ;;  %v74_v4 = vld [vmem:[%s4902_s0 + $0x1c0] sm:$0xff]  ;;  %v2878_v6 = vcombine.low %v51_v58, %v59_v59  ;;  %v75_v8 = vld [vmem:[%s4902_s0 + $0x1c8] sm:$0xff]  ;;  %v3753_v48 = vld [vmem:[%s4901_s1 + $0x138] sm:$0xff]  }
  0x17   :  { %v2893_v7 = vcombine.high %v66_v3, %v74_v4  ;;  %v2895_v9 = vcombine.high %v67_v5, %v75_v8  ;;  %v82_v14 = vld [vmem:[%s4902_s0 + $0x200] sm:$0xff]  ;;  %v83_v16 = vld [vmem:[%s4902_s0 + $0x208] sm:$0xff]  ;;  %v2892_v19 = vcombine.low %v66_v3, %v74_v4  ;;  %v2894_v21 = vcombine.low %v67_v5, %v75_v8  ;;  %v29_v3 = vld [vmem:[%s4902_s0 + $0x58] sm:$0xff] }
  0x18   :  { %3191 = vmatpush3.bf16.msra.mxu0 %v3714_v22  ;;  %v90_v15 = vld [vmem:[%s4902_s0 + $0x240] sm:$0xff]  ;;  %v91_v17 = vld [vmem:[%s4902_s0 + $0x248] sm:$0xff]  ;;  %v36_v8 = vld [vmem:[%s4902_s0 + $0x90] sm:$0xff] }
  0x19   :  { %3255 = vmatpush3.bf16.msra.mxu1 %v3715_v23  ;;  %3192 = vmatprep.subr.bf16.mxu0 %v3716_v24  ;;  %v3740_v18 = vld [vmem:[%s4901_s1 + $0x160] sm:$0xff]   ;;  %v2909_v22 = vcombine.high %v82_v14, %v90_v15  ;;  %v2911_v24 = vcombine.high %v83_v16, %v91_v17  ;;  %v3746_v32 = vld [vmem:[%s4901_s1 + $0x1e8] sm:$0xff]   ;;  %v2908_v34 = vcombine.low %v82_v14, %v90_v15 }
  0x1a   :  { %3256 = vmatprep.subr.bf16.mxu1 %v3717_v25  ;;  %v3741_v20 = vld [vmem:[%s4901_s1 + $0x120] sm:$0xff]   ;;  %v3747_v33 = vld [vmem:[%s4901_s1 + $0x1a8] sm:$0xff]  }
  0x1b   :  { %v3742_v23 = vld [vmem:[%s4901_s1 + $0x1e0] sm:$0xff]   ;;  %v115_v44 = vld [vmem:[%s4902_s0 + $0x308] sm:$0xff] }
  0x1c   :  { %3193 = vmatpush3.bf16.msra.mxu0 %v3718_v26  ;;  %v3743_v25 = vld [vmem:[%s4901_s1 + $0x1a0] sm:$0xff]   ;;  %v123_v45 = vld [vmem:[%s4902_s0 + $0x348] sm:$0xff] }
  0x1d   :  { %3257 = vmatpush3.bf16.msra.mxu1 %v3719_v27  ;;  %3194 = vmatprep.subr.bf16.mxu0 %v3720_v28  ;;  %v98_v26 = vld [vmem:[%s4902_s0 + $0x280] sm:$0xff]  ;;  %v3744_v28 = vld [vmem:[%s4901_s1 + $0x168] sm:$0xff]  }
  0x1e   :  { %3258 = vmatprep.subr.bf16.mxu1 %v3721_v29  ;;  %v106_v27 = vld [vmem:[%s4902_s0 + $0x2c0] sm:$0xff]  ;;  %v99_v29 = vld [vmem:[%s4902_s0 + $0x288] sm:$0xff] }
  0x1f   :  { %v2925_v36 = vcombine.high %v98_v26, %v106_v27  ;;  %v2924_v47 = vcombine.low %v98_v26, %v106_v27  ;;  %v3756_v56 = vld [vmem:[%s4901_s1 + $0x240] sm:$0xff]   ;;  %v131_v57 = vld [vmem:[%s4902_s0 + $0x388] sm:$0xff]  ;;  %v3764_v26 = vld [vmem:[%s4901_s1 + $0x250] sm:$0xff]  }
  0x20   :  { %3195 = vmatpush3.bf16.msra.mxu0 %v3722_v30  ;;  %v107_v30 = vld [vmem:[%s4902_s0 + $0x2c8] sm:$0xff]  ;;  %v3758_v58 = vld [vmem:[%s4901_s1 + $0x2c0] sm:$0xff]   ;;  %v3766_v27 = vld [vmem:[%s4901_s1 + $0x2d0] sm:$0xff]  }
  0x21   :  { %3259 = vmatpush3.bf16.msra.mxu1 %v3723_v31  ;;  %3308 = vmatprep.subr.bf16.mxu0 %v3724_v40  ;;  %v3745_v31 = vld [vmem:[%s4901_s1 + $0x128] sm:$0xff]   ;;  %v2927_v37 = vcombine.high %v99_v29, %v107_v30  ;;  %v3750_v40 = vld [vmem:[%s4901_s1 + $0x1f0] sm:$0xff]   ;;  %v3759_v15 = vld [vmem:[%s4901_s1 + $0x280] sm:$0xff]  }
  0x22   :  { %3372 = vmatprep.subr.bf16.mxu1 %v3726_v42  ;;  %v122_v42 = vld [vmem:[%s4902_s0 + $0x340] sm:$0xff]  ;;  %v139_v59 = vld [vmem:[%s4902_s0 + $0x3c8] sm:$0xff] }
  0x23   :  { %1843 = vmatmul.mubr.bf16.vlgmr.msra.gmra.mrb[0].mxu0 %v2844_v35  ;;  %v2910_v35 = vcombine.low %v83_v16, %v91_v17  ;;  %v2958_v5 = vcombine.low %v131_v57, %v139_v59  ;;  %v3760_v17 = vld [vmem:[%s4901_s1 + $0x248] sm:$0xff]  }
  0x24   :  { %1940 = vmatmul.mubr.bf16.vlgmr.msra.gmra.mrb[0].mxu1 %v2846_v38  ;;  %3309 = vmatpush3.bf16.msra.mxu0 %v3725_v41  ;;  %v3748_v38 = vld [vmem:[%s4901_s1 + $0x170] sm:$0xff]   ;;  %v114_v41 = vld [vmem:[%s4902_s0 + $0x300] sm:$0xff] }
  0x25   :  { %3373 = vmatpush3.bf16.msra.mxu1 %v3727_v43  ;;  %1850 = vmatprep.mubr.bf16.mxu0 %v2861_v46  ;;  %v3751_v43 = vld [vmem:[%s4901_s1 + $0x1b0] sm:$0xff]   ;;  %v3752_v46 = vld [vmem:[%s4901_s1 + $0x178] sm:$0xff]  }
  0x26   :  { %1947 = vmatprep.mubr.bf16.mxu1 %v2863_v49  ;;  %3310 = vmatprep.subr.bf16.mxu0 %v3728_v50  ;;  %v2926_v49 = vcombine.low %v99_v29, %v107_v30  ;;  %v2941_v50 = vcombine.high %v114_v41, %v122_v42 }
  0x27   :  { %3374 = vmatprep.subr.bf16.mxu1 %v3730_v54  ;;  %v130_v54 = vld [vmem:[%s4902_s0 + $0x380] sm:$0xff] }
  0x28   :  { %3311 = vmatpush3.bf16.msra.mxu0 %v3729_v52  ;;  %v2943_v52 = vcombine.high %v115_v44, %v123_v45 }
  0x29   :  { %3375 = vmatpush3.bf16.msra.mxu1 %v3731_v55  ;;  %3312 = vmatprep.subr.bf16.mxu0 %v3732_v62  ;;  %v138_v55 = vld [vmem:[%s4902_s0 + $0x3c0] sm:$0xff] }
  0x2a   :  { %3376 = vmatprep.subr.bf16.mxu1 %v3734_v0  ;;  %v2957_v62 = vcombine.high %v130_v54, %v138_v55  ;;  %v20_v0 = vld [vmem:[%s4902_s0 + $0x10] sm:$0xff]  ;;  %v2956_v4 = vcombine.low %v130_v54, %v138_v55  ;;  %v85_v54 = vld [vmem:[%s4902_s0 + $0x218] sm:$0xff] }
  0x2b   :  { %1851 = vmatmul.mubr.bf16.gmra.mrb[4].mxu0 %v2860_v51  ;;  %v3754_v51 = vld [vmem:[%s4901_s1 + $0x1f8] sm:$0xff]  }
  0x2c   :  { %1948 = vmatmul.mubr.bf16.gmra.mrb[4].mxu1 %v2862_v53  ;;  %1858 = vmatprep.mubr.bf16.mxu0 %v2877_v60  ;;  %v3755_v53 = vld [vmem:[%s4901_s1 + $0x1b8] sm:$0xff]   ;;  %v2940_v60 = vcombine.low %v114_v41, %v122_v42  ;;  %v3772_v42 = vld [vmem:[%s4901_s1 + $0x260] sm:$0xff]  }
  0x2d   :  { %1955 = vmatprep.mubr.bf16.mxu1 %v2879_v61  ;;  %3313 = vmatpush3.bf16.msra.mxu0 %v3733_v63  ;;  %v2942_v61 = vcombine.low %v115_v44, %v123_v45  ;;  %v2959_v63 = vcombine.high %v131_v57, %v139_v59  ;;  %v3771_v41 = vld [vmem:[%s4901_s1 + $0x298] sm:$0xff]   ;;  %v3774_v44 = vld [vmem:[%s4901_s1 + $0x2e0] sm:$0xff]   ;;  %v3779_v57 = vld [vmem:[%s4901_s1 + $0x2a8] sm:$0xff]  }
  0x2e   :  { %3377 = vmatpush3.bf16.msra.mxu1 %v3735_v1  ;;  %3314 = vmatprep.subr.bf16.mxu0 %v3736_v10  ;;  %v28_v1 = vld [vmem:[%s4902_s0 + $0x50] sm:$0xff]  ;;  %v93_v55 = vld [vmem:[%s4902_s0 + $0x258] sm:$0xff] }
  0x2f   :  { %3378 = vmatprep.subr.bf16.mxu1 %v3738_v12  ;;  %v2848_v10 = vcombine.low %v20_v0, %v28_v1  ;;  %v37_v12 = vld [vmem:[%s4902_s0 + $0x98] sm:$0xff] }
  0x31   :  { %3315 = vmatpush3.bf16.msra.mxu0 %v3737_v11  ;;  %v3757_v11 = vld [vmem:[%s4901_s1 + $0x200] sm:$0xff]  }
  0x32   :  { %3379 = vmatpush3.bf16.msra.mxu1 %v3739_v13  ;;  %3316 = vmatprep.subr.bf16.mxu0 %v3740_v18  ;;  %v45_v13 = vld [vmem:[%s4902_s0 + $0xd8] sm:$0xff] }
  0x33   :  { %1859 = vmatmul.mubr.bf16.gmra.mrb[8].mxu0 %v2876_v2  ;;  %3380 = vmatprep.subr.bf16.mxu1 %v3742_v23  ;;  %v21_v2 = vld [vmem:[%s4902_s0 + $0x18] sm:$0xff]  ;;  %v2867_v18 = vcombine.high %v37_v12, %v45_v13  ;;  %v60_v23 = vld [vmem:[%s4902_s0 + $0x150] sm:$0xff]  ;;  %v2866_v29 = vcombine.low %v37_v12, %v45_v13  ;;  %v3790_v12 = vld [vmem:[%s4901_s1 + $0x3c0] sm:$0xff]   ;;  %v2914_v13 = vcombine.low %v85_v54, %v93_v55 }
  0x34   :  { %1956 = vmatmul.mubr.bf16.gmra.mrb[8].mxu1 %v2878_v6  ;;  %1866 = vmatprep.mubr.bf16.mxu0 %v2893_v7  ;;  %v2849_v6 = vcombine.high %v20_v0, %v28_v1  ;;  %v2851_v7 = vcombine.high %v21_v2, %v29_v3  ;;  %v2850_v14 = vcombine.low %v21_v2, %v29_v3  ;;  %v3781_v0 = vld [vmem:[%s4901_s1 + $0x230] sm:$0xff]   ;;  %v3784_v2 = vld [vmem:[%s4901_s1 + $0x278] sm:$0xff]  }
  0x35   :  { %1963 = vmatprep.mubr.bf16.mxu1 %v2895_v9  ;;  %3317 = vmatpush3.bf16.msra.mxu0 %v3741_v20  ;;  %v44_v9 = vld [vmem:[%s4902_s0 + $0xd0] sm:$0xff]  ;;  %v3762_v20 = vld [vmem:[%s4901_s1 + $0x2c8] sm:$0xff]  }
  0x36   :  { %3381 = vmatpush3.bf16.msra.mxu1 %v3743_v25  ;;  %3318 = vmatprep.subr.bf16.mxu0 %v3744_v28  ;;  %v2865_v16 = vcombine.high %v36_v8, %v44_v9  ;;  %v61_v25 = vld [vmem:[%s4902_s0 + $0x158] sm:$0xff]  ;;  %v2864_v28 = vcombine.low %v36_v8, %v44_v9  ;;  %v3783_v1 = vld [vmem:[%s4901_s1 + $0x2b0] sm:$0xff]  }
  0x37   :  { %3382 = vmatprep.subr.bf16.mxu1 %v3746_v32  ;;  %v3765_v32 = vld [vmem:[%s4901_s1 + $0x210] sm:$0xff]   ;;  %v3785_v8 = vld [vmem:[%s4901_s1 + $0x238] sm:$0xff]  }
  0x38   :  { %v100_v3 = vld [vmem:[%s4902_s0 + $0x290] sm:$0xff]  ;;  %v3787_v9 = vld [vmem:[%s4901_s1 + $0x2b8] sm:$0xff]  }
  0x39   :  { %3319 = vmatpush3.bf16.msra.mxu0 %v3745_v31 }
  0x3a   :  { %3383 = vmatpush3.bf16.msra.mxu1 %v3747_v33  ;;  %3320 = vmatprep.subr.bf16.mxu0 %v3748_v38  ;;  %v3767_v33 = vld [vmem:[%s4901_s1 + $0x290] sm:$0xff]   ;;  %v69_v38 = vld [vmem:[%s4902_s0 + $0x198] sm:$0xff] }
  0x3b   :  { %1867 = vmatmul.mubr.bf16.gmra.mrb[12].mxu0 %v2892_v19  ;;  %3384 = vmatprep.subr.bf16.mxu1 %v3750_v40  ;;  %v3761_v19 = vld [vmem:[%s4901_s1 + $0x208] sm:$0xff]   ;;  %v3769_v40 = vld [vmem:[%s4901_s1 + $0x218] sm:$0xff]  }
  0x3c   :  { %1964 = vmatmul.mubr.bf16.gmra.mrb[12].mxu1 %v2894_v21  ;;  %1874 = vmatprep.mubr.bf16.mxu0 %v2909_v22  ;;  %v3763_v21 = vld [vmem:[%s4901_s1 + $0x288] sm:$0xff]   ;;  %v52_v22 = vld [vmem:[%s4902_s0 + $0x110] sm:$0xff] }
  0x3d   :  { %1971 = vmatprep.mubr.bf16.mxu1 %v2911_v24  ;;  %3321 = vmatpush3.bf16.msra.mxu0 %v3749_v39  ;;  %v53_v24 = vld [vmem:[%s4902_s0 + $0x118] sm:$0xff]  ;;  %v2881_v30 = vcombine.high %v52_v22, %v60_v23 }
  0x3e   :  { %3385 = vmatpush3.bf16.msra.mxu1 %v3751_v43  ;;  %3322 = vmatprep.subr.bf16.mxu0 %v3752_v46  ;;  %v2883_v31 = vcombine.high %v53_v24, %v61_v25  ;;  %v77_v39 = vld [vmem:[%s4902_s0 + $0x1d8] sm:$0xff]  ;;  %v2880_v43 = vcombine.low %v52_v22, %v60_v23  ;;  %v2882_v45 = vcombine.low %v53_v24, %v61_v25  ;;  %v132_v24 = vld [vmem:[%s4902_s0 + $0x390] sm:$0xff] }
  0x3f   :  { %3386 = vmatprep.subr.bf16.mxu1 %v3754_v51  ;;  %v84_v51 = vld [vmem:[%s4902_s0 + $0x210] sm:$0xff] }
  0x40   :  { %v140_v25 = vld [vmem:[%s4902_s0 + $0x3d0] sm:$0xff] }
  0x41   :  { %3323 = vmatpush3.bf16.msra.mxu0 %v3753_v48  ;;  %v2899_v48 = vcombine.high %v69_v38, %v77_v39 }
  0x42   :  { %3387 = vmatpush3.bf16.msra.mxu1 %v3755_v53  ;;  %3436 = vmatprep.subr.bf16.mxu0 %v3756_v56  ;;  %v92_v53 = vld [vmem:[%s4902_s0 + $0x250] sm:$0xff]  ;;  %v3777_v56 = vld [vmem:[%s4901_s1 + $0x228] sm:$0xff]  }
  0x43   :  { %1875 = vmatmul.mubr.bf16.gmra.mrb[16].mxu0 %v2908_v34  ;;  %3500 = vmatprep.subr.bf16.mxu1 %v3758_v58  ;;  %v3768_v34 = vld [vmem:[%s4901_s1 + $0x258] sm:$0xff]   ;;  %v3780_v58 = vld [vmem:[%s4901_s1 + $0x270] sm:$0xff]  }
  0x44   :  { %1972 = vmatmul.mubr.bf16.gmra.mrb[16].mxu1 %v2910_v35  ;;  %1882 = vmatprep.mubr.bf16.mxu0 %v2925_v36  ;;  %v68_v35 = vld [vmem:[%s4902_s0 + $0x190] sm:$0xff] }
  0x45   :  { %1979 = vmatprep.mubr.bf16.mxu1 %v2927_v37  ;;  %v76_v36 = vld [vmem:[%s4902_s0 + $0x1d0] sm:$0xff]  ;;  %v3770_v37 = vld [vmem:[%s4901_s1 + $0x2d8] sm:$0xff]  }
  0x46   :  { %v2897_v46 = vcombine.high %v68_v35, %v76_v36  ;;  %v2896_v59 = vcombine.low %v68_v35, %v76_v36  ;;  %v31_v35 = vld [vmem:[%s4902_s0 + $0x68] sm:$0xff]  ;;  %v2960_v36 = vcombine.low %v132_v24, %v140_v25 }
  0x4b   :  { %1883 = vmatmul.mubr.bf16.gmra.mrb[20].mxu0 %v2924_v47  ;;  %v3773_v47 = vld [vmem:[%s4901_s1 + $0x220] sm:$0xff]  }
  0x4c   :  { %1980 = vmatmul.mubr.bf16.gmra.mrb[20].mxu1 %v2926_v49  ;;  %1890 = vmatprep.mubr.bf16.mxu0 %v2941_v50  ;;  %v3775_v49 = vld [vmem:[%s4901_s1 + $0x2a0] sm:$0xff]   ;;  %v3776_v50 = vld [vmem:[%s4901_s1 + $0x268] sm:$0xff]  }
  0x4d   :  { %1987 = vmatprep.mubr.bf16.mxu1 %v2943_v52  ;;  %v3778_v52 = vld [vmem:[%s4901_s1 + $0x2e8] sm:$0xff]  }
  0x53   :  { %1891 = vmatmul.mubr.bf16.gmra.mrb[24].mxu0 %v2940_v60  ;;  %v3782_v60 = vld [vmem:[%s4901_s1 + $0x2f0] sm:$0xff]  }
  0x54   :  { %1988 = vmatmul.mubr.bf16.gmra.mrb[24].mxu1 %v2942_v61  ;;  %1898 = vmatprep.mubr.bf16.mxu0 %v2957_v62  ;;  %v2898_v61 = vcombine.low %v69_v38, %v77_v39  ;;  %v2913_v62 = vcombine.high %v84_v51, %v92_v53 }
  0x55   :  { %1995 = vmatprep.mubr.bf16.mxu1 %v2959_v63  ;;  %v2915_v63 = vcombine.high %v85_v54, %v93_v55  ;;  %v54_v54 = vld [vmem:[%s4902_s0 + $0x120] sm:$0xff] }
  0x56   :  { %v62_v55 = vld [vmem:[%s4902_s0 + $0x160] sm:$0xff] }
  0x5b   :  { %1899 = vmatmul.mubr.bf16.gmra.mrb[28].mxu0 %v2956_v4  ;;  %v108_v4 = vld [vmem:[%s4902_s0 + $0x2d0] sm:$0xff] }
  0x5c   :  { %1996 = vmatmul.mubr.bf16.gmra.mrb[28].mxu1 %v2958_v5  ;;  %2036 = vmatprep.mubr.bf16.mxu0 %v2849_v6  ;;  %v3786_v5 = vld [vmem:[%s4901_s1 + $0x2f8] sm:$0xff]  }
  0x5d   :  { %2133 = vmatprep.mubr.bf16.mxu1 %v2851_v7  ;;  %v101_v6 = vld [vmem:[%s4902_s0 + $0x298] sm:$0xff] }
  0x5e   :  { %v109_v7 = vld [vmem:[%s4902_s0 + $0x2d8] sm:$0xff] }
  0x63   :  { %2037 = vmatmul.mubr.bf16.vlgmr.msra.gmra.mrb[32].mxu0 %v2848_v10  ;;  %v3788_v10 = vld [vmem:[%s4901_s1 + $0x340] sm:$0xff]  }
  0x64   :  { %2134 = vmatmul.mubr.bf16.vlgmr.msra.gmra.mrb[32].mxu1 %v2850_v14  ;;  %3437 = vmatpush3.bf16.msra.mxu0 %v3757_v11  ;;  %v2912_v11 = vcombine.low %v84_v51, %v92_v53  ;;  %v2929_v14 = vcombine.high %v100_v3, %v108_v4  ;;  %v3794_v51 = vld [vmem:[%s4901_s1 + $0x3c8] sm:$0xff]  }
  0x65   :  { %3501 = vmatpush3.bf16.msra.mxu1 %v3759_v15  ;;  %2044 = vmatprep.mubr.bf16.mxu0 %v2865_v16  ;;  %v2931_v15 = vcombine.high %v101_v6, %v109_v7  ;;  %v116_v16 = vld [vmem:[%s4902_s0 + $0x310] sm:$0xff]  ;;  %v3795_v53 = vld [vmem:[%s4901_s1 + $0x388] sm:$0xff]  }
  0x66   :  { %2141 = vmatprep.mubr.bf16.mxu1 %v2867_v18  ;;  %3438 = vmatprep.subr.bf16.mxu0 %v3760_v17  ;;  %v124_v17 = vld [vmem:[%s4902_s0 + $0x350] sm:$0xff]  ;;  %v117_v18 = vld [vmem:[%s4902_s0 + $0x318] sm:$0xff] }
  0x67   :  { %3502 = vmatprep.subr.bf16.mxu1 %v3762_v20  ;;  %v2928_v20 = vcombine.low %v100_v3, %v108_v4  ;;  %v2945_v22 = vcombine.high %v116_v16, %v124_v17  ;;  %v3802_v3 = vld [vmem:[%s4901_s1 + $0x3d8] sm:$0xff]   ;;  %v70_v4 = vld [vmem:[%s4902_s0 + $0x1a0] sm:$0xff] }
  0x68   :  { %3439 = vmatpush3.bf16.msra.mxu0 %v3761_v19  ;;  %v125_v19 = vld [vmem:[%s4902_s0 + $0x358] sm:$0xff] }
  0x69   :  { %3503 = vmatpush3.bf16.msra.mxu1 %v3763_v21  ;;  %3440 = vmatprep.subr.bf16.mxu0 %v3764_v26  ;;  %v2930_v21 = vcombine.low %v101_v6, %v109_v7  ;;  %v2947_v23 = vcombine.high %v117_v18, %v125_v19  ;;  %v133_v26 = vld [vmem:[%s4902_s0 + $0x398] sm:$0xff]  ;;  %v71_v6 = vld [vmem:[%s4902_s0 + $0x1a8] sm:$0xff] }
  0x6a   :  { %3504 = vmatprep.subr.bf16.mxu1 %v3766_v27  ;;  %v141_v27 = vld [vmem:[%s4902_s0 + $0x3d8] sm:$0xff] }
  0x6b   :  { %2045 = vmatmul.mubr.bf16.gmra.mrb[36].mxu0 %v2864_v28  ;;  %v2944_v28 = vcombine.low %v116_v16, %v124_v17  ;;  %v3801_v7 = vld [vmem:[%s4901_s1 + $0x318] sm:$0xff]   ;;  %v3805_v16 = vld [vmem:[%s4901_s1 + $0x320] sm:$0xff]  }
  0x6c   :  { %2142 = vmatmul.mubr.bf16.gmra.mrb[36].mxu1 %v2866_v29  ;;  %2052 = vmatprep.mubr.bf16.mxu0 %v2881_v30  ;;  %v2946_v29 = vcombine.low %v117_v18, %v125_v19  ;;  %v2961_v30 = vcombine.high %v132_v24, %v140_v25  ;;  %v3807_v17 = vld [vmem:[%s4901_s1 + $0x3a0] sm:$0xff]   ;;  %v3808_v18 = vld [vmem:[%s4901_s1 + $0x368] sm:$0xff]  }
  0x6d   :  { %2149 = vmatprep.mubr.bf16.mxu1 %v2883_v31  ;;  %3441 = vmatpush3.bf16.msra.mxu0 %v3765_v32  ;;  %v2963_v31 = vcombine.high %v133_v26, %v141_v27  ;;  %v22_v32 = vld [vmem:[%s4902_s0 + $0x20] sm:$0xff]  ;;  %v3810_v19 = vld [vmem:[%s4901_s1 + $0x3e8] sm:$0xff]  }
  0x6e   :  { %3505 = vmatpush3.bf16.msra.mxu1 %v3767_v33  ;;  %3442 = vmatprep.subr.bf16.mxu0 %v3768_v34  ;;  %v30_v33 = vld [vmem:[%s4902_s0 + $0x60] sm:$0xff]  ;;  %v23_v34 = vld [vmem:[%s4902_s0 + $0x28] sm:$0xff] }
  0x6f   :  { %3506 = vmatprep.subr.bf16.mxu1 %v3770_v37  ;;  %v2962_v37 = vcombine.low %v133_v26, %v141_v27  ;;  %v2853_v38 = vcombine.high %v22_v32, %v30_v33  ;;  %v2855_v39 = vcombine.high %v23_v34, %v31_v35  ;;  %v95_v24 = vld [vmem:[%s4902_s0 + $0x268] sm:$0xff]  ;;  %v3812_v26 = vld [vmem:[%s4901_s1 + $0x370] sm:$0xff]  }
  0x70   :  { %v3811_v25 = vld [vmem:[%s4901_s1 + $0x3a8] sm:$0xff]  }
  0x71   :  { %3443 = vmatpush3.bf16.msra.mxu0 %v3769_v40  ;;  %v38_v40 = vld [vmem:[%s4902_s0 + $0xa0] sm:$0xff] }
  0x72   :  { %3507 = vmatpush3.bf16.msra.mxu1 %v3771_v41  ;;  %3444 = vmatprep.subr.bf16.mxu0 %v3772_v42  ;;  %v46_v41 = vld [vmem:[%s4902_s0 + $0xe0] sm:$0xff]  ;;  %v2852_v42 = vcombine.low %v22_v32, %v30_v33  ;;  %v3813_v32 = vld [vmem:[%s4901_s1 + $0x330] sm:$0xff]  }
  0x73   :  { %2053 = vmatmul.mubr.bf16.gmra.mrb[40].mxu0 %v2880_v43  ;;  %3508 = vmatprep.subr.bf16.mxu1 %v3774_v44  ;;  %v39_v43 = vld [vmem:[%s4902_s0 + $0xa8] sm:$0xff]  ;;  %v3815_v33 = vld [vmem:[%s4901_s1 + $0x3b0] sm:$0xff]  }
  0x74   :  { %2150 = vmatmul.mubr.bf16.gmra.mrb[40].mxu1 %v2882_v45  ;;  %2060 = vmatprep.mubr.bf16.mxu0 %v2897_v46  ;;  %v47_v44 = vld [vmem:[%s4902_s0 + $0xe8] sm:$0xff]  ;;  %v2854_v45 = vcombine.low %v23_v34, %v31_v35  ;;  %v3789_v46 = vld [vmem:[%s4901_s1 + $0x300] sm:$0xff]   ;;  %v3816_v34 = vld [vmem:[%s4901_s1 + $0x378] sm:$0xff]  }
  0x75   :  { %2157 = vmatprep.mubr.bf16.mxu1 %v2899_v48  ;;  %3445 = vmatpush3.bf16.msra.mxu0 %v3773_v47  ;;  %v3791_v47 = vld [vmem:[%s4901_s1 + $0x380] sm:$0xff]   ;;  %v2869_v48 = vcombine.high %v38_v40, %v46_v41  ;;  %v3818_v35 = vld [vmem:[%s4901_s1 + $0x3f8] sm:$0xff]  }
  0x76   :  { %3509 = vmatpush3.bf16.msra.mxu1 %v3775_v49  ;;  %3446 = vmatprep.subr.bf16.mxu0 %v3776_v50  ;;  %v2871_v49 = vcombine.high %v39_v43, %v47_v44  ;;  %v3792_v50 = vld [vmem:[%s4901_s1 + $0x348] sm:$0xff]  }
  0x77   :  { %3510 = vmatprep.subr.bf16.mxu1 %v3778_v52  ;;  %v3793_v52 = vld [vmem:[%s4901_s1 + $0x308] sm:$0xff]  }
  0x79   :  { %3447 = vmatpush3.bf16.msra.mxu0 %v3777_v56  ;;  %v3796_v56 = vld [vmem:[%s4901_s1 + $0x350] sm:$0xff]  }
  0x7a   :  { %3511 = vmatpush3.bf16.msra.mxu1 %v3779_v57  ;;  %3448 = vmatprep.subr.bf16.mxu0 %v3780_v58  ;;  %v55_v57 = vld [vmem:[%s4902_s0 + $0x128] sm:$0xff] }
  0x7b   :  { %2061 = vmatmul.mubr.bf16.gmra.mrb[44].mxu0 %v2896_v59  ;;  %3512 = vmatprep.subr.bf16.mxu1 %v3782_v60  ;;  %v63_v58 = vld [vmem:[%s4902_s0 + $0x168] sm:$0xff]  ;;  %v3798_v59 = vld [vmem:[%s4901_s1 + $0x3d0] sm:$0xff]   ;;  %v2868_v60 = vcombine.low %v38_v40, %v46_v41  ;;  %v3819_v41 = vld [vmem:[%s4901_s1 + $0x3b8] sm:$0xff]  }
  0x7c   :  { %2158 = vmatmul.mubr.bf16.gmra.mrb[44].mxu1 %v2898_v61  ;;  %2068 = vmatprep.mubr.bf16.mxu0 %v2913_v62  ;;  %v2870_v61 = vcombine.low %v39_v43, %v47_v44  ;;  %v2885_v62 = vcombine.high %v54_v54, %v62_v55  ;;  %v111_v40 = vld [vmem:[%s4902_s0 + $0x2e8] sm:$0xff] }
  0x7d   :  { %2165 = vmatprep.mubr.bf16.mxu1 %v2915_v63  ;;  %3449 = vmatpush3.bf16.msra.mxu0 %v3781_v0  ;;  %v2887_v63 = vcombine.high %v55_v57, %v63_v58  ;;  %v3797_v0 = vld [vmem:[%s4901_s1 + $0x310] sm:$0xff]  }
  0x7e   :  { %3513 = vmatpush3.bf16.msra.mxu1 %v3783_v1  ;;  %3450 = vmatprep.subr.bf16.mxu0 %v3784_v2  ;;  %v3799_v1 = vld [vmem:[%s4901_s1 + $0x390] sm:$0xff]   ;;  %v3800_v2 = vld [vmem:[%s4901_s1 + $0x358] sm:$0xff]  }
  0x7f   :  { %3514 = vmatprep.subr.bf16.mxu1 %v3786_v5  ;;  %v78_v5 = vld [vmem:[%s4902_s0 + $0x1e0] sm:$0xff] }
  0x80   :  { %v2900_v27 = vcombine.low %v70_v4, %v78_v5 }
  0x81   :  { %3451 = vmatpush3.bf16.msra.mxu0 %v3785_v8  ;;  %v79_v8 = vld [vmem:[%s4902_s0 + $0x1e8] sm:$0xff] }
  0x82   :  { %3515 = vmatpush3.bf16.msra.mxu1 %v3787_v9  ;;  %3564 = vmatprep.subr.bf16.mxu0 %v3788_v10  ;;  %v3803_v9 = vld [vmem:[%s4901_s1 + $0x398] sm:$0xff]   ;;  %v3804_v10 = vld [vmem:[%s4901_s1 + $0x360] sm:$0xff]  }
  0x83   :  { %2069 = vmatmul.mubr.bf16.gmra.mrb[48].mxu0 %v2912_v11  ;;  %3628 = vmatprep.subr.bf16.mxu1 %v3790_v12  ;;  %v2884_v11 = vcombine.low %v54_v54, %v62_v55  ;;  %v3806_v12 = vld [vmem:[%s4901_s1 + $0x3e0] sm:$0xff]  }
  0x84   :  { %2166 = vmatmul.mubr.bf16.gmra.mrb[48].mxu1 %v2914_v13  ;;  %2076 = vmatprep.mubr.bf16.mxu0 %v2929_v14  ;;  %v2886_v13 = vcombine.low %v55_v57, %v63_v58  ;;  %v2901_v14 = vcombine.high %v70_v4, %v78_v5  ;;  %v134_v54 = vld [vmem:[%s4902_s0 + $0x3a0] sm:$0xff]  ;;  %v143_v57 = vld [vmem:[%s4902_s0 + $0x3e8] sm:$0xff] }
  0x85   :  { %2173 = vmatprep.mubr.bf16.mxu1 %v2931_v15  ;;  %v2903_v15 = vcombine.high %v71_v6, %v79_v8  ;;  %v142_v55 = vld [vmem:[%s4902_s0 + $0x3e0] sm:$0xff] }
  0x8b   :  { %2077 = vmatmul.mubr.bf16.gmra.mrb[52].mxu0 %v2928_v20  ;;  %v86_v20 = vld [vmem:[%s4902_s0 + $0x220] sm:$0xff] }
  0x8c   :  { %2174 = vmatmul.mubr.bf16.gmra.mrb[52].mxu1 %v2930_v21  ;;  %2084 = vmatprep.mubr.bf16.mxu0 %v2945_v22  ;;  %v94_v21 = vld [vmem:[%s4902_s0 + $0x260] sm:$0xff]  ;;  %v87_v22 = vld [vmem:[%s4902_s0 + $0x228] sm:$0xff] }
  0x8d   :  { %2181 = vmatprep.mubr.bf16.mxu1 %v2947_v23  ;;  %v3809_v23 = vld [vmem:[%s4901_s1 + $0x328] sm:$0xff]   ;;  %v2918_v43 = vcombine.low %v87_v22, %v95_v24 }
  0x93   :  { %2085 = vmatmul.mubr.bf16.gmra.mrb[56].mxu0 %v2944_v28  ;;  %v3814_v28 = vld [vmem:[%s4901_s1 + $0x3f0] sm:$0xff]  }
  0x94   :  { %2182 = vmatmul.mubr.bf16.gmra.mrb[56].mxu1 %v2946_v29  ;;  %2092 = vmatprep.mubr.bf16.mxu0 %v2961_v30  ;;  %v2902_v29 = vcombine.low %v71_v6, %v79_v8  ;;  %v2917_v30 = vcombine.high %v86_v20, %v94_v21  ;;  %v40_v6 = vld [vmem:[%s4902_s0 + $0xb0] sm:$0xff]  ;;  %v41_v8 = vld [vmem:[%s4902_s0 + $0xb8] sm:$0xff] }
  0x95   :  { %2189 = vmatprep.mubr.bf16.mxu1 %v2963_v31  ;;  %v2919_v31 = vcombine.high %v87_v22, %v95_v24  ;;  %v72_v22 = vld [vmem:[%s4902_s0 + $0x1b0] sm:$0xff]  ;;  %v73_v24 = vld [vmem:[%s4902_s0 + $0x1b8] sm:$0xff] }
  0x9b   :  { %2093 = vmatmul.mubr.bf16.gmra.mrb[60].mxu0 %v2960_v36  ;;  %v102_v36 = vld [vmem:[%s4902_s0 + $0x2a0] sm:$0xff] }
  0x9c   :  { %2190 = vmatmul.mubr.bf16.gmra.mrb[60].mxu1 %v2962_v37  ;;  %2230 = vmatprep.mubr.bf16.mxu0 %v2853_v38  ;;  %v110_v37 = vld [vmem:[%s4902_s0 + $0x2e0] sm:$0xff]  ;;  %v3817_v38 = vld [vmem:[%s4901_s1 + $0x338] sm:$0xff]  }
  0x9d   :  { %2327 = vmatprep.mubr.bf16.mxu1 %v2855_v39  ;;  %v103_v39 = vld [vmem:[%s4902_s0 + $0x2a8] sm:$0xff]  ;;  %v2933_v44 = vcombine.high %v102_v36, %v110_v37 }
  0xa3   :  { %2231 = vmatmul.mubr.bf16.vlgmr.msra.gmra.mrb[64].mxu0 %v2852_v42  ;;  %v2916_v42 = vcombine.low %v86_v20, %v94_v21 }
  0xa4   :  { %2328 = vmatmul.mubr.bf16.vlgmr.msra.gmra.mrb[64].mxu1 %v2854_v45  ;;  %3565 = vmatpush3.bf16.msra.mxu0 %v3789_v46  ;;  %v2935_v45 = vcombine.high %v103_v39, %v111_v40  ;;  %v118_v46 = vld [vmem:[%s4902_s0 + $0x320] sm:$0xff] }
  0xa5   :  { %3629 = vmatpush3.bf16.msra.mxu1 %v3791_v47  ;;  %2238 = vmatprep.mubr.bf16.mxu0 %v2869_v48  ;;  %v126_v47 = vld [vmem:[%s4902_s0 + $0x360] sm:$0xff]  ;;  %v119_v48 = vld [vmem:[%s4902_s0 + $0x328] sm:$0xff] }
  0xa6   :  { %2335 = vmatprep.mubr.bf16.mxu1 %v2871_v49  ;;  %3566 = vmatprep.subr.bf16.mxu0 %v3792_v50  ;;  %v127_v49 = vld [vmem:[%s4902_s0 + $0x368] sm:$0xff]  ;;  %v2932_v50 = vcombine.low %v102_v36, %v110_v37  ;;  %v2948_v58 = vcombine.low %v118_v46, %v126_v47 }
  0xa7   :  { %3630 = vmatprep.subr.bf16.mxu1 %v3794_v51  ;;  %v2934_v51 = vcombine.low %v103_v39, %v111_v40 }
  0xa8   :  { %3567 = vmatpush3.bf16.msra.mxu0 %v3793_v52  ;;  %v2949_v52 = vcombine.high %v118_v46, %v126_v47 }
  0xa9   :  { %3631 = vmatpush3.bf16.msra.mxu1 %v3795_v53  ;;  %3568 = vmatprep.subr.bf16.mxu0 %v3796_v56  ;;  %v2951_v53 = vcombine.high %v119_v48, %v127_v49  ;;  %v135_v56 = vld [vmem:[%s4902_s0 + $0x3a8] sm:$0xff] }
  0xaa   :  { %3632 = vmatprep.subr.bf16.mxu1 %v3798_v59  ;;  %v2950_v59 = vcombine.low %v119_v48, %v127_v49 }
  0xab   :  { %2239 = vmatmul.mubr.bf16.gmra.mrb[68].mxu0 %v2868_v60  ;;  %v2965_v60 = vcombine.high %v134_v54, %v142_v55 }
  0xac   :  { %2336 = vmatmul.mubr.bf16.gmra.mrb[68].mxu1 %v2870_v61  ;;  %2246 = vmatprep.mubr.bf16.mxu0 %v2885_v62  ;;  %v2967_v61 = vcombine.high %v135_v56, %v143_v57  ;;  %v24_v62 = vld [vmem:[%s4902_s0 + $0x30] sm:$0xff] }
  0xad   :  { %2343 = vmatprep.mubr.bf16.mxu1 %v2887_v63  ;;  %3569 = vmatpush3.bf16.msra.mxu0 %v3797_v0  ;;  %v32_v63 = vld [vmem:[%s4902_s0 + $0x70] sm:$0xff]  ;;  %v25_v0 = vld [vmem:[%s4902_s0 + $0x38] sm:$0xff] }
  0xae   :  { %3633 = vmatpush3.bf16.msra.mxu1 %v3799_v1  ;;  %3570 = vmatprep.subr.bf16.mxu0 %v3800_v2  ;;  %v33_v1 = vld [vmem:[%s4902_s0 + $0x78] sm:$0xff]  ;;  %v2964_v2 = vcombine.low %v134_v54, %v142_v55  ;;  %v2857_v4 = vcombine.high %v24_v62, %v32_v63 }
  0xaf   :  { %3634 = vmatprep.subr.bf16.mxu1 %v3802_v3  ;;  %v2966_v3 = vcombine.low %v135_v56, %v143_v57  ;;  %v2859_v5 = vcombine.high %v25_v0, %v33_v1  ;;  %v105_v55 = vld [vmem:[%s4902_s0 + $0x2b8] sm:$0xff] }
  0xb0   :  { %v113_v56 = vld [vmem:[%s4902_s0 + $0x2f8] sm:$0xff] }
  0xb1   :  { %3571 = vmatpush3.bf16.msra.mxu0 %v3801_v7  ;;  %v48_v7 = vld [vmem:[%s4902_s0 + $0xf0] sm:$0xff] }
  0xb2   :  { %3635 = vmatpush3.bf16.msra.mxu1 %v3803_v9  ;;  %3572 = vmatprep.subr.bf16.mxu0 %v3804_v10  ;;  %v49_v9 = vld [vmem:[%s4902_s0 + $0xf8] sm:$0xff]  ;;  %v2856_v10 = vcombine.low %v24_v62, %v32_v63 }
  0xb3   :  { %2247 = vmatmul.mubr.bf16.gmra.mrb[72].mxu0 %v2884_v11  ;;  %3636 = vmatprep.subr.bf16.mxu1 %v3806_v12  ;;  %v2858_v11 = vcombine.low %v25_v0, %v33_v1  ;;  %v2873_v12 = vcombine.high %v40_v6, %v48_v7 }
  0xb4   :  { %2344 = vmatmul.mubr.bf16.gmra.mrb[72].mxu1 %v2886_v13  ;;  %2254 = vmatprep.mubr.bf16.mxu0 %v2901_v14  ;;  %v2875_v13 = vcombine.high %v41_v8, %v49_v9  ;;  %v56_v14 = vld [vmem:[%s4902_s0 + $0x130] sm:$0xff] }
  0xb5   :  { %2351 = vmatprep.mubr.bf16.mxu1 %v2903_v15  ;;  %3573 = vmatpush3.bf16.msra.mxu0 %v3805_v16  ;;  %v64_v15 = vld [vmem:[%s4902_s0 + $0x170] sm:$0xff]  ;;  %v57_v16 = vld [vmem:[%s4902_s0 + $0x138] sm:$0xff] }
  0xb6   :  { %3637 = vmatpush3.bf16.msra.mxu1 %v3807_v17  ;;  %3574 = vmatprep.subr.bf16.mxu0 %v3808_v18  ;;  %v65_v17 = vld [vmem:[%s4902_s0 + $0x178] sm:$0xff]  ;;  %v2872_v18 = vcombine.low %v40_v6, %v48_v7  ;;  %v2889_v20 = vcombine.high %v56_v14, %v64_v15 }
  0xb7   :  { %3638 = vmatprep.subr.bf16.mxu1 %v3810_v19  ;;  %v2874_v19 = vcombine.low %v41_v8, %v49_v9  ;;  %v2891_v21 = vcombine.high %v57_v16, %v65_v17 }
  0xb9   :  { %3575 = vmatpush3.bf16.msra.mxu0 %v3809_v23  ;;  %v80_v23 = vld [vmem:[%s4902_s0 + $0x1f0] sm:$0xff] }
  0xba   :  { %3639 = vmatpush3.bf16.msra.mxu1 %v3811_v25  ;;  %3576 = vmatprep.subr.bf16.mxu0 %v3812_v26  ;;  %v81_v25 = vld [vmem:[%s4902_s0 + $0x1f8] sm:$0xff]  ;;  %v2888_v26 = vcombine.low %v56_v14, %v64_v15  ;;  %v2904_v37 = vcombine.low %v72_v22, %v80_v23 }
  0xbb   :  { %2255 = vmatmul.mubr.bf16.gmra.mrb[76].mxu0 %v2900_v27  ;;  %3640 = vmatprep.subr.bf16.mxu1 %v3814_v28  ;;  %v2890_v27 = vcombine.low %v57_v16, %v65_v17  ;;  %v2905_v28 = vcombine.high %v72_v22, %v80_v23  ;;  %v129_v14 = vld [vmem:[%s4902_s0 + $0x378] sm:$0xff] }
  0xbc   :  { %2352 = vmatmul.mubr.bf16.gmra.mrb[76].mxu1 %v2902_v29  ;;  %2262 = vmatprep.mubr.bf16.mxu0 %v2917_v30  ;;  %v2907_v29 = vcombine.high %v73_v24, %v81_v25  ;;  %v88_v30 = vld [vmem:[%s4902_s0 + $0x230] sm:$0xff] }
  0xbd   :  { %2359 = vmatprep.mubr.bf16.mxu1 %v2919_v31  ;;  %3577 = vmatpush3.bf16.msra.mxu0 %v3813_v32  ;;  %v96_v31 = vld [vmem:[%s4902_s0 + $0x270] sm:$0xff] }
  0xbe   :  { %3641 = vmatpush3.bf16.msra.mxu1 %v3815_v33  ;;  %3578 = vmatprep.subr.bf16.mxu0 %v3816_v34  ;;  %v89_v33 = vld [vmem:[%s4902_s0 + $0x238] sm:$0xff] }
  0xbf   :  { %3642 = vmatprep.subr.bf16.mxu1 %v3818_v35  ;;  %v97_v34 = vld [vmem:[%s4902_s0 + $0x278] sm:$0xff] }
  0xc0   :  { %v2923_v46 = vcombine.high %v89_v33, %v97_v34  ;;  %v2922_v63 = vcombine.low %v89_v33, %v97_v34  ;;  %v144_v33 = vld [vmem:[%s4902_s0 + $0x3f0] sm:$0xff] }
  0xc1   :  { %3579 = vmatpush3.bf16.msra.mxu0 %v3817_v38 }
  0xc2   :  { %3643 = vmatpush3.bf16.msra.mxu1 %v3819_v41  ;;  %v2906_v41 = vcombine.low %v73_v24, %v81_v25 }
  0xc3   :  { %2263 = vmatmul.mubr.bf16.gmra.mrb[80].mxu0 %v2916_v42  ;;  %v2921_v42 = vcombine.high %v88_v30, %v96_v31 }
  0xc4   :  { %2360 = vmatmul.mubr.bf16.gmra.mrb[80].mxu1 %v2918_v43  ;;  %2270 = vmatprep.mubr.bf16.mxu0 %v2933_v44 }
  0xc5   :  { %2367 = vmatprep.mubr.bf16.mxu1 %v2935_v45 }
  0xcb   :  { %2271 = vmatmul.mubr.bf16.gmra.mrb[84].mxu0 %v2932_v50 }
  0xcc   :  { %2368 = vmatmul.mubr.bf16.gmra.mrb[84].mxu1 %v2934_v51  ;;  %2278 = vmatprep.mubr.bf16.mxu0 %v2949_v52  ;;  %v104_v52 = vld [vmem:[%s4902_s0 + $0x2b0] sm:$0xff] }
  0xcd   :  { %2375 = vmatprep.mubr.bf16.mxu1 %v2951_v53  ;;  %v112_v53 = vld [vmem:[%s4902_s0 + $0x2f0] sm:$0xff] }
  0xce   :  { %v2937_v0 = vcombine.high %v104_v52, %v112_v53  ;;  %v2936_v17 = vcombine.low %v104_v52, %v112_v53 }
  0xd3   :  { %2279 = vmatmul.mubr.bf16.gmra.mrb[88].mxu0 %v2948_v58 }
  0xd4   :  { %2376 = vmatmul.mubr.bf16.gmra.mrb[88].mxu1 %v2950_v59  ;;  %2286 = vmatprep.mubr.bf16.mxu0 %v2965_v60  ;;  %v2920_v59 = vcombine.low %v88_v30, %v96_v31 }
  0xd5   :  { %2383 = vmatprep.mubr.bf16.mxu1 %v2967_v61 }
  0xdb   :  { %2287 = vmatmul.mubr.bf16.gmra.mrb[92].mxu0 %v2964_v2 }
  0xdc   :  { %2384 = vmatmul.mubr.bf16.gmra.mrb[92].mxu1 %v2966_v3  ;;  %2424 = vmatprep.mubr.bf16.mxu0 %v2857_v4  ;;  %v2939_v4 = vcombine.high %v105_v55, %v113_v56 }
  0xdd   :  { %2521 = vmatprep.mubr.bf16.mxu1 %v2859_v5 }
  0xe3   :  { %2425 = vmatmul.mubr.bf16.vlgmr.msra.gmra.mrb[96].mxu0 %v2856_v10  ;;  %v120_v10 = vld [vmem:[%s4902_s0 + $0x330] sm:$0xff] }
  0xe4   :  { %2522 = vmatmul.mubr.bf16.vlgmr.msra.gmra.mrb[96].mxu1 %v2858_v11  ;;  %2432 = vmatprep.mubr.bf16.mxu0 %v2873_v12  ;;  %v128_v11 = vld [vmem:[%s4902_s0 + $0x370] sm:$0xff] }
  0xe5   :  { %2529 = vmatprep.mubr.bf16.mxu1 %v2875_v13  ;;  %v121_v13 = vld [vmem:[%s4902_s0 + $0x338] sm:$0xff]  ;;  %v2953_v22 = vcombine.high %v120_v10, %v128_v11 }
  0xeb   :  { %2433 = vmatmul.mubr.bf16.gmra.mrb[100].mxu0 %v2872_v18 }
  0xec   :  { %2530 = vmatmul.mubr.bf16.gmra.mrb[100].mxu1 %v2874_v19  ;;  %2440 = vmatprep.mubr.bf16.mxu0 %v2889_v20 }
  0xed   :  { %2537 = vmatprep.mubr.bf16.mxu1 %v2891_v21  ;;  %v2938_v21 = vcombine.low %v105_v55, %v113_v56 }
  0xf3   :  { %2441 = vmatmul.mubr.bf16.gmra.mrb[104].mxu0 %v2888_v26  ;;  %v2955_v26 = vcombine.high %v121_v13, %v129_v14 }
  0xf4   :  { %2538 = vmatmul.mubr.bf16.gmra.mrb[104].mxu1 %v2890_v27  ;;  %2448 = vmatprep.mubr.bf16.mxu0 %v2905_v28 }
  0xf5   :  { %2545 = vmatprep.mubr.bf16.mxu1 %v2907_v29 }
  0xf6   :  { %v3196_v32 = vpop.f32.mrb[0].mxu0 }
  0xf7   :  { %v3260_v35 = vpop.f32.mrb[0].mxu1  ;;  %v3197_v36 = vpop.f32.mrb[1].mxu0 }
  0xf8   :  { %v3198_v38 = vadd.f32 %v3197_v36, %v3196_v32  ;;  %v3261_v39 = vpop.f32.mrb[1].mxu1  ;;  %v3199_v40 = vpop.f32.mrb[2].mxu0  ;;  %v136_v32 = vld [vmem:[%s4902_s0 + $0x3b0] sm:$0xff]  ;;  %v145_v36 = vld [vmem:[%s4902_s0 + $0x3f8] sm:$0xff] }
  0xf9   :  { %v3262_v43 = vadd.f32 %v3261_v39, %v3260_v35  ;;  %v3263_v44 = vpop.f32.mrb[2].mxu1  ;;  %v3200_v45 = vpop.f32.mrb[3].mxu0  ;;  %v137_v35 = vld [vmem:[%s4902_s0 + $0x3b8] sm:$0xff]  ;;  %v2952_v39 = vcombine.low %v120_v10, %v128_v11 }
  0xfa   :  { %v3201_v47 = vadd.f32 %v3200_v45, %v3199_v40  ;;  %v3264_v48 = vpop.f32.mrb[3].mxu1 }
  0xfb   :  { %v4579_v49 = vadd.f32 %v3262_v43, %v3198_v38  ;;  %v3265_v50 = vadd.f32 %v3264_v48, %v3263_v44  ;;  %2449 = vmatmul.mubr.bf16.gmra.mrb[108].mxu0 %v2904_v37  ;;  %v2954_v43 = vcombine.low %v121_v13, %v129_v14  ;;  %v2969_v44 = vcombine.high %v136_v32, %v144_v33 }
  0xfc   :  { %2546 = vmatmul.mubr.bf16.gmra.mrb[108].mxu1 %v2906_v41  ;;  %2456 = vmatprep.mubr.bf16.mxu0 %v2921_v42  ;;  %v2971_v48 = vcombine.high %v137_v35, %v145_v36 }
  0xfd   :  { %v4581_v51 = vadd.f32 %v3265_v50, %v3201_v47  ;;  %2553 = vmatprep.mubr.bf16.mxu1 %v2923_v46 }
  0xfe   :  { %v3202_v54 = vpop.f32.mrb[4].mxu0 }
  0xff   :  { %v3266_v57 = vpop.f32.mrb[4].mxu1  ;;  %v3203_v58 = vpop.f32.mrb[5].mxu0 }
 0x100   :  { %v3204_v60 = vadd.f32 %v3203_v58, %v3202_v54  ;;  %v3267_v61 = vpop.f32.mrb[5].mxu1  ;;  %v3205_v62 = vpop.f32.mrb[6].mxu0 }
 0x101   :  { %v3268_v1 = vadd.f32 %v3267_v61, %v3266_v57  ;;  %v3269_v2 = vpop.f32.mrb[6].mxu1  ;;  %v3206_v3 = vpop.f32.mrb[7].mxu0 }
 0x102   :  { %v3207_v5 = vadd.f32 %v3206_v3, %v3205_v62  ;;  %v3270_v6 = vpop.f32.mrb[7].mxu1 }
 0x103   :  { %v4595_v7 = vadd.f32 %v3268_v1, %v3204_v60  ;;  %v3271_v8 = vadd.f32 %v3270_v6, %v3269_v2  ;;  %2457 = vmatmul.mubr.bf16.gmra.mrb[112].mxu0 %v2920_v59  ;;  %v2968_v59 = vcombine.low %v136_v32, %v144_v33 }
 0x104   :  { %2554 = vmatmul.mubr.bf16.gmra.mrb[112].mxu1 %v2922_v63  ;;  %2464 = vmatprep.mubr.bf16.mxu0 %v2937_v0  ;;  %v2970_v63 = vcombine.low %v137_v35, %v145_v36 }
 0x105   :  { %v4597_v9 = vadd.f32 %v3271_v8, %v3207_v5  ;;  %2561 = vmatprep.mubr.bf16.mxu1 %v2939_v4 }
 0x106   :  { %v3208_v12 = vpop.f32.mrb[8].mxu0 }
 0x107   :  { %v3272_v15 = vpop.f32.mrb[8].mxu1  ;;  %v3209_v16 = vpop.f32.mrb[9].mxu0 }
 0x108   :  { %v3210_v18 = vadd.f32 %v3209_v16, %v3208_v12  ;;  %v3273_v19 = vpop.f32.mrb[9].mxu1  ;;  %v3211_v20 = vpop.f32.mrb[10].mxu0 }
 0x109   :  { %v3274_v23 = vadd.f32 %v3273_v19, %v3272_v15  ;;  %v3275_v24 = vpop.f32.mrb[10].mxu1  ;;  %v3212_v25 = vpop.f32.mrb[11].mxu0 }
 0x10a   :  { %v3213_v27 = vadd.f32 %v3212_v25, %v3211_v20  ;;  %v3276_v28 = vpop.f32.mrb[11].mxu1 }
 0x10b   :  { %v4611_v29 = vadd.f32 %v3274_v23, %v3210_v18  ;;  %v3277_v30 = vadd.f32 %v3276_v28, %v3275_v24  ;;  %2465 = vmatmul.mubr.bf16.gmra.mrb[116].mxu0 %v2936_v17 }
 0x10c   :  { %2562 = vmatmul.mubr.bf16.gmra.mrb[116].mxu1 %v2938_v21  ;;  %2472 = vmatprep.mubr.bf16.mxu0 %v2953_v22 }
 0x10d   :  { %v4613_v31 = vadd.f32 %v3277_v30, %v3213_v27  ;;  %2569 = vmatprep.mubr.bf16.mxu1 %v2955_v26 }
 0x10e   :  { %v3214_v34 = vpop.f32.mrb[12].mxu0 }
 0x10f   :  { %v3278_v37 = vpop.f32.mrb[12].mxu1  ;;  %v3215_v38 = vpop.f32.mrb[13].mxu0 }
 0x110   :  { %v3216_v40 = vadd.f32 %v3215_v38, %v3214_v34  ;;  %v3279_v41 = vpop.f32.mrb[13].mxu1  ;;  %v3217_v42 = vpop.f32.mrb[14].mxu0 }
 0x111   :  { %v3280_v45 = vadd.f32 %v3279_v41, %v3278_v37  ;;  %v3281_v46 = vpop.f32.mrb[14].mxu1  ;;  %v3218_v47 = vpop.f32.mrb[15].mxu0 }
 0x112   :  { %v3219_v50 = vadd.f32 %v3218_v47, %v3217_v42  ;;  %v3282_v52 = vpop.f32.mrb[15].mxu1 }
 0x113   :  { %v4627_v53 = vadd.f32 %v3280_v45, %v3216_v40  ;;  %v3283_v54 = vadd.f32 %v3282_v52, %v3281_v46  ;;  %2473 = vmatmul.mubr.bf16.gmra.mrb[120].mxu0 %v2952_v39 }
 0x114   :  { %2570 = vmatmul.mubr.bf16.gmra.mrb[120].mxu1 %v2954_v43  ;;  %2480 = vmatprep.mubr.bf16.mxu0 %v2969_v44 }
 0x115   :  { %v4629_v55 = vadd.f32 %v3283_v54, %v3219_v50  ;;  %2577 = vmatprep.mubr.bf16.mxu1 %v2971_v48 }
 0x116   :  { %v3220_v56 = vpop.f32.mrb[16].mxu0 }
 0x117   :  { %v3284_v57 = vpop.f32.mrb[16].mxu1  ;;  %v3221_v58 = vpop.f32.mrb[17].mxu0 }
 0x118   :  { %v3222_v60 = vadd.f32 %v3221_v58, %v3220_v56  ;;  %v3285_v61 = vpop.f32.mrb[17].mxu1  ;;  %v3223_v62 = vpop.f32.mrb[18].mxu0 }
 0x119   :  { %v3286_v0 = vadd.f32 %v3285_v61, %v3284_v57  ;;  %v3287_v1 = vpop.f32.mrb[18].mxu1  ;;  %v3224_v2 = vpop.f32.mrb[19].mxu0 }
 0x11a   :  { %v3225_v3 = vadd.f32 %v3224_v2, %v3223_v62  ;;  %v3288_v4 = vpop.f32.mrb[19].mxu1 }
 0x11b   :  { %v4631_v5 = vadd.f32 %v3286_v0, %v3222_v60  ;;  %v3289_v6 = vadd.f32 %v3288_v4, %v3287_v1  ;;  %2481 = vmatmul.mubr.bf16.gmra.mrb[124].mxu0 %v2968_v59 }
 0x11c   :  { %2578 = vmatmul.mubr.bf16.gmra.mrb[124].mxu1 %v2970_v63 }
 0x11d   :  { %v4633_v8 = vadd.f32 %v3289_v6, %v3225_v3 }
 0x11e   :  { %v3226_v10 = vpop.f32.mrb[20].mxu0 }
 0x11f   :  { %v3290_v11 = vpop.f32.mrb[20].mxu1  ;;  %v3227_v12 = vpop.f32.mrb[21].mxu0 }
 0x120   :  { %v3228_v13 = vadd.f32 %v3227_v12, %v3226_v10  ;;  %v3291_v14 = vpop.f32.mrb[21].mxu1  ;;  %v3229_v15 = vpop.f32.mrb[22].mxu0 }
 0x121   :  { %v3292_v16 = vadd.f32 %v3291_v14, %v3290_v11  ;;  %v3293_v17 = vpop.f32.mrb[22].mxu1  ;;  %v3230_v18 = vpop.f32.mrb[23].mxu0 }
 0x122   :  { %v3231_v19 = vadd.f32 %v3230_v18, %v3229_v15  ;;  %v3294_v20 = vpop.f32.mrb[23].mxu1 }
 0x123   :  { %v4635_v21 = vadd.f32 %v3292_v16, %v3228_v13  ;;  %v3295_v22 = vadd.f32 %v3294_v20, %v3293_v17 }
 0x125   :  { %v4637_v23 = vadd.f32 %v3295_v22, %v3231_v19 }
 0x126   :  { %v3232_v24 = vpop.f32.mrb[24].mxu0 }
 0x127   :  { %v3296_v25 = vpop.f32.mrb[24].mxu1  ;;  %v3233_v26 = vpop.f32.mrb[25].mxu0 }
 0x128   :  { %v3234_v27 = vadd.f32 %v3233_v26, %v3232_v24  ;;  %v3297_v28 = vpop.f32.mrb[25].mxu1  ;;  %v3235_v30 = vpop.f32.mrb[26].mxu0 }
 0x129   :  { %v3298_v32 = vadd.f32 %v3297_v28, %v3296_v25  ;;  %v3299_v33 = vpop.f32.mrb[26].mxu1  ;;  %v3236_v34 = vpop.f32.mrb[27].mxu0 }
 0x12a   :  { %v3237_v35 = vadd.f32 %v3236_v34, %v3235_v30  ;;  %v3300_v36 = vpop.f32.mrb[27].mxu1 }
 0x12b   :  { %v4639_v37 = vadd.f32 %v3298_v32, %v3234_v27  ;;  %v3301_v38 = vadd.f32 %v3300_v36, %v3299_v33 }
 0x12d   :  { %v4641_v39 = vadd.f32 %v3301_v38, %v3237_v35 }
 0x12e   :  { %v3238_v40 = vpop.f32.mrb[28].mxu0 }
 0x12f   :  { %v3302_v41 = vpop.f32.mrb[28].mxu1  ;;  %v3239_v42 = vpop.f32.mrb[29].mxu0 }
 0x130   :  { %v3240_v43 = vadd.f32 %v3239_v42, %v3238_v40  ;;  %v3303_v44 = vpop.f32.mrb[29].mxu1  ;;  %v3241_v45 = vpop.f32.mrb[30].mxu0 }
 0x131   :  { %v3304_v46 = vadd.f32 %v3303_v44, %v3302_v41  ;;  %v3305_v47 = vpop.f32.mrb[30].mxu1  ;;  %v3242_v48 = vpop.f32.mrb[31].mxu0 }
 0x132   :  { %v3243_v50 = vadd.f32 %v3242_v48, %v3241_v45  ;;  %v3306_v52 = vpop.f32.mrb[31].mxu1 }
 0x133   :  { %v4643_v54 = vadd.f32 %v3304_v46, %v3240_v43  ;;  %v3307_v56 = vadd.f32 %v3306_v52, %v3305_v47 }
 0x135   :  { %v4645_v57 = vadd.f32 %v3307_v56, %v3243_v50 }
 0x136   :  { %v3324_v58 = vpop.f32.mrb[32].mxu0 }
 0x137   :  { %v3388_v59 = vpop.f32.mrb[32].mxu1  ;;  %v3325_v60 = vpop.f32.mrb[33].mxu0 }
 0x138   :  { %v3326_v61 = vadd.f32 %v3325_v60, %v3324_v58  ;;  %v3389_v62 = vpop.f32.mrb[33].mxu1  ;;  %v3327_v63 = vpop.f32.mrb[34].mxu0 }
 0x139   :  { %v3390_v0 = vadd.f32 %v3389_v62, %v3388_v59  ;;  %v3391_v1 = vpop.f32.mrb[34].mxu1  ;;  %v3328_v2 = vpop.f32.mrb[35].mxu0 }
 0x13a   :  { %v2039_v3 = vadd.f32 %v3326_v61, %v4579_v49  ;;  %v3329_v4 = vadd.f32 %v3328_v2, %v3327_v63  ;;  %v3392_v6 = vpop.f32.mrb[35].mxu1 }
 0x13b   :  { %v3393_v10 = vadd.f32 %v3392_v6, %v3391_v1 }
 0x13c   :  { %v4648_v11 = vadd.f32 %v3390_v0, %v2039_v3  ;;  %v2042_v12 = vadd.f32 %v3329_v4, %v4581_v51 }
 0x13e   :  { %v4651_v13 = vadd.f32 %v3393_v10, %v2042_v12  ;;  %v3330_v14 = vpop.f32.mrb[36].mxu0 }
 0x13f   :  { %v3394_v15 = vpop.f32.mrb[36].mxu1  ;;  %v3331_v16 = vpop.f32.mrb[37].mxu0 }
 0x140   :  { %v3332_v17 = vadd.f32 %v3331_v16, %v3330_v14  ;;  %v3395_v18 = vpop.f32.mrb[37].mxu1  ;;  %v3333_v19 = vpop.f32.mrb[38].mxu0 }
 0x141   :  { %v3396_v20 = vadd.f32 %v3395_v18, %v3394_v15  ;;  %v3397_v22 = vpop.f32.mrb[38].mxu1  ;;  %v3334_v24 = vpop.f32.mrb[39].mxu0 }
 0x142   :  { %v2047_v49 = vadd.f32 %v3332_v17, %v4595_v7  ;;  %v3335_v25 = vadd.f32 %v3334_v24, %v3333_v19  ;;  %v3398_v26 = vpop.f32.mrb[39].mxu1 }
 0x143   :  { %v3399_v27 = vadd.f32 %v3398_v26, %v3397_v22 }
 0x144   :  { %v4654_v28 = vadd.f32 %v3396_v20, %v2047_v49  ;;  %v2050_v51 = vadd.f32 %v3335_v25, %v4597_v9 }
 0x146   :  { %v4657_v30 = vadd.f32 %v3399_v27, %v2050_v51  ;;  %v3336_v32 = vpop.f32.mrb[40].mxu0 }
 0x147   :  { %v3400_v33 = vpop.f32.mrb[40].mxu1  ;;  %v3337_v34 = vpop.f32.mrb[41].mxu0 }
 0x148   :  { %v3338_v35 = vadd.f32 %v3337_v34, %v3336_v32  ;;  %v3401_v36 = vpop.f32.mrb[41].mxu1  ;;  %v3339_v38 = vpop.f32.mrb[42].mxu0 }
 0x149   :  { %v3402_v40 = vadd.f32 %v3401_v36, %v3400_v33  ;;  %v3403_v41 = vpop.f32.mrb[42].mxu1  ;;  %v3340_v42 = vpop.f32.mrb[43].mxu0 }
 0x14a   :  { %v2055_v7 = vadd.f32 %v3338_v35, %v4611_v29  ;;  %v3341_v43 = vadd.f32 %v3340_v42, %v3339_v38  ;;  %v3404_v44 = vpop.f32.mrb[43].mxu1 }
 0x14b   :  { %v3405_v45 = vadd.f32 %v3404_v44, %v3403_v41 }
 0x14c   :  { %v4660_v46 = vadd.f32 %v3402_v40, %v2055_v7  ;;  %v2058_v9 = vadd.f32 %v3341_v43, %v4613_v31 }
 0x14e   :  { %v4663_v47 = vadd.f32 %v3405_v45, %v2058_v9  ;;  %v3342_v48 = vpop.f32.mrb[44].mxu0 }
 0x14f   :  { %v3406_v50 = vpop.f32.mrb[44].mxu1  ;;  %v3343_v52 = vpop.f32.mrb[45].mxu0 }
 0x150   :  { %v3344_v56 = vadd.f32 %v3343_v52, %v3342_v48  ;;  %v3407_v58 = vpop.f32.mrb[45].mxu1  ;;  %v3345_v59 = vpop.f32.mrb[46].mxu0 }
 0x151   :  { %v3408_v60 = vadd.f32 %v3407_v58, %v3406_v50  ;;  %v3409_v61 = vpop.f32.mrb[46].mxu1  ;;  %v3346_v62 = vpop.f32.mrb[47].mxu0 }
 0x152   :  { %v2063_v29 = vadd.f32 %v3344_v56, %v4627_v53  ;;  %v3347_v63 = vadd.f32 %v3346_v62, %v3345_v59  ;;  %v3410_v0 = vpop.f32.mrb[47].mxu1 }
 0x153   :  { %v3411_v1 = vadd.f32 %v3410_v0, %v3409_v61 }
 0x154   :  { %v4666_v2 = vadd.f32 %v3408_v60, %v2063_v29  ;;  %v2066_v31 = vadd.f32 %v3347_v63, %v4629_v55 }
 0x156   :  { %v4669_v3 = vadd.f32 %v3411_v1, %v2066_v31  ;;  %v3348_v4 = vpop.f32.mrb[48].mxu0 }
 0x157   :  { %v3412_v6 = vpop.f32.mrb[48].mxu1  ;;  %v3349_v10 = vpop.f32.mrb[49].mxu0 }
 0x158   :  { %v3350_v12 = vadd.f32 %v3349_v10, %v3348_v4  ;;  %v3413_v14 = vpop.f32.mrb[49].mxu1  ;;  %v3351_v15 = vpop.f32.mrb[50].mxu0 }
 0x159   :  { %v3414_v16 = vadd.f32 %v3413_v14, %v3412_v6  ;;  %v3415_v17 = vpop.f32.mrb[50].mxu1  ;;  %v3352_v18 = vpop.f32.mrb[51].mxu0 }
 0x15a   :  { %v2071_v53 = vadd.f32 %v3350_v12, %v4631_v5  ;;  %v3353_v19 = vadd.f32 %v3352_v18, %v3351_v15  ;;  %v3416_v20 = vpop.f32.mrb[51].mxu1 }
 0x15b   :  { %v3417_v22 = vadd.f32 %v3416_v20, %v3415_v17 }
 0x15c   :  { %v4672_v24 = vadd.f32 %v3414_v16, %v2071_v53  ;;  %v2074_v55 = vadd.f32 %v3353_v19, %v4633_v8 }
 0x15e   :  { %v4675_v49 = vadd.f32 %v3417_v22, %v2074_v55  ;;  %v3354_v25 = vpop.f32.mrb[52].mxu0 }
 0x15f   :  { %v3418_v26 = vpop.f32.mrb[52].mxu1  ;;  %v3355_v27 = vpop.f32.mrb[53].mxu0 }
 0x160   :  { %v3356_v51 = vadd.f32 %v3355_v27, %v3354_v25  ;;  %v3419_v32 = vpop.f32.mrb[53].mxu1  ;;  %v3357_v33 = vpop.f32.mrb[54].mxu0 }
 0x161   :  { %v3420_v34 = vadd.f32 %v3419_v32, %v3418_v26  ;;  %v3421_v35 = vpop.f32.mrb[54].mxu1  ;;  %v3358_v36 = vpop.f32.mrb[55].mxu0 }
 0x162   :  { %v2079_v5 = vadd.f32 %v3356_v51, %v4635_v21  ;;  %v3359_v38 = vadd.f32 %v3358_v36, %v3357_v33  ;;  %v3422_v40 = vpop.f32.mrb[55].mxu1 }
 0x163   :  { %v3423_v41 = vadd.f32 %v3422_v40, %v3421_v35 }
 0x164   :  { %v4678_v42 = vadd.f32 %v3420_v34, %v2079_v5  ;;  %v2082_v8 = vadd.f32 %v3359_v38, %v4637_v23 }
 0x166   :  { %v4681_v7 = vadd.f32 %v3423_v41, %v2082_v8  ;;  %v3360_v43 = vpop.f32.mrb[56].mxu0 }
 0x167   :  { %v3424_v44 = vpop.f32.mrb[56].mxu1  ;;  %v3361_v45 = vpop.f32.mrb[57].mxu0 }
 0x168   :  { %v3362_v9 = vadd.f32 %v3361_v45, %v3360_v43  ;;  %v3425_v48 = vpop.f32.mrb[57].mxu1  ;;  %v3363_v50 = vpop.f32.mrb[58].mxu0 }
 0x169   :  { %v3426_v52 = vadd.f32 %v3425_v48, %v3424_v44  ;;  %v3427_v56 = vpop.f32.mrb[58].mxu1  ;;  %v3364_v58 = vpop.f32.mrb[59].mxu0 }
 0x16a   :  { %v2087_v21 = vadd.f32 %v3362_v9, %v4639_v37  ;;  %v3365_v59 = vadd.f32 %v3364_v58, %v3363_v50  ;;  %v3428_v60 = vpop.f32.mrb[59].mxu1 }
 0x16b   :  { %v3429_v61 = vadd.f32 %v3428_v60, %v3427_v56 }
 0x16c   :  { %v4684_v62 = vadd.f32 %v3426_v52, %v2087_v21  ;;  %v2090_v23 = vadd.f32 %v3365_v59, %v4641_v39 }
 0x16e   :  { %v4687_v29 = vadd.f32 %v3429_v61, %v2090_v23  ;;  %v3366_v63 = vpop.f32.mrb[60].mxu0 }
 0x16f   :  { %v3430_v0 = vpop.f32.mrb[60].mxu1  ;;  %v3367_v1 = vpop.f32.mrb[61].mxu0 }
 0x170   :  { %v3368_v31 = vadd.f32 %v3367_v1, %v3366_v63  ;;  %v3431_v4 = vpop.f32.mrb[61].mxu1  ;;  %v3369_v6 = vpop.f32.mrb[62].mxu0 }
 0x171   :  { %v3432_v10 = vadd.f32 %v3431_v4, %v3430_v0  ;;  %v3433_v12 = vpop.f32.mrb[62].mxu1  ;;  %v3370_v14 = vpop.f32.mrb[63].mxu0 }
 0x172   :  { %v2095_v37 = vadd.f32 %v3368_v31, %v4643_v54  ;;  %v3371_v15 = vadd.f32 %v3370_v14, %v3369_v6  ;;  %v3434_v16 = vpop.f32.mrb[63].mxu1 }
 0x173   :  { %v3435_v17 = vadd.f32 %v3434_v16, %v3433_v12 }
 0x174   :  { %v4690_v18 = vadd.f32 %v3432_v10, %v2095_v37  ;;  %v2098_v39 = vadd.f32 %v3371_v15, %v4645_v57 }
 0x176   :  { %v4693_v53 = vadd.f32 %v3435_v17, %v2098_v39  ;;  %v3452_v19 = vpop.f32.mrb[64].mxu0 }
 0x177   :  { %v3516_v20 = vpop.f32.mrb[64].mxu1  ;;  %v3453_v22 = vpop.f32.mrb[65].mxu0 }
 0x178   :  { %v3454_v55 = vadd.f32 %v3453_v22, %v3452_v19  ;;  %v3517_v25 = vpop.f32.mrb[65].mxu1  ;;  %v3455_v26 = vpop.f32.mrb[66].mxu0 }
 0x179   :  { %v3518_v27 = vadd.f32 %v3517_v25, %v3516_v20  ;;  %v3519_v51 = vpop.f32.mrb[66].mxu1  ;;  %v3456_v32 = vpop.f32.mrb[67].mxu0 }
 0x17a   :  { %v2233_v54 = vadd.f32 %v3454_v55, %v4648_v11  ;;  %v3457_v33 = vadd.f32 %v3456_v32, %v3455_v26  ;;  %v3520_v34 = vpop.f32.mrb[67].mxu1 }
 0x17b   :  { %v3521_v35 = vadd.f32 %v3520_v34, %v3519_v51 }
 0x17c   :  { %v4696_v36 = vadd.f32 %v3518_v27, %v2233_v54  ;;  %v2236_v57 = vadd.f32 %v3457_v33, %v4651_v13 }
 0x17e   :  { %v4699_v5 = vadd.f32 %v3521_v35, %v2236_v57  ;;  %v3458_v38 = vpop.f32.mrb[68].mxu0 }
 0x17f   :  { %v3522_v40 = vpop.f32.mrb[68].mxu1  ;;  %v3459_v41 = vpop.f32.mrb[69].mxu0 }
 0x180   :  { %v3460_v8 = vadd.f32 %v3459_v41, %v3458_v38  ;;  %v3523_v43 = vpop.f32.mrb[69].mxu1  ;;  %v3461_v44 = vpop.f32.mrb[70].mxu0 }
 0x181   :  { %v3524_v45 = vadd.f32 %v3523_v43, %v3522_v40  ;;  %v3525_v9 = vpop.f32.mrb[70].mxu1  ;;  %v3462_v48 = vpop.f32.mrb[71].mxu0 }
 0x182   :  { %v2241_v11 = vadd.f32 %v3460_v8, %v4654_v28  ;;  %v3463_v50 = vadd.f32 %v3462_v48, %v3461_v44  ;;  %v3526_v52 = vpop.f32.mrb[71].mxu1 }
 0x183   :  { %v3527_v56 = vadd.f32 %v3526_v52, %v3525_v9 }
 0x184   :  { %v4702_v58 = vadd.f32 %v3524_v45, %v2241_v11  ;;  %v2244_v13 = vadd.f32 %v3463_v50, %v4657_v30 }
 0x186   :  { %v4705_v21 = vadd.f32 %v3527_v56, %v2244_v13  ;;  %v3464_v59 = vpop.f32.mrb[72].mxu0 }
 0x187   :  { %v3528_v60 = vpop.f32.mrb[72].mxu1  ;;  %v3465_v61 = vpop.f32.mrb[73].mxu0 }
 0x188   :  { %v3466_v23 = vadd.f32 %v3465_v61, %v3464_v59  ;;  %v3529_v63 = vpop.f32.mrb[73].mxu1  ;;  %v3467_v0 = vpop.f32.mrb[74].mxu0 }
 0x189   :  { %v3530_v1 = vadd.f32 %v3529_v63, %v3528_v60  ;;  %v3531_v31 = vpop.f32.mrb[74].mxu1  ;;  %v3468_v4 = vpop.f32.mrb[75].mxu0 }
 0x18a   :  { %v2249_v28 = vadd.f32 %v3466_v23, %v4660_v46  ;;  %v3469_v6 = vadd.f32 %v3468_v4, %v3467_v0  ;;  %v3532_v10 = vpop.f32.mrb[75].mxu1 }
 0x18b   :  { %v3533_v12 = vadd.f32 %v3532_v10, %v3531_v31 }
 0x18c   :  { %v4708_v14 = vadd.f32 %v3530_v1, %v2249_v28  ;;  %v2252_v30 = vadd.f32 %v3469_v6, %v4663_v47 }
 0x18e   :  { %v4711_v37 = vadd.f32 %v3533_v12, %v2252_v30  ;;  %v3470_v15 = vpop.f32.mrb[76].mxu0 }
 0x18f   :  { %v3534_v16 = vpop.f32.mrb[76].mxu1  ;;  %v3471_v17 = vpop.f32.mrb[77].mxu0 }
 0x190   :  { %v3472_v39 = vadd.f32 %v3471_v17, %v3470_v15  ;;  %v3535_v19 = vpop.f32.mrb[77].mxu1  ;;  %v3473_v20 = vpop.f32.mrb[78].mxu0 }
 0x191   :  { %v3536_v22 = vadd.f32 %v3535_v19, %v3534_v16  ;;  %v3537_v55 = vpop.f32.mrb[78].mxu1  ;;  %v3474_v25 = vpop.f32.mrb[79].mxu0 }
 0x192   :  { %v2257_v46 = vadd.f32 %v3472_v39, %v4666_v2  ;;  %v3475_v26 = vadd.f32 %v3474_v25, %v3473_v20  ;;  %v3538_v27 = vpop.f32.mrb[79].mxu1 }
 0x193   :  { %v3539_v51 = vadd.f32 %v3538_v27, %v3537_v55 }
 0x194   :  { %v4714_v32 = vadd.f32 %v3536_v22, %v2257_v46  ;;  %v2260_v47 = vadd.f32 %v3475_v26, %v4669_v3 }
 0x196   :  { %v4717_v54 = vadd.f32 %v3539_v51, %v2260_v47  ;;  %v3476_v33 = vpop.f32.mrb[80].mxu0 }
 0x197   :  { %v3540_v34 = vpop.f32.mrb[80].mxu1  ;;  %v3477_v35 = vpop.f32.mrb[81].mxu0 }
 0x198   :  { %v3478_v57 = vadd.f32 %v3477_v35, %v3476_v33  ;;  %v3541_v38 = vpop.f32.mrb[81].mxu1  ;;  %v3479_v40 = vpop.f32.mrb[82].mxu0 }
 0x199   :  { %v3542_v41 = vadd.f32 %v3541_v38, %v3540_v34  ;;  %v3543_v8 = vpop.f32.mrb[82].mxu1  ;;  %v3480_v43 = vpop.f32.mrb[83].mxu0 }
 0x19a   :  { %v2265_v2 = vadd.f32 %v3478_v57, %v4672_v24  ;;  %v3481_v44 = vadd.f32 %v3480_v43, %v3479_v40  ;;  %v3544_v45 = vpop.f32.mrb[83].mxu1 }
 0x19b   :  { %v3545_v9 = vadd.f32 %v3544_v45, %v3543_v8 }
 0x19c   :  { %v4720_v48 = vadd.f32 %v3542_v41, %v2265_v2  ;;  %v2268_v3 = vadd.f32 %v3481_v44, %v4675_v49 }
 0x19e   :  { %v4723_v11 = vadd.f32 %v3545_v9, %v2268_v3  ;;  %v3482_v50 = vpop.f32.mrb[84].mxu0 }
 0x19f   :  { %v3546_v52 = vpop.f32.mrb[84].mxu1  ;;  %v3483_v56 = vpop.f32.mrb[85].mxu0 }
 0x1a0   :  { %v3484_v13 = vadd.f32 %v3483_v56, %v3482_v50  ;;  %v3547_v59 = vpop.f32.mrb[85].mxu1  ;;  %v3485_v60 = vpop.f32.mrb[86].mxu0 }
 0x1a1   :  { %v3548_v61 = vadd.f32 %v3547_v59, %v3546_v52  ;;  %v3549_v23 = vpop.f32.mrb[86].mxu1  ;;  %v3486_v63 = vpop.f32.mrb[87].mxu0 }
 0x1a2   :  { %v2273_v24 = vadd.f32 %v3484_v13, %v4678_v42  ;;  %v3487_v0 = vadd.f32 %v3486_v63, %v3485_v60  ;;  %v3550_v1 = vpop.f32.mrb[87].mxu1 }
 0x1a3   :  { %v3551_v31 = vadd.f32 %v3550_v1, %v3549_v23 }
 0x1a4   :  { %v4726_v4 = vadd.f32 %v3548_v61, %v2273_v24  ;;  %v2276_v49 = vadd.f32 %v3487_v0, %v4681_v7 }
 0x1a6   :  { %v4729_v28 = vadd.f32 %v3551_v31, %v2276_v49  ;;  %v3488_v6 = vpop.f32.mrb[88].mxu0 }
 0x1a7   :  { %v3552_v10 = vpop.f32.mrb[88].mxu1  ;;  %v3489_v12 = vpop.f32.mrb[89].mxu0 }
 0x1a8   :  { %v3490_v30 = vadd.f32 %v3489_v12, %v3488_v6  ;;  %v3553_v15 = vpop.f32.mrb[89].mxu1  ;;  %v3491_v16 = vpop.f32.mrb[90].mxu0 }
 0x1a9   :  { %v3554_v17 = vadd.f32 %v3553_v15, %v3552_v10  ;;  %v3555_v39 = vpop.f32.mrb[90].mxu1  ;;  %v3492_v19 = vpop.f32.mrb[91].mxu0 }
 0x1aa   :  { %v2281_v42 = vadd.f32 %v3490_v30, %v4684_v62  ;;  %v3493_v20 = vadd.f32 %v3492_v19, %v3491_v16  ;;  %v3556_v22 = vpop.f32.mrb[91].mxu1 }
 0x1ab   :  { %v3557_v55 = vadd.f32 %v3556_v22, %v3555_v39 }
 0x1ac   :  { %v4732_v25 = vadd.f32 %v3554_v17, %v2281_v42  ;;  %v2284_v7 = vadd.f32 %v3493_v20, %v4687_v29 }
 0x1ae   :  { %v4735_v46 = vadd.f32 %v3557_v55, %v2284_v7  ;;  %v3494_v26 = vpop.f32.mrb[92].mxu0 }
 0x1af   :  { %v3558_v27 = vpop.f32.mrb[92].mxu1  ;;  %v3495_v51 = vpop.f32.mrb[93].mxu0 }
 0x1b0   :  { %v3496_v47 = vadd.f32 %v3495_v51, %v3494_v26  ;;  %v3559_v33 = vpop.f32.mrb[93].mxu1  ;;  %v3497_v34 = vpop.f32.mrb[94].mxu0 }
 0x1b1   :  { %v3560_v35 = vadd.f32 %v3559_v33, %v3558_v27  ;;  %v3561_v57 = vpop.f32.mrb[94].mxu1  ;;  %v3498_v38 = vpop.f32.mrb[95].mxu0 }
 0x1b2   :  { %v2289_v62 = vadd.f32 %v3496_v47, %v4690_v18  ;;  %v3499_v40 = vadd.f32 %v3498_v38, %v3497_v34  ;;  %v3562_v41 = vpop.f32.mrb[95].mxu1 }
 0x1b3   :  { %v3563_v8 = vadd.f32 %v3562_v41, %v3561_v57 }
 0x1b4   :  { %v4738_v43 = vadd.f32 %v3560_v35, %v2289_v62  ;;  %v2292_v29 = vadd.f32 %v3499_v40, %v4693_v53 }
 0x1b6   :  { %v4741_v2 = vadd.f32 %v3563_v8, %v2292_v29  ;;  %v3580_v44 = vpop.f32.mrb[96].mxu0 }
 0x1b7   :  { %v3644_v45 = vpop.f32.mrb[96].mxu1  ;;  %v3581_v9 = vpop.f32.mrb[97].mxu0 }
 0x1b8   :  { %v3582_v3 = vadd.f32 %v3581_v9, %v3580_v44  ;;  %v3645_v50 = vpop.f32.mrb[97].mxu1  ;;  %v3583_v52 = vpop.f32.mrb[98].mxu0 }
 0x1b9   :  { %v3646_v56 = vadd.f32 %v3645_v50, %v3644_v45  ;;  %v3647_v13 = vpop.f32.mrb[98].mxu1  ;;  %v3584_v59 = vpop.f32.mrb[99].mxu0 }
 0x1ba   :  { %v2427_v18 = vadd.f32 %v3582_v3, %v4696_v36  ;;  %v3585_v60 = vadd.f32 %v3584_v59, %v3583_v52  ;;  %v3648_v61 = vpop.f32.mrb[99].mxu1 }
 0x1bb   :  { %v3649_v23 = vadd.f32 %v3648_v61, %v3647_v13 }
 0x1bc   :  { %v4744_v63 = vadd.f32 %v3646_v56, %v2427_v18  ;;  %v2430_v53 = vadd.f32 %v3585_v60, %v4699_v5 }
 0x1be   :  { %v4747_v24 = vadd.f32 %v3649_v23, %v2430_v53  ;;  %v3586_v0 = vpop.f32.mrb[100].mxu0  ;;  %v2607_v5 = vmul.f32 %v4744_v63, %v4744_v63 }
 0x1bf   :  { %v3650_v1 = vpop.f32.mrb[100].mxu1  ;;  %v3587_v31 = vpop.f32.mrb[101].mxu0 }
 0x1c0   :  { %v3588_v49 = vadd.f32 %v3587_v31, %v3586_v0  ;;  %v3651_v6 = vpop.f32.mrb[101].mxu1  ;;  %v3589_v10 = vpop.f32.mrb[102].mxu0  ;;  %v2608_v36 = vmul.f32 %v4747_v24, %v4747_v24  ;;  %v2586_v42 = vadd.f32 %v4747_v24, %v4744_v63 }
 0x1c1   :  { %v3652_v12 = vadd.f32 %v3651_v6, %v3650_v1  ;;  %v3653_v30 = vpop.f32.mrb[102].mxu1  ;;  %v3590_v15 = vpop.f32.mrb[103].mxu0 }
 0x1c2   :  { %v2435_v16 = vadd.f32 %v3588_v49, %v4702_v58  ;;  %v3591_v17 = vadd.f32 %v3590_v15, %v3589_v10  ;;  %v3654_v39 = vpop.f32.mrb[103].mxu1  ;;  %v2623_v55 = vadd.f32 %v2608_v36, %v2607_v5 }
 0x1c3   :  { %v3655_v19 = vadd.f32 %v3654_v39, %v3653_v30 }
 0x1c4   :  { %v4756_v20 = vadd.f32 %v3652_v12, %v2435_v16  ;;  %v2438_v22 = vadd.f32 %v3591_v17, %v4705_v21 }
 0x1c6   :  { %v2587_v7 = vadd.f32 %v2586_v42, %v4756_v20  ;;  %v2609_v26 = vmul.f32 %v4756_v20, %v4756_v20  ;;  %v4762_v58 = vadd.f32 %v3655_v19, %v2438_v22  ;;  %v3592_v27 = vpop.f32.mrb[104].mxu0 }
 0x1c7   :  { %v3656_v51 = vpop.f32.mrb[104].mxu1  ;;  %v3593_v47 = vpop.f32.mrb[105].mxu0 }
 0x1c8   :  { %v2624_v33 = vadd.f32 %v2623_v55, %v2609_v26  ;;  %v2588_v34 = vadd.f32 %v2587_v7, %v4762_v58  ;;  %v2610_v35 = vmul.f32 %v4762_v58, %v4762_v58  ;;  %v3594_v57 = vadd.f32 %v3593_v47, %v3592_v27  ;;  %v3657_v38 = vpop.f32.mrb[105].mxu1  ;;  %v3595_v21 = vpop.f32.mrb[106].mxu0 }
 0x1c9   :  { %v3658_v62 = vadd.f32 %v3657_v38, %v3656_v51  ;;  %v3659_v40 = vpop.f32.mrb[106].mxu1  ;;  %v3596_v41 = vpop.f32.mrb[107].mxu0 }
 0x1ca   :  { %v2625_v8 = vadd.f32 %v2624_v33, %v2610_v35  ;;  %v2443_v29 = vadd.f32 %v3594_v57, %v4708_v14  ;;  %v3597_v44 = vadd.f32 %v3596_v41, %v3595_v21  ;;  %v3660_v45 = vpop.f32.mrb[107].mxu1 }
 0x1cb   :  { %v3661_v9 = vadd.f32 %v3660_v45, %v3659_v40 }
 0x1cc   :  { %v4768_v3 = vadd.f32 %v3658_v62, %v2443_v29  ;;  %v2446_v50 = vadd.f32 %v3597_v44, %v4711_v37 }
 0x1ce   :  { %v2589_v52 = vadd.f32 %v2588_v34, %v4768_v3  ;;  %v2611_v56 = vmul.f32 %v4768_v3, %v4768_v3  ;;  %v4774_v13 = vadd.f32 %v3661_v9, %v2446_v50  ;;  %v3598_v59 = vpop.f32.mrb[108].mxu0 }
 0x1cf   :  { %v3662_v18 = vpop.f32.mrb[108].mxu1  ;;  %v3599_v60 = vpop.f32.mrb[109].mxu0 }
 0x1d0   :  { %v2626_v61 = vadd.f32 %v2625_v8, %v2611_v56  ;;  %v2590_v14 = vadd.f32 %v2589_v52, %v4774_v13  ;;  %v2612_v23 = vmul.f32 %v4774_v13, %v4774_v13  ;;  %v3600_v53 = vadd.f32 %v3599_v60, %v3598_v59  ;;  %v3663_v0 = vpop.f32.mrb[109].mxu1  ;;  %v3601_v1 = vpop.f32.mrb[110].mxu0 }
 0x1d1   :  { %v3664_v37 = vadd.f32 %v3663_v0, %v3662_v18  ;;  %v3665_v31 = vpop.f32.mrb[110].mxu1  ;;  %v3602_v49 = vpop.f32.mrb[111].mxu0 }
 0x1d2   :  { %v2627_v6 = vadd.f32 %v2626_v61, %v2612_v23  ;;  %v2451_v10 = vadd.f32 %v3600_v53, %v4714_v32  ;;  %v3603_v12 = vadd.f32 %v3602_v49, %v3601_v1  ;;  %v3666_v30 = vpop.f32.mrb[111].mxu1 }
 0x1d3   :  { %v3667_v15 = vadd.f32 %v3666_v30, %v3665_v31 }
 0x1d4   :  { %v4780_v36 = vadd.f32 %v3664_v37, %v2451_v10  ;;  %v2454_v16 = vadd.f32 %v3603_v12, %v4717_v54 }
 0x1d6   :  { %v2591_v17 = vadd.f32 %v2590_v14, %v4780_v36  ;;  %v2613_v39 = vmul.f32 %v4780_v36, %v4780_v36  ;;  %v4786_v19 = vadd.f32 %v3667_v15, %v2454_v16  ;;  %v3604_v5 = vpop.f32.mrb[112].mxu0 }
 0x1d7   :  { %v3668_v42 = vpop.f32.mrb[112].mxu1  ;;  %v3605_v22 = vpop.f32.mrb[113].mxu0 }
 0x1d8   :  { %v2628_v55 = vadd.f32 %v2627_v6, %v2613_v39  ;;  %v2592_v32 = vadd.f32 %v2591_v17, %v4786_v19  ;;  %v2614_v7 = vmul.f32 %v4786_v19, %v4786_v19  ;;  %v3606_v26 = vadd.f32 %v3605_v22, %v3604_v5  ;;  %v3669_v27 = vpop.f32.mrb[113].mxu1  ;;  %v3607_v51 = vpop.f32.mrb[114].mxu0 }
 0x1d9   :  { %v3670_v54 = vadd.f32 %v3669_v27, %v3668_v42  ;;  %v3671_v47 = vpop.f32.mrb[114].mxu1  ;;  %v3608_v33 = vpop.f32.mrb[115].mxu0 }
 0x1da   :  { %v2629_v34 = vadd.f32 %v2628_v55, %v2614_v7  ;;  %v2459_v35 = vadd.f32 %v3606_v26, %v4720_v48  ;;  %v3609_v57 = vadd.f32 %v3608_v33, %v3607_v51  ;;  %v3672_v38 = vpop.f32.mrb[115].mxu1 }
 0x1db   :  { %v3673_v21 = vadd.f32 %v3672_v38, %v3671_v47 }
 0x1dc   :  { %v4792_v62 = vadd.f32 %v3670_v54, %v2459_v35  ;;  %v2462_v40 = vadd.f32 %v3609_v57, %v4723_v11 }
 0x1de   :  { %v2593_v41 = vadd.f32 %v2592_v32, %v4792_v62  ;;  %v2615_v8 = vmul.f32 %v4792_v62, %v4792_v62  ;;  %v4798_v29 = vadd.f32 %v3673_v21, %v2462_v40  ;;  %v3610_v44 = vpop.f32.mrb[116].mxu0 }
 0x1df   :  { %v3674_v45 = vpop.f32.mrb[116].mxu1  ;;  %v3611_v9 = vpop.f32.mrb[117].mxu0 }
 0x1e0   :  { %v2630_v50 = vadd.f32 %v2629_v34, %v2615_v8  ;;  %v2594_v48 = vadd.f32 %v2593_v41, %v4798_v29  ;;  %v2616_v52 = vmul.f32 %v4798_v29, %v4798_v29  ;;  %v3612_v56 = vadd.f32 %v3611_v9, %v3610_v44  ;;  %v3675_v59 = vpop.f32.mrb[117].mxu1  ;;  %v3613_v18 = vpop.f32.mrb[118].mxu0 }
 0x1e1   :  { %v3676_v11 = vadd.f32 %v3675_v59, %v3674_v45  ;;  %v3677_v60 = vpop.f32.mrb[118].mxu1  ;;  %v3614_v61 = vpop.f32.mrb[119].mxu0 }
 0x1e2   :  { %v2631_v14 = vadd.f32 %v2630_v50, %v2616_v52  ;;  %v2467_v23 = vadd.f32 %v3612_v56, %v4726_v4  ;;  %v3615_v53 = vadd.f32 %v3614_v61, %v3613_v18  ;;  %v3678_v0 = vpop.f32.mrb[119].mxu1 }
 0x1e3   :  { %v3679_v1 = vadd.f32 %v3678_v0, %v3677_v60 }
 0x1e4   :  { %v4804_v37 = vadd.f32 %v3676_v11, %v2467_v23  ;;  %v2470_v31 = vadd.f32 %v3615_v53, %v4729_v28 }
 0x1e6   :  { %v2595_v49 = vadd.f32 %v2594_v48, %v4804_v37  ;;  %v2617_v6 = vmul.f32 %v4804_v37, %v4804_v37  ;;  %v4810_v10 = vadd.f32 %v3679_v1, %v2470_v31  ;;  %v3616_v12 = vpop.f32.mrb[120].mxu0 }
 0x1e7   :  { %v3680_v30 = vpop.f32.mrb[120].mxu1  ;;  %v3617_v15 = vpop.f32.mrb[121].mxu0 }
 0x1e8   :  { %v2632_v16 = vadd.f32 %v2631_v14, %v2617_v6  ;;  %v2596_v4 = vadd.f32 %v2595_v49, %v4810_v10  ;;  %v2618_v17 = vmul.f32 %v4810_v10, %v4810_v10  ;;  %v3618_v39 = vadd.f32 %v3617_v15, %v3616_v12  ;;  %v3681_v5 = vpop.f32.mrb[121].mxu1  ;;  %v3619_v42 = vpop.f32.mrb[122].mxu0 }
 0x1e9   :  { %v3682_v28 = vadd.f32 %v3681_v5, %v3680_v30  ;;  %v3683_v22 = vpop.f32.mrb[122].mxu1  ;;  %v3620_v55 = vpop.f32.mrb[123].mxu0 }
 0x1ea   :  { %v2633_v32 = vadd.f32 %v2632_v16, %v2618_v17  ;;  %v2475_v7 = vadd.f32 %v3618_v39, %v4732_v25  ;;  %v3621_v26 = vadd.f32 %v3620_v55, %v3619_v42  ;;  %v3684_v27 = vpop.f32.mrb[123].mxu1 }
 0x1eb   :  { %v3685_v51 = vadd.f32 %v3684_v27, %v3683_v22 }
 0x1ec   :  { %v4816_v54 = vadd.f32 %v3682_v28, %v2475_v7  ;;  %v2478_v47 = vadd.f32 %v3621_v26, %v4735_v46 }
 0x1ee   :  { %v2597_v33 = vadd.f32 %v2596_v4, %v4816_v54  ;;  %v2619_v34 = vmul.f32 %v4816_v54, %v4816_v54  ;;  %v4822_v35 = vadd.f32 %v3685_v51, %v2478_v47  ;;  %v3622_v57 = vpop.f32.mrb[124].mxu0 }
 0x1ef   :  { %v3686_v38 = vpop.f32.mrb[124].mxu1  ;;  %v3623_v21 = vpop.f32.mrb[125].mxu0 }
 0x1f0   :  { %v2634_v40 = vadd.f32 %v2633_v32, %v2619_v34  ;;  %v2598_v25 = vadd.f32 %v2597_v33, %v4822_v35  ;;  %v2620_v41 = vmul.f32 %v4822_v35, %v4822_v35  ;;  %v3624_v8 = vadd.f32 %v3623_v21, %v3622_v57  ;;  %v3687_v44 = vpop.f32.mrb[125].mxu1  ;;  %v3625_v45 = vpop.f32.mrb[126].mxu0 }
 0x1f1   :  { %v3688_v46 = vadd.f32 %v3687_v44, %v3686_v38  ;;  %v3689_v9 = vpop.f32.mrb[126].mxu1  ;;  %v3626_v50 = vpop.f32.mrb[127].mxu0 }
 0x1f2   :  { %v2635_v48 = vadd.f32 %v2634_v40, %v2620_v41  ;;  %v2483_v52 = vadd.f32 %v3624_v8, %v4738_v43  ;;  %v3627_v56 = vadd.f32 %v3626_v50, %v3625_v45  ;;  %v3690_v59 = vpop.f32.mrb[127].mxu1 }
 0x1f3   :  { %v3691_v18 = vadd.f32 %v3690_v59, %v3689_v9 }
 0x1f4   :  { %v4828_v11 = vadd.f32 %v3688_v46, %v2483_v52  ;;  %v2486_v60 = vadd.f32 %v3627_v56, %v4741_v2  ;;  %v3100_v52 = vld [vmem:[%s4904_s3] ss:$0 sm:$0xff] }
 0x1f6   :  { %v2599_v61 = vadd.f32 %v2598_v25, %v4828_v11  ;;  %v2621_v14 = vmul.f32 %v4828_v11, %v4828_v11  ;;  %v4834_v23 = vadd.f32 %v3691_v18, %v2486_v60 }
 0x1f8   :  { %v2636_v53 = vadd.f32 %v2635_v48, %v2621_v14  ;;  %v2600_v0 = vadd.f32 %v2599_v61, %v4834_v23  ;;  %v2622_v43 = vmul.f32 %v4834_v23, %v4834_v23 }
 0x1fa   :  { %v2601_v1 = vrot.slane %v2600_v0, 4  ;;  %v2637_v31 = vadd.f32 %v2636_v53, %v2622_v43 }
 0x1fc   :  { %v2602_v49 = vadd.f32 %v2601_v1, %v2600_v0  ;;  %v2638_v6 = vrot.slane %v2637_v31, 4 }
 0x1fe   :  { %v2603_v12 = vrot.slane %v2602_v49, 2  ;;  %v2639_v30 = vadd.f32 %v2638_v6, %v2637_v31 }
 0x200   :  { %v2604_v2 = vadd.f32 %v2603_v12, %v2602_v49  ;;  %v2640_v15 = vrot.slane %v2639_v30, 2 }
 0x202   :  { %v2605_v16 = vrot.slane %v2604_v2, 1  ;;  %v2641_v4 = vadd.f32 %v2640_v15, %v2639_v30 }
 0x204   :  { %v2606_v17 = vadd.f32 %v2605_v16, %v2604_v2  ;;  %v2642_v39 = vrot.slane %v2641_v4, 1 }
 0x206   :  { %v2643_v5 = vadd.f32 %v2642_v39, %v2641_v4  ;;  %v2644_v42 = vmul.f32 0.0078125, %v2606_v17 }
 0x208   :  { %v2645_v28 = vmul.f32 0.0078125, %v2643_v5  ;;  %v2646_v22 = vmul.f32 %v2644_v42, %v2644_v42  ;;  %v2655_v55 = vsub.f32 %v4756_v20, %v2644_v42  ;;  %v2656_v32 = vsub.f32 %v4762_v58, %v2644_v42 }
 0x209   :  { %v2657_v7 = vsub.f32 %v4768_v3, %v2644_v42  ;;  %v2658_v26 = vsub.f32 %v4774_v13, %v2644_v42  ;;  %v2659_v51 = vsub.f32 %v4780_v36, %v2644_v42  ;;  %v2660_v47 = vsub.f32 %v4786_v19, %v2644_v42 }
 0x20a   :  { %v2647_v27 = vsub.f32 %v2645_v28, %v2646_v22  ;;  %v2661_v33 = vsub.f32 %v4792_v62, %v2644_v42  ;;  %v2662_v34 = vsub.f32 %v4798_v29, %v2644_v42  ;;  %v2663_v57 = vsub.f32 %v4804_v37, %v2644_v42  ;;  %v2651_v62 = vld [vmem:[%s4903_s2] sm:$0x1] }
 0x20b   :  { %v2664_v38 = vsub.f32 %v4810_v10, %v2644_v42  ;;  %v2665_v20 = vsub.f32 %v4816_v54, %v2644_v42  ;;  %v2666_v3 = vsub.f32 %v4822_v35, %v2644_v42  ;;  %v2667_v13 = vsub.f32 %v4828_v11, %v2644_v42 }
 0x20c   :  { %v2648_v58 = vmax.f32 %v2647_v27, 0.0  ;;  %v2668_v21 = vsub.f32 %v4834_v23, %v2644_v42  ;;  %v2669_v19 = vlaneseq  ;;  %v2653_v54 = vsub.f32 %v4744_v63, %v2644_v42 }
 0x20d   :  { %v2654_v25 = vsub.f32 %v4747_v24, %v2644_v42 }
 0x20e   :  { %v2649_v36 = vadd.f32 1e-05, %v2648_v58  ;;  %v2670_v40 = vshrl.u32 %v2669_v19, 7 }
 0x210   :  { %3820 = vrsqrt.f32 %v2649_v36  ;;  %v2671_v29 = vsub.s32 0, %v2670_v40 }
 0x21a   :  { %v3821_v37 = vpop.eup %3820 }
 0x21b   :  { %v2652_v10 = vmul.f32 %v3821_v37, %v2651_v62 }
 0x21d   :  { %v2672_v35 = vrot.slane %v2652_v10, %v2671_v29 }
 0x21f   :  { %v2673_v41 = vmul.f32 %v2672_v35, %v2653_v54  ;;  %v2674_v8 = vmul.f32 %v2672_v35, %v2654_v25  ;;  %v2675_v44 = vmul.f32 %v2672_v35, %v2655_v55  ;;  %v2676_v45 = vmul.f32 %v2672_v35, %v2656_v32 }
 0x220   :  { %v2677_v46 = vmul.f32 %v2672_v35, %v2657_v7  ;;  %v2678_v9 = vmul.f32 %v2672_v35, %v2658_v26  ;;  %v2679_v50 = vmul.f32 %v2672_v35, %v2659_v51  ;;  %v2680_v48 = vmul.f32 %v2672_v35, %v2660_v47 }
 0x221   :  { %v2681_v56 = vmul.f32 %v2672_v35, %v2661_v33  ;;  %v2682_v59 = vmul.f32 %v2672_v35, %v2662_v34  ;;  %v2683_v18 = vmul.f32 %v2672_v35, %v2663_v57  ;;  %v2684_v11 = vmul.f32 %v2672_v35, %v2664_v38 }
 0x222   :  { %v2685_v63 = vmul.f32 %v2672_v35, %v2665_v20  ;;  %v2686_v60 = vmul.f32 %v2672_v35, %v2666_v3  ;;  %v2687_v24 = vmul.f32 %v2672_v35, %v2667_v13  ;;  %v2688_v61 = vmul.f32 %v2672_v35, %v2668_v21 }
 0x223   :  { %v2696_v14 = vadd.f32 %v3100_v52, %v2673_v41  ;;  %v2697_v23 = vadd.f32 %v3100_v52, %v2674_v8  ;;  %v2698_v53 = vadd.f32 %v3100_v52, %v2675_v44  ;;  %v2699_v0 = vadd.f32 %v3100_v52, %v2676_v45 }
 0x224   :  { %v2700_v43 = vadd.f32 %v3100_v52, %v2677_v46  ;;  %v2701_v1 = vadd.f32 %v3100_v52, %v2678_v9  ;;  %v2702_v31 = vadd.f32 %v3100_v52, %v2679_v50  ;;  %v2703_v49 = vadd.f32 %v3100_v52, %v2680_v48 }
 0x225   :  { %v2704_v6 = vadd.f32 %v3100_v52, %v2681_v56  ;;  %v2705_v12 = vadd.f32 %v3100_v52, %v2682_v59  ;;  %v2706_v30 = vadd.f32 %v3100_v52, %v2683_v18  ;;  %v2707_v2 = vadd.f32 %v3100_v52, %v2684_v11 }
 0x226   :  { %v2708_v15 = vadd.f32 %v3100_v52, %v2685_v63  ;;  %v2709_v16 = vadd.f32 %v3100_v52, %v2686_v60  ;;  %v2710_v4 = vadd.f32 %v3100_v52, %v2687_v24  ;;  %v2711_v17 = vadd.f32 %v3100_v52, %v2688_v61 }
 0x227   :  { %vm2712_vm0 = vcmp.gt.f32.partialorder %v2696_v14, 0.0  ;;  %vm2713_vm1 = vcmp.gt.f32.partialorder %v2697_v23, 0.0  ;;  %vm2714_vm2 = vcmp.gt.f32.partialorder %v2698_v53, 0.0  ;;  %vm2715_vm3 = vcmp.gt.f32.partialorder %v2699_v0, 0.0 }
 0x228   :  { %vm2716_vm4 = vcmp.gt.f32.partialorder %v2700_v43, 0.0  ;;  %vm2717_vm5 = vcmp.gt.f32.partialorder %v2701_v1, 0.0  ;;  %vm2718_vm6 = vcmp.gt.f32.partialorder %v2702_v31, 0.0  ;;  %vm2719_vm7 = vcmp.gt.f32.partialorder %v2703_v49, 0.0 }
 0x229   :  { %vm2720_vm8 = vcmp.gt.f32.partialorder %v2704_v6, 0.0  ;;  %vm2721_vm9 = vcmp.gt.f32.partialorder %v2705_v12, 0.0  ;;  %vm2722_vm10 = vcmp.gt.f32.partialorder %v2706_v30, 0.0  ;;  %vm2723_vm11 = vcmp.gt.f32.partialorder %v2707_v2, 0.0 }
 0x22a   :  { %vm2724_vm12 = vcmp.gt.f32.partialorder %v2708_v15, 0.0  ;;  %vm2725_vm13 = vcmp.gt.f32.partialorder %v2709_v16, 0.0  ;;  %vm2726_vm14 = vcmp.gt.f32.partialorder %v2710_v4, 0.0  ;;  %vm2727_vm15 = vcmp.gt.f32.partialorder %v2711_v17, 0.0 }
 0x22b   :  { %v2728_v39 = vmul.f32 0.2, %v2696_v14  ;;  %v2729_v5 = vmul.f32 0.2, %v2697_v23  ;;  %v2730_v42 = vmul.f32 0.2, %v2698_v53 }
 0x22c   :  { %v2731_v28 = vmul.f32 0.2, %v2699_v0  ;;  %v2732_v22 = vmul.f32 0.2, %v2700_v43  ;;  %v2733_v55 = vmul.f32 0.2, %v2701_v1 }
 0x22d   :  { %v2734_v32 = vmul.f32 0.2, %v2702_v31  ;;  %v2735_v7 = vmul.f32 0.2, %v2703_v49  ;;  %v2736_v26 = vmul.f32 0.2, %v2704_v6  ;;  %v2744_v27 = vsel %vm2712_vm0, %v2696_v14, %v2728_v39 }
 0x22e   :  { %v2737_v51 = vmul.f32 0.2, %v2705_v12  ;;  %v2738_v47 = vmul.f32 0.2, %v2706_v30  ;;  %v2739_v33 = vmul.f32 0.2, %v2707_v2  ;;  %v2745_v34 = vsel %vm2713_vm1, %v2697_v23, %v2729_v5 }
 0x22f   :  { %v2740_v57 = vmul.f32 0.2, %v2708_v15  ;;  %v2741_v38 = vmul.f32 0.2, %v2709_v16  ;;  %v2742_v20 = vmul.f32 0.2, %v2710_v4  ;;  %v2746_v58 = vsel %vm2714_vm2, %v2698_v53, %v2730_v42 }
 0x230   :  { %v2743_v3 = vmul.f32 0.2, %v2711_v17  ;;  %v2747_v13 = vsel %vm2715_vm3, %v2699_v0, %v2731_v28  ;;  %v2748_v21 = vsel %vm2716_vm4, %v2700_v43, %v2732_v22  ;;  %v2749_v36 = vsel %vm2717_vm5, %v2701_v1, %v2733_v55 }
 0x231   :  { %v2750_v19 = vsel %vm2718_vm6, %v2702_v31, %v2734_v32  ;;  %v2751_v40 = vsel %vm2719_vm7, %v2703_v49, %v2735_v7  ;;  %v2752_v62 = vsel %vm2720_vm8, %v2704_v6, %v2736_v26  ;;  %v2753_v29 = vsel %vm2721_vm9, %v2705_v12, %v2737_v51 }
 0x232   :  { %v2754_v37 = vsel %vm2722_vm10, %v2706_v30, %v2738_v47  ;;  %v2755_v10 = vsel %vm2723_vm11, %v2707_v2, %v2739_v33  ;;  %v2756_v54 = vsel %vm2724_vm12, %v2708_v15, %v2740_v57  ;;  %v2757_v25 = vsel %vm2725_vm13, %v2709_v16, %v2741_v38 }
 0x233   :  { %v2758_v35 = vsel %vm2726_vm14, %v2710_v4, %v2742_v20  ;;  %v2759_v41 = vsel %vm2727_vm15, %v2711_v17, %v2743_v3  ;;  %v3136_v8 = vpack.c.bf16 %v2745_v34, %v2744_v27  ;;  %v3141_v44 = vpack.c.bf16 %v2747_v13, %v2746_v58 }
 0x234   :  { %v3146_v45 = vpack.c.bf16 %v2749_v36, %v2748_v21  ;;  %v3151_v46 = vpack.c.bf16 %v2751_v40, %v2750_v19  ;;  %v3156_v9 = vpack.c.bf16 %v2753_v29, %v2752_v62  ;;  %v3161_v50 = vpack.c.bf16 %v2755_v10, %v2754_v37 }
 0x235   :  { %3137 = vst [vmem:[%s4905_s4] sm:$0xff] %v3136_v8   ;;  %3173 = vst [vmem:[%s4905_s4 + $0x8] sm:$0xff] %v3141_v44   ;;  %v3166_v48 = vpack.c.bf16 %v2757_v25, %v2756_v54  ;;  %v3171_v52 = vpack.c.bf16 %v2759_v41, %v2758_v35 }
 0x236   :  { %3174 = vst [vmem:[%s4905_s4 + $0x10] sm:$0xff] %v3146_v45   ;;  %3175 = vst [vmem:[%s4905_s4 + $0x18] sm:$0xff] %v3151_v46  }
 0x237   :  { %3176 = vst [vmem:[%s4905_s4 + $0x20] sm:$0xff] %v3156_v9   ;;  %3177 = vst [vmem:[%s4905_s4 + $0x28] sm:$0xff] %v3161_v50  }
 0x238   :  { %3178 = vst [vmem:[%s4905_s4 + $0x30] sm:$0xff] %v3166_v48   ;;  %3179 = vst [vmem:[%s4905_s4 + $0x38] sm:$0xff] %v3171_v52  }

// kernel: discriminator_forward.7
= control target key start
LH: loop header
LB: loop body
LE: loop exit
PB: predicated region body
PF: predicated region fallthrough
CT: control target
= control target key end

     0   :  { %s2773_s1 = inlined_call_operand.vmem [shape: bf16[2048,128], index: 1, kind: input, shape index: {}]   ;;  %s2774_s0 = inlined_call_operand.vmem [shape: bf16[32,2048], index: 0, kind: input, shape index: {}]   ;;  %s2775_s2 = inlined_call_operand.vmem [shape: f32[1,128], index: 2, kind: input, shape index: {}]   ;;  %s2776_s3 = inlined_call_operand.vmem [shape: f32[1,128], index: 3, kind: input, shape index: {}]   ;;  %s2777_s4 = inlined_call_operand.vmem [shape: bf16[32,128], index: 4, kind: output, shape index: {}]  }
   0x1   :  { %v2120_v0 = vld [vmem:[%s2773_s1 + $0x40] sm:$0xff]   ;;  %v2124_v4 = vld [vmem:[%s2773_s1 + $0x48] sm:$0xff]   ;;  %v2128_v8 = vld [vmem:[%s2773_s1 + $0x50] sm:$0xff]  }
   0x2   :  { %v2121_v1 = vld [vmem:[%s2773_s1 + $0xc0] sm:$0xff]   ;;  %1896 = vmatprep.subr.bf16.mxu0 %v2120_v0  ;;  %v2125_v5 = vld [vmem:[%s2773_s1 + $0xc8] sm:$0xff]   ;;  %v2129_v9 = vld [vmem:[%s2773_s1 + $0xd0] sm:$0xff]  }
   0x3   :  { %v2122_v2 = vld [vmem:[%s2773_s1] sm:$0xff]   ;;  %1924 = vmatprep.subr.bf16.mxu1 %v2121_v1  ;;  %v2126_v6 = vld [vmem:[%s2773_s1 + $0x8] sm:$0xff]   ;;  %v2130_v10 = vld [vmem:[%s2773_s1 + $0x10] sm:$0xff]  }
   0x4   :  { %v2123_v3 = vld [vmem:[%s2773_s1 + $0x80] sm:$0xff]   ;;  %1897 = vmatpush3.bf16.msra.mxu0 %v2122_v2  ;;  %v2127_v7 = vld [vmem:[%s2773_s1 + $0x88] sm:$0xff]   ;;  %v2131_v11 = vld [vmem:[%s2773_s1 + $0x90] sm:$0xff]  }
   0x5   :  { %1925 = vmatpush3.bf16.msra.mxu1 %v2123_v3  ;;  %1898 = vmatprep.subr.bf16.mxu0 %v2124_v4  ;;  %v2132_v12 = vld [vmem:[%s2773_s1 + $0x58] sm:$0xff]   ;;  %v2136_v16 = vld [vmem:[%s2773_s1 + $0x60] sm:$0xff]   ;;  %v2140_v20 = vld [vmem:[%s2773_s1 + $0x68] sm:$0xff]  }
   0x6   :  { %1926 = vmatprep.subr.bf16.mxu1 %v2125_v5  ;;  %v2133_v13 = vld [vmem:[%s2773_s1 + $0xd8] sm:$0xff]   ;;  %v2137_v17 = vld [vmem:[%s2773_s1 + $0xe0] sm:$0xff]   ;;  %v2141_v21 = vld [vmem:[%s2773_s1 + $0xe8] sm:$0xff]  }
   0x7   :  { %v2134_v14 = vld [vmem:[%s2773_s1 + $0x18] sm:$0xff]   ;;  %v2138_v18 = vld [vmem:[%s2773_s1 + $0x20] sm:$0xff]   ;;  %v2142_v22 = vld [vmem:[%s2773_s1 + $0x28] sm:$0xff]  }
   0x8   :  { %1899 = vmatpush3.bf16.msra.mxu0 %v2126_v6  ;;  %v2135_v15 = vld [vmem:[%s2773_s1 + $0x98] sm:$0xff]   ;;  %v2139_v19 = vld [vmem:[%s2773_s1 + $0xa0] sm:$0xff]   ;;  %v2143_v23 = vld [vmem:[%s2773_s1 + $0xa8] sm:$0xff]  }
   0x9   :  { %1927 = vmatpush3.bf16.msra.mxu1 %v2127_v7  ;;  %1900 = vmatprep.subr.bf16.mxu0 %v2128_v8  ;;  %v2144_v24 = vld [vmem:[%s2773_s1 + $0x70] sm:$0xff]   ;;  %v2148_v28 = vld [vmem:[%s2773_s1 + $0x78] sm:$0xff]   ;;  %v18_v32 = vld [vmem:[%s2774_s0] sm:$0xff] }
   0xa   :  { %1928 = vmatprep.subr.bf16.mxu1 %v2129_v9  ;;  %v2145_v25 = vld [vmem:[%s2773_s1 + $0xf0] sm:$0xff]   ;;  %v2149_v29 = vld [vmem:[%s2773_s1 + $0xf8] sm:$0xff]   ;;  %v26_v33 = vld [vmem:[%s2774_s0 + $0x40] sm:$0xff] }
   0xb   :  { %v2146_v26 = vld [vmem:[%s2773_s1 + $0x30] sm:$0xff]   ;;  %v2150_v30 = vld [vmem:[%s2773_s1 + $0x38] sm:$0xff]   ;;  %v19_v34 = vld [vmem:[%s2774_s0 + $0x8] sm:$0xff]  ;;  %v1716_v35 = vcombine.low %v18_v32, %v26_v33  ;;  %v1717_v36 = vcombine.high %v18_v32, %v26_v33 }
   0xc   :  { %1901 = vmatpush3.bf16.msra.mxu0 %v2130_v10  ;;  %v2147_v27 = vld [vmem:[%s2773_s1 + $0xb0] sm:$0xff]   ;;  %v2151_v31 = vld [vmem:[%s2773_s1 + $0xb8] sm:$0xff]   ;;  %v27_v37 = vld [vmem:[%s2774_s0 + $0x48] sm:$0xff] }
   0xd   :  { %1929 = vmatpush3.bf16.msra.mxu1 %v2131_v11  ;;  %1902 = vmatprep.subr.bf16.mxu0 %v2132_v12  ;;  %v1718_v38 = vcombine.low %v19_v34, %v27_v37  ;;  %v1719_v39 = vcombine.high %v19_v34, %v27_v37  ;;  %v2152_v40 = vld [vmem:[%s2773_s1 + $0x140] sm:$0xff]   ;;  %v2156_v44 = vld [vmem:[%s2773_s1 + $0x148] sm:$0xff]   ;;  %v2160_v48 = vld [vmem:[%s2773_s1 + $0x150] sm:$0xff]  }
   0xe   :  { %1930 = vmatprep.subr.bf16.mxu1 %v2133_v13  ;;  %1266 = vmatprep.mubr.bf16.mxu0 %v1717_v36  ;;  %v2153_v41 = vld [vmem:[%s2773_s1 + $0x1c0] sm:$0xff]   ;;  %v2157_v45 = vld [vmem:[%s2773_s1 + $0x1c8] sm:$0xff]   ;;  %v2161_v49 = vld [vmem:[%s2773_s1 + $0x1d0] sm:$0xff]  }
   0xf   :  { %1315 = vmatprep.mubr.bf16.mxu1 %v1719_v39  ;;  %v2154_v42 = vld [vmem:[%s2773_s1 + $0x100] sm:$0xff]   ;;  %v2158_v46 = vld [vmem:[%s2773_s1 + $0x108] sm:$0xff]   ;;  %v2162_v50 = vld [vmem:[%s2773_s1 + $0x110] sm:$0xff]  }
  0x10   :  { %1903 = vmatpush3.bf16.msra.mxu0 %v2134_v14  ;;  %v2155_v43 = vld [vmem:[%s2773_s1 + $0x180] sm:$0xff]   ;;  %v2159_v47 = vld [vmem:[%s2773_s1 + $0x188] sm:$0xff]   ;;  %v2163_v51 = vld [vmem:[%s2773_s1 + $0x190] sm:$0xff]  }
  0x11   :  { %1931 = vmatpush3.bf16.msra.mxu1 %v2135_v15  ;;  %1904 = vmatprep.subr.bf16.mxu0 %v2136_v16  ;;  %v2164_v52 = vld [vmem:[%s2773_s1 + $0x158] sm:$0xff]   ;;  %v2168_v56 = vld [vmem:[%s2773_s1 + $0x160] sm:$0xff]   ;;  %v2172_v60 = vld [vmem:[%s2773_s1 + $0x168] sm:$0xff]  }
  0x12   :  { %1932 = vmatprep.subr.bf16.mxu1 %v2137_v17  ;;  %v2165_v53 = vld [vmem:[%s2773_s1 + $0x1d8] sm:$0xff]   ;;  %v2169_v57 = vld [vmem:[%s2773_s1 + $0x1e0] sm:$0xff]   ;;  %v2173_v61 = vld [vmem:[%s2773_s1 + $0x1e8] sm:$0xff]  }
  0x13   :  { %v2166_v54 = vld [vmem:[%s2773_s1 + $0x118] sm:$0xff]   ;;  %v2170_v58 = vld [vmem:[%s2773_s1 + $0x120] sm:$0xff]   ;;  %v35_v1 = vld [vmem:[%s2774_s0 + $0x88] sm:$0xff] }
  0x14   :  { %1905 = vmatpush3.bf16.msra.mxu0 %v2138_v18  ;;  %v2167_v55 = vld [vmem:[%s2773_s1 + $0x198] sm:$0xff]   ;;  %v2171_v59 = vld [vmem:[%s2773_s1 + $0x1a0] sm:$0xff]   ;;  %v43_v2 = vld [vmem:[%s2774_s0 + $0xc8] sm:$0xff] }
  0x15   :  { %1933 = vmatpush3.bf16.msra.mxu1 %v2139_v19  ;;  %1906 = vmatprep.subr.bf16.mxu0 %v2140_v20  ;;  %v34_v62 = vld [vmem:[%s2774_s0 + $0x80] sm:$0xff]  ;;  %v1735_v4 = vcombine.high %v35_v1, %v43_v2  ;;  %v2174_v5 = vld [vmem:[%s2773_s1 + $0x128] sm:$0xff]   ;;  %v1734_v6 = vcombine.low %v35_v1, %v43_v2  ;;  %v2176_v8 = vld [vmem:[%s2773_s1 + $0x170] sm:$0xff]  }
  0x16   :  { %1934 = vmatprep.subr.bf16.mxu1 %v2141_v21  ;;  %v42_v63 = vld [vmem:[%s2774_s0 + $0xc0] sm:$0xff]  ;;  %v2175_v7 = vld [vmem:[%s2773_s1 + $0x1a8] sm:$0xff]   ;;  %v2177_v9 = vld [vmem:[%s2773_s1 + $0x1f0] sm:$0xff]  }
  0x17   :  { %v1733_v0 = vcombine.high %v34_v62, %v42_v63  ;;  %v1732_v3 = vcombine.low %v34_v62, %v42_v63  ;;  %v2178_v10 = vld [vmem:[%s2773_s1 + $0x130] sm:$0xff]   ;;  %v2180_v12 = vld [vmem:[%s2773_s1 + $0x178] sm:$0xff]   ;;  %v30_v1 = vld [vmem:[%s2774_s0 + $0x60] sm:$0xff] }
  0x18   :  { %1907 = vmatpush3.bf16.msra.mxu0 %v2142_v22  ;;  %v2179_v11 = vld [vmem:[%s2773_s1 + $0x1b0] sm:$0xff]   ;;  %v2181_v13 = vld [vmem:[%s2773_s1 + $0x1f8] sm:$0xff]  }
  0x19   :  { %1935 = vmatpush3.bf16.msra.mxu1 %v2143_v23  ;;  %1908 = vmatprep.subr.bf16.mxu0 %v2144_v24  ;;  %v2182_v14 = vld [vmem:[%s2773_s1 + $0x138] sm:$0xff]   ;;  %v20_v16 = vld [vmem:[%s2774_s0 + $0x10] sm:$0xff]  ;;  %v2184_v24 = vld [vmem:[%s2773_s1 + $0x240] sm:$0xff]  }
  0x1a   :  { %1936 = vmatprep.subr.bf16.mxu1 %v2145_v25  ;;  %v2183_v15 = vld [vmem:[%s2773_s1 + $0x1b8] sm:$0xff]   ;;  %v28_v17 = vld [vmem:[%s2774_s0 + $0x50] sm:$0xff]  ;;  %v2185_v25 = vld [vmem:[%s2773_s1 + $0x2c0] sm:$0xff]  }
  0x1b   :  { %v21_v18 = vld [vmem:[%s2774_s0 + $0x18] sm:$0xff]  ;;  %v1720_v20 = vcombine.low %v20_v16, %v28_v17  ;;  %v1721_v21 = vcombine.high %v20_v16, %v28_v17  ;;  %v36_v32 = vld [vmem:[%s2774_s0 + $0x90] sm:$0xff]  ;;  %v38_v16 = vld [vmem:[%s2774_s0 + $0xa0] sm:$0xff] }
  0x1c   :  { %1909 = vmatpush3.bf16.msra.mxu0 %v2146_v26  ;;  %v29_v19 = vld [vmem:[%s2774_s0 + $0x58] sm:$0xff]  ;;  %v2186_v26 = vld [vmem:[%s2773_s1 + $0x200] sm:$0xff]   ;;  %v44_v33 = vld [vmem:[%s2774_s0 + $0xd0] sm:$0xff] }
  0x1d   :  { %1937 = vmatpush3.bf16.msra.mxu1 %v2147_v27  ;;  %1910 = vmatprep.subr.bf16.mxu0 %v2148_v28  ;;  %v1722_v22 = vcombine.low %v21_v18, %v29_v19  ;;  %v1723_v23 = vcombine.high %v21_v18, %v29_v19  ;;  %v2187_v27 = vld [vmem:[%s2773_s1 + $0x280] sm:$0xff]   ;;  %v2188_v28 = vld [vmem:[%s2773_s1 + $0x248] sm:$0xff]   ;;  %v1737_v34 = vcombine.high %v36_v32, %v44_v33  ;;  %v2192_v36 = vld [vmem:[%s2773_s1 + $0x250] sm:$0xff]  }
  0x1e   :  { %1938 = vmatprep.subr.bf16.mxu1 %v2149_v29  ;;  %v2189_v29 = vld [vmem:[%s2773_s1 + $0x2c8] sm:$0xff]   ;;  %v2193_v37 = vld [vmem:[%s2773_s1 + $0x2d0] sm:$0xff]   ;;  %v45_v39 = vld [vmem:[%s2774_s0 + $0xd8] sm:$0xff] }
  0x1f   :  { %v2214_v62 = vld [vmem:[%s2773_s1 + $0x238] sm:$0xff]   ;;  %v46_v17 = vld [vmem:[%s2774_s0 + $0xe0] sm:$0xff] }
  0x20   :  { %1911 = vmatpush3.bf16.msra.mxu0 %v2150_v30  ;;  %v2190_v30 = vld [vmem:[%s2773_s1 + $0x208] sm:$0xff]   ;;  %v2215_v63 = vld [vmem:[%s2773_s1 + $0x2b8] sm:$0xff]   ;;  %v1741_v18 = vcombine.high %v38_v16, %v46_v17  ;;  %v1740_v19 = vcombine.low %v38_v16, %v46_v17 }
  0x21   :  { %1939 = vmatpush3.bf16.msra.mxu1 %v2151_v31  ;;  %1952 = vmatprep.subr.bf16.mxu0 %v2152_v40  ;;  %v2191_v31 = vld [vmem:[%s2773_s1 + $0x288] sm:$0xff]  }
  0x22   :  { %1980 = vmatprep.subr.bf16.mxu1 %v2153_v41  ;;  %v2194_v41 = vld [vmem:[%s2773_s1 + $0x210] sm:$0xff]  }
  0x23   :  { %1267 = vmatmul.mubr.bf16.vlgmr.msra.gmra.mrb[0].mxu0 %v1716_v35  ;;  %v1736_v35 = vcombine.low %v36_v32, %v44_v33  ;;  %v2232_v32 = vld [vmem:[%s2773_s1 + $0x360] sm:$0xff]  }
  0x24   :  { %1316 = vmatmul.mubr.bf16.vlgmr.msra.gmra.mrb[0].mxu1 %v1718_v38  ;;  %1953 = vmatpush3.bf16.msra.mxu0 %v2154_v42  ;;  %v37_v38 = vld [vmem:[%s2774_s0 + $0x98] sm:$0xff]  ;;  %v2233_v33 = vld [vmem:[%s2773_s1 + $0x3e0] sm:$0xff]  }
  0x25   :  { %1981 = vmatpush3.bf16.msra.mxu1 %v2155_v43  ;;  %1954 = vmatprep.subr.bf16.mxu0 %v2156_v44  ;;  %v1739_v40 = vcombine.high %v37_v38, %v45_v39  ;;  %v1738_v42 = vcombine.low %v37_v38, %v45_v39  ;;  %v2195_v43 = vld [vmem:[%s2773_s1 + $0x290] sm:$0xff]   ;;  %v2196_v44 = vld [vmem:[%s2773_s1 + $0x258] sm:$0xff]   ;;  %v2238_v38 = vld [vmem:[%s2773_s1 + $0x328] sm:$0xff]  }
  0x26   :  { %1982 = vmatprep.subr.bf16.mxu1 %v2157_v45  ;;  %1274 = vmatprep.mubr.bf16.mxu0 %v1733_v0  ;;  %v2197_v45 = vld [vmem:[%s2773_s1 + $0x2d8] sm:$0xff]   ;;  %v22_v0 = vld [vmem:[%s2774_s0 + $0x20] sm:$0xff]  ;;  %v2239_v39 = vld [vmem:[%s2773_s1 + $0x3a8] sm:$0xff]  }
  0x27   :  { %1323 = vmatprep.mubr.bf16.mxu1 %v1735_v4  ;;  %v1724_v2 = vcombine.low %v22_v0, %v30_v1  ;;  %v23_v4 = vld [vmem:[%s2774_s0 + $0x28] sm:$0xff] }
  0x28   :  { %1955 = vmatpush3.bf16.msra.mxu0 %v2158_v46  ;;  %v2198_v46 = vld [vmem:[%s2773_s1 + $0x218] sm:$0xff]  }
  0x29   :  { %1983 = vmatpush3.bf16.msra.mxu1 %v2159_v47  ;;  %1956 = vmatprep.subr.bf16.mxu0 %v2160_v48  ;;  %v2199_v47 = vld [vmem:[%s2773_s1 + $0x298] sm:$0xff]   ;;  %v2200_v48 = vld [vmem:[%s2773_s1 + $0x260] sm:$0xff]  }
  0x2a   :  { %1984 = vmatprep.subr.bf16.mxu1 %v2161_v49  ;;  %v2201_v49 = vld [vmem:[%s2773_s1 + $0x2e0] sm:$0xff]  }
  0x2b   :  { %1275 = vmatmul.mubr.bf16.gmra.mrb[4].mxu0 %v1732_v3  ;;  %v1725_v3 = vcombine.high %v22_v0, %v30_v1 }
  0x2c   :  { %1957 = vmatpush3.bf16.msra.mxu0 %v2162_v50  ;;  %1324 = vmatmul.mubr.bf16.gmra.mrb[4].mxu1 %v1734_v6  ;;  %v2202_v50 = vld [vmem:[%s2773_s1 + $0x220] sm:$0xff]  }
  0x2d   :  { %1985 = vmatpush3.bf16.msra.mxu1 %v2163_v51  ;;  %1958 = vmatprep.subr.bf16.mxu0 %v2164_v52  ;;  %v2203_v51 = vld [vmem:[%s2773_s1 + $0x2a0] sm:$0xff]   ;;  %v2204_v52 = vld [vmem:[%s2773_s1 + $0x268] sm:$0xff]  }
  0x2e   :  { %1986 = vmatprep.subr.bf16.mxu1 %v2165_v53  ;;  %1364 = vmatprep.mubr.bf16.mxu0 %v1721_v21  ;;  %v2205_v53 = vld [vmem:[%s2773_s1 + $0x2e8] sm:$0xff]   ;;  %v2225_v21 = vld [vmem:[%s2773_s1 + $0x3d0] sm:$0xff]  }
  0x2f   :  { %1413 = vmatprep.mubr.bf16.mxu1 %v1723_v23  ;;  %v47_v23 = vld [vmem:[%s2774_s0 + $0xe8] sm:$0xff] }
  0x30   :  { %1959 = vmatpush3.bf16.msra.mxu0 %v2166_v54  ;;  %v2206_v54 = vld [vmem:[%s2773_s1 + $0x228] sm:$0xff]  }
  0x31   :  { %1987 = vmatpush3.bf16.msra.mxu1 %v2167_v55  ;;  %1960 = vmatprep.subr.bf16.mxu0 %v2168_v56  ;;  %v2207_v55 = vld [vmem:[%s2773_s1 + $0x2a8] sm:$0xff]   ;;  %v2208_v56 = vld [vmem:[%s2773_s1 + $0x270] sm:$0xff]  }
  0x32   :  { %1988 = vmatprep.subr.bf16.mxu1 %v2169_v57  ;;  %v2209_v57 = vld [vmem:[%s2773_s1 + $0x2f0] sm:$0xff]  }
  0x34   :  { %1961 = vmatpush3.bf16.msra.mxu0 %v2170_v58  ;;  %v2210_v58 = vld [vmem:[%s2773_s1 + $0x230] sm:$0xff]  }
  0x35   :  { %1989 = vmatpush3.bf16.msra.mxu1 %v2171_v59  ;;  %1962 = vmatprep.subr.bf16.mxu0 %v2172_v60  ;;  %v2211_v59 = vld [vmem:[%s2773_s1 + $0x2b0] sm:$0xff]   ;;  %v2212_v60 = vld [vmem:[%s2773_s1 + $0x278] sm:$0xff]  }
  0x36   :  { %1990 = vmatprep.subr.bf16.mxu1 %v2173_v61  ;;  %v2213_v61 = vld [vmem:[%s2773_s1 + $0x2f8] sm:$0xff]  }
  0x38   :  { %1963 = vmatpush3.bf16.msra.mxu0 %v2174_v5  ;;  %v31_v5 = vld [vmem:[%s2774_s0 + $0x68] sm:$0xff] }
  0x39   :  { %1991 = vmatpush3.bf16.msra.mxu1 %v2175_v7  ;;  %1964 = vmatprep.subr.bf16.mxu0 %v2176_v8  ;;  %v1726_v6 = vcombine.low %v23_v4, %v31_v5  ;;  %v1727_v7 = vcombine.high %v23_v4, %v31_v5  ;;  %v2216_v8 = vld [vmem:[%s2773_s1 + $0x340] sm:$0xff]  }
  0x3a   :  { %1992 = vmatprep.subr.bf16.mxu1 %v2177_v9  ;;  %v2217_v9 = vld [vmem:[%s2773_s1 + $0x3c0] sm:$0xff]  }
  0x3c   :  { %1965 = vmatpush3.bf16.msra.mxu0 %v2178_v10  ;;  %v2218_v10 = vld [vmem:[%s2773_s1 + $0x300] sm:$0xff]  }
  0x3d   :  { %1993 = vmatpush3.bf16.msra.mxu1 %v2179_v11  ;;  %1966 = vmatprep.subr.bf16.mxu0 %v2180_v12  ;;  %v2219_v11 = vld [vmem:[%s2773_s1 + $0x380] sm:$0xff]   ;;  %v2220_v12 = vld [vmem:[%s2773_s1 + $0x348] sm:$0xff]  }
  0x3e   :  { %1994 = vmatprep.subr.bf16.mxu1 %v2181_v13  ;;  %v2221_v13 = vld [vmem:[%s2773_s1 + $0x3c8] sm:$0xff]  }
  0x40   :  { %1967 = vmatpush3.bf16.msra.mxu0 %v2182_v14  ;;  %v2222_v14 = vld [vmem:[%s2773_s1 + $0x308] sm:$0xff]  }
  0x41   :  { %1995 = vmatpush3.bf16.msra.mxu1 %v2183_v15  ;;  %2008 = vmatprep.subr.bf16.mxu0 %v2184_v24  ;;  %v2223_v15 = vld [vmem:[%s2773_s1 + $0x388] sm:$0xff]  }
  0x42   :  { %2036 = vmatprep.subr.bf16.mxu1 %v2185_v25  ;;  %v2226_v25 = vld [vmem:[%s2773_s1 + $0x310] sm:$0xff]  }
  0x43   :  { %1365 = vmatmul.mubr.bf16.vlgmr.msra.gmra.mrb[8].mxu0 %v1720_v20  ;;  %v2224_v20 = vld [vmem:[%s2773_s1 + $0x350] sm:$0xff]  }
  0x44   :  { %1414 = vmatmul.mubr.bf16.vlgmr.msra.gmra.mrb[8].mxu1 %v1722_v22  ;;  %2009 = vmatpush3.bf16.msra.mxu0 %v2186_v26  ;;  %v39_v22 = vld [vmem:[%s2774_s0 + $0xa8] sm:$0xff] }
  0x45   :  { %2037 = vmatpush3.bf16.msra.mxu1 %v2187_v27  ;;  %2010 = vmatprep.subr.bf16.mxu0 %v2188_v28  ;;  %v1743_v24 = vcombine.high %v39_v22, %v47_v23  ;;  %v1742_v26 = vcombine.low %v39_v22, %v47_v23  ;;  %v2227_v27 = vld [vmem:[%s2773_s1 + $0x390] sm:$0xff]   ;;  %v2228_v28 = vld [vmem:[%s2773_s1 + $0x358] sm:$0xff]  }
  0x46   :  { %2038 = vmatprep.subr.bf16.mxu1 %v2189_v29  ;;  %1372 = vmatprep.mubr.bf16.mxu0 %v1737_v34  ;;  %v2229_v29 = vld [vmem:[%s2773_s1 + $0x3d8] sm:$0xff]   ;;  %v2234_v34 = vld [vmem:[%s2773_s1 + $0x320] sm:$0xff]  }
  0x47   :  { %1421 = vmatprep.mubr.bf16.mxu1 %v1739_v40  ;;  %v2240_v40 = vld [vmem:[%s2773_s1 + $0x370] sm:$0xff]  }
  0x48   :  { %2011 = vmatpush3.bf16.msra.mxu0 %v2190_v30  ;;  %v2230_v30 = vld [vmem:[%s2773_s1 + $0x318] sm:$0xff]  }
  0x49   :  { %2039 = vmatpush3.bf16.msra.mxu1 %v2191_v31  ;;  %2012 = vmatprep.subr.bf16.mxu0 %v2192_v36  ;;  %v2231_v31 = vld [vmem:[%s2773_s1 + $0x398] sm:$0xff]   ;;  %v2236_v36 = vld [vmem:[%s2773_s1 + $0x368] sm:$0xff]  }
  0x4a   :  { %2040 = vmatprep.subr.bf16.mxu1 %v2193_v37  ;;  %v2237_v37 = vld [vmem:[%s2773_s1 + $0x3e8] sm:$0xff]  }
  0x4b   :  { %1373 = vmatmul.mubr.bf16.gmra.mrb[12].mxu0 %v1736_v35  ;;  %v2235_v35 = vld [vmem:[%s2773_s1 + $0x3a0] sm:$0xff]  }
  0x4c   :  { %2013 = vmatpush3.bf16.msra.mxu0 %v2194_v41  ;;  %1422 = vmatmul.mubr.bf16.gmra.mrb[12].mxu1 %v1738_v42  ;;  %v2241_v41 = vld [vmem:[%s2773_s1 + $0x3f0] sm:$0xff]  }
  0x4d   :  { %2041 = vmatpush3.bf16.msra.mxu1 %v2195_v43  ;;  %2014 = vmatprep.subr.bf16.mxu0 %v2196_v44  ;;  %v2242_v42 = vld [vmem:[%s2773_s1 + $0x330] sm:$0xff]   ;;  %v2244_v44 = vld [vmem:[%s2773_s1 + $0x378] sm:$0xff]  }
  0x4e   :  { %2042 = vmatprep.subr.bf16.mxu1 %v2197_v45  ;;  %1462 = vmatprep.mubr.bf16.mxu0 %v1725_v3  ;;  %v2243_v43 = vld [vmem:[%s2773_s1 + $0x3b0] sm:$0xff]   ;;  %v2245_v45 = vld [vmem:[%s2773_s1 + $0x3f8] sm:$0xff]  }
  0x4f   :  { %1511 = vmatprep.mubr.bf16.mxu1 %v1727_v7 }
  0x50   :  { %2015 = vmatpush3.bf16.msra.mxu0 %v2198_v46  ;;  %v2246_v46 = vld [vmem:[%s2773_s1 + $0x338] sm:$0xff]  }
  0x51   :  { %2043 = vmatpush3.bf16.msra.mxu1 %v2199_v47  ;;  %2016 = vmatprep.subr.bf16.mxu0 %v2200_v48  ;;  %v2247_v47 = vld [vmem:[%s2773_s1 + $0x3b8] sm:$0xff]   ;;  %v24_v48 = vld [vmem:[%s2774_s0 + $0x30] sm:$0xff] }
  0x52   :  { %2044 = vmatprep.subr.bf16.mxu1 %v2201_v49  ;;  %v32_v49 = vld [vmem:[%s2774_s0 + $0x70] sm:$0xff] }
  0x54   :  { %2017 = vmatpush3.bf16.msra.mxu0 %v2202_v50  ;;  %v25_v50 = vld [vmem:[%s2774_s0 + $0x38] sm:$0xff] }
  0x55   :  { %2045 = vmatpush3.bf16.msra.mxu1 %v2203_v51  ;;  %2018 = vmatprep.subr.bf16.mxu0 %v2204_v52  ;;  %v1728_v51 = vcombine.low %v24_v48, %v32_v49  ;;  %v1729_v52 = vcombine.high %v24_v48, %v32_v49 }
  0x56   :  { %2046 = vmatprep.subr.bf16.mxu1 %v2205_v53  ;;  %v33_v53 = vld [vmem:[%s2774_s0 + $0x78] sm:$0xff] }
  0x58   :  { %2019 = vmatpush3.bf16.msra.mxu0 %v2206_v54  ;;  %v40_v54 = vld [vmem:[%s2774_s0 + $0xb0] sm:$0xff] }
  0x59   :  { %2047 = vmatpush3.bf16.msra.mxu1 %v2207_v55  ;;  %2020 = vmatprep.subr.bf16.mxu0 %v2208_v56  ;;  %v48_v55 = vld [vmem:[%s2774_s0 + $0xf0] sm:$0xff]  ;;  %v1730_v56 = vcombine.low %v25_v50, %v33_v53 }
  0x5a   :  { %2048 = vmatprep.subr.bf16.mxu1 %v2209_v57  ;;  %v1731_v57 = vcombine.high %v25_v50, %v33_v53 }
  0x5c   :  { %2021 = vmatpush3.bf16.msra.mxu0 %v2210_v58  ;;  %v1745_v58 = vcombine.high %v40_v54, %v48_v55 }
  0x5d   :  { %2049 = vmatpush3.bf16.msra.mxu1 %v2211_v59  ;;  %2022 = vmatprep.subr.bf16.mxu0 %v2212_v60  ;;  %v41_v59 = vld [vmem:[%s2774_s0 + $0xb8] sm:$0xff] }
  0x5e   :  { %2050 = vmatprep.subr.bf16.mxu1 %v2213_v61  ;;  %v49_v60 = vld [vmem:[%s2774_s0 + $0xf8] sm:$0xff] }
  0x5f   :  { %v1747_v61 = vcombine.high %v41_v59, %v49_v60 }
  0x60   :  { %2023 = vmatpush3.bf16.msra.mxu0 %v2214_v62  ;;  %v1744_v62 = vcombine.low %v40_v54, %v48_v55 }
  0x61   :  { %2051 = vmatpush3.bf16.msra.mxu1 %v2215_v63  ;;  %2064 = vmatprep.subr.bf16.mxu0 %v2216_v8  ;;  %v1746_v63 = vcombine.low %v41_v59, %v49_v60 }
  0x62   :  { %2092 = vmatprep.subr.bf16.mxu1 %v2217_v9 }
  0x63   :  { %1463 = vmatmul.mubr.bf16.vlgmr.msra.gmra.mrb[16].mxu0 %v1724_v2 }
  0x64   :  { %1512 = vmatmul.mubr.bf16.vlgmr.msra.gmra.mrb[16].mxu1 %v1726_v6  ;;  %2065 = vmatpush3.bf16.msra.mxu0 %v2218_v10 }
  0x65   :  { %2093 = vmatpush3.bf16.msra.mxu1 %v2219_v11  ;;  %2066 = vmatprep.subr.bf16.mxu0 %v2220_v12 }
  0x66   :  { %2094 = vmatprep.subr.bf16.mxu1 %v2221_v13  ;;  %1470 = vmatprep.mubr.bf16.mxu0 %v1741_v18 }
  0x67   :  { %1519 = vmatprep.mubr.bf16.mxu1 %v1743_v24 }
  0x68   :  { %2067 = vmatpush3.bf16.msra.mxu0 %v2222_v14 }
  0x69   :  { %2095 = vmatpush3.bf16.msra.mxu1 %v2223_v15  ;;  %2068 = vmatprep.subr.bf16.mxu0 %v2224_v20 }
  0x6a   :  { %2096 = vmatprep.subr.bf16.mxu1 %v2225_v21 }
  0x6b   :  { %1471 = vmatmul.mubr.bf16.gmra.mrb[20].mxu0 %v1740_v19 }
  0x6c   :  { %2069 = vmatpush3.bf16.msra.mxu0 %v2226_v25  ;;  %1520 = vmatmul.mubr.bf16.gmra.mrb[20].mxu1 %v1742_v26 }
  0x6d   :  { %2097 = vmatpush3.bf16.msra.mxu1 %v2227_v27  ;;  %2070 = vmatprep.subr.bf16.mxu0 %v2228_v28 }
  0x6e   :  { %2098 = vmatprep.subr.bf16.mxu1 %v2229_v29  ;;  %1560 = vmatprep.mubr.bf16.mxu0 %v1729_v52 }
  0x6f   :  { %1609 = vmatprep.mubr.bf16.mxu1 %v1731_v57 }
  0x70   :  { %2071 = vmatpush3.bf16.msra.mxu0 %v2230_v30 }
  0x71   :  { %2099 = vmatpush3.bf16.msra.mxu1 %v2231_v31  ;;  %2072 = vmatprep.subr.bf16.mxu0 %v2232_v32 }
  0x72   :  { %2100 = vmatprep.subr.bf16.mxu1 %v2233_v33 }
  0x74   :  { %2073 = vmatpush3.bf16.msra.mxu0 %v2234_v34 }
  0x75   :  { %2101 = vmatpush3.bf16.msra.mxu1 %v2235_v35  ;;  %2074 = vmatprep.subr.bf16.mxu0 %v2236_v36 }
  0x76   :  { %2102 = vmatprep.subr.bf16.mxu1 %v2237_v37 }
  0x78   :  { %2075 = vmatpush3.bf16.msra.mxu0 %v2238_v38 }
  0x79   :  { %2103 = vmatpush3.bf16.msra.mxu1 %v2239_v39  ;;  %2076 = vmatprep.subr.bf16.mxu0 %v2240_v40 }
  0x7a   :  { %2104 = vmatprep.subr.bf16.mxu1 %v2241_v41 }
  0x7c   :  { %2077 = vmatpush3.bf16.msra.mxu0 %v2242_v42 }
  0x7d   :  { %2105 = vmatpush3.bf16.msra.mxu1 %v2243_v43  ;;  %2078 = vmatprep.subr.bf16.mxu0 %v2244_v44 }
  0x7e   :  { %2106 = vmatprep.subr.bf16.mxu1 %v2245_v45 }
  0x80   :  { %2079 = vmatpush3.bf16.msra.mxu0 %v2246_v46 }
  0x81   :  { %2107 = vmatpush3.bf16.msra.mxu1 %v2247_v47 }
  0x83   :  { %1561 = vmatmul.mubr.bf16.vlgmr.msra.gmra.mrb[24].mxu0 %v1728_v51 }
  0x84   :  { %1610 = vmatmul.mubr.bf16.vlgmr.msra.gmra.mrb[24].mxu1 %v1730_v56  ;;  %1568 = vmatprep.mubr.bf16.mxu0 %v1745_v58 }
  0x85   :  { %1617 = vmatprep.mubr.bf16.mxu1 %v1747_v61 }
  0x8b   :  { %1569 = vmatmul.mubr.bf16.gmra.mrb[28].mxu0 %v1744_v62 }
  0x8c   :  { %1618 = vmatmul.mubr.bf16.gmra.mrb[28].mxu1 %v1746_v63 }
  0xf6   :  { %v1912_v0 = vpop.f32.mrb[0].mxu0 }
  0xf7   :  { %v1940_v1 = vpop.f32.mrb[0].mxu1  ;;  %v1913_v2 = vpop.f32.mrb[1].mxu0 }
  0xf8   :  { %v1914_v3 = vadd.f32 %v1913_v2, %v1912_v0  ;;  %v1941_v4 = vpop.f32.mrb[1].mxu1  ;;  %v1915_v5 = vpop.f32.mrb[2].mxu0 }
  0xf9   :  { %v1942_v6 = vadd.f32 %v1941_v4, %v1940_v1  ;;  %v1943_v7 = vpop.f32.mrb[2].mxu1  ;;  %v1916_v8 = vpop.f32.mrb[3].mxu0 }
  0xfa   :  { %v1917_v9 = vadd.f32 %v1916_v8, %v1915_v5  ;;  %v1944_v10 = vpop.f32.mrb[3].mxu1 }
  0xfb   :  { %v1318_v11 = vadd.f32 %v1942_v6, %v1914_v3  ;;  %v1945_v12 = vadd.f32 %v1944_v10, %v1943_v7 }
  0xfd   :  { %v1321_v13 = vadd.f32 %v1945_v12, %v1917_v9 }
  0xfe   :  { %v1918_v14 = vpop.f32.mrb[4].mxu0 }
  0xff   :  { %v1946_v15 = vpop.f32.mrb[4].mxu1  ;;  %v1919_v16 = vpop.f32.mrb[5].mxu0 }
 0x100   :  { %v1920_v17 = vadd.f32 %v1919_v16, %v1918_v14  ;;  %v1947_v18 = vpop.f32.mrb[5].mxu1  ;;  %v1921_v19 = vpop.f32.mrb[6].mxu0 }
 0x101   :  { %v1948_v20 = vadd.f32 %v1947_v18, %v1946_v15  ;;  %v1949_v21 = vpop.f32.mrb[6].mxu1  ;;  %v1922_v22 = vpop.f32.mrb[7].mxu0 }
 0x102   :  { %v1923_v23 = vadd.f32 %v1922_v22, %v1921_v19  ;;  %v1950_v24 = vpop.f32.mrb[7].mxu1 }
 0x103   :  { %v1326_v25 = vadd.f32 %v1948_v20, %v1920_v17  ;;  %v1951_v26 = vadd.f32 %v1950_v24, %v1949_v21 }
 0x105   :  { %v1329_v27 = vadd.f32 %v1951_v26, %v1923_v23 }
 0x116   :  { %v1968_v28 = vpop.f32.mrb[8].mxu0 }
 0x117   :  { %v1996_v29 = vpop.f32.mrb[8].mxu1  ;;  %v1969_v30 = vpop.f32.mrb[9].mxu0 }
 0x118   :  { %v1997_v31 = vpop.f32.mrb[9].mxu1  ;;  %v1970_v32 = vadd.f32 %v1969_v30, %v1968_v28  ;;  %v1971_v34 = vpop.f32.mrb[10].mxu0 }
 0x119   :  { %v1998_v33 = vadd.f32 %v1997_v31, %v1996_v29  ;;  %v1999_v35 = vpop.f32.mrb[10].mxu1  ;;  %v1972_v36 = vpop.f32.mrb[11].mxu0 }
 0x11a   :  { %v2000_v37 = vpop.f32.mrb[11].mxu1  ;;  %v1367_v38 = vadd.f32 %v1970_v32, %v1318_v11  ;;  %v1973_v39 = vadd.f32 %v1972_v36, %v1971_v34 }
 0x11b   :  { %v2001_v40 = vadd.f32 %v2000_v37, %v1999_v35 }
 0x11c   :  { %v1416_v41 = vadd.f32 %v1998_v33, %v1367_v38  ;;  %v1370_v42 = vadd.f32 %v1973_v39, %v1321_v13 }
 0x11e   :  { %v1419_v43 = vadd.f32 %v2001_v40, %v1370_v42  ;;  %v1974_v44 = vpop.f32.mrb[12].mxu0 }
 0x11f   :  { %v1975_v45 = vpop.f32.mrb[13].mxu0  ;;  %v2002_v50 = vpop.f32.mrb[12].mxu1 }
 0x120   :  { %v1976_v46 = vadd.f32 %v1975_v45, %v1974_v44  ;;  %v1977_v47 = vpop.f32.mrb[14].mxu0  ;;  %v2003_v52 = vpop.f32.mrb[13].mxu1 }
 0x121   :  { %v1978_v48 = vpop.f32.mrb[15].mxu0  ;;  %v2004_v54 = vadd.f32 %v2003_v52, %v2002_v50  ;;  %v2005_v55 = vpop.f32.mrb[14].mxu1 }
 0x122   :  { %v1375_v49 = vadd.f32 %v1976_v46, %v1326_v25  ;;  %v1979_v51 = vadd.f32 %v1978_v48, %v1977_v47  ;;  %v2006_v56 = vpop.f32.mrb[15].mxu1 }
 0x123   :  { %v2007_v58 = vadd.f32 %v2006_v56, %v2005_v55 }
 0x124   :  { %v1378_v53 = vadd.f32 %v1979_v51, %v1329_v27  ;;  %v1424_v57 = vadd.f32 %v2004_v54, %v1375_v49 }
 0x126   :  { %v1427_v59 = vadd.f32 %v2007_v58, %v1378_v53 }
 0x136   :  { %v2024_v60 = vpop.f32.mrb[16].mxu0 }
 0x137   :  { %v2052_v61 = vpop.f32.mrb[16].mxu1  ;;  %v2025_v62 = vpop.f32.mrb[17].mxu0 }
 0x138   :  { %v2026_v63 = vadd.f32 %v2025_v62, %v2024_v60  ;;  %v2053_v0 = vpop.f32.mrb[17].mxu1  ;;  %v2027_v1 = vpop.f32.mrb[18].mxu0 }
 0x139   :  { %v2054_v2 = vadd.f32 %v2053_v0, %v2052_v61  ;;  %v2055_v3 = vpop.f32.mrb[18].mxu1  ;;  %v2028_v4 = vpop.f32.mrb[19].mxu0 }
 0x13a   :  { %v1465_v5 = vadd.f32 %v2026_v63, %v1416_v41  ;;  %v2029_v6 = vadd.f32 %v2028_v4, %v2027_v1  ;;  %v2056_v7 = vpop.f32.mrb[19].mxu1 }
 0x13b   :  { %v2057_v8 = vadd.f32 %v2056_v7, %v2055_v3 }
 0x13c   :  { %v1514_v9 = vadd.f32 %v2054_v2, %v1465_v5  ;;  %v1468_v10 = vadd.f32 %v2029_v6, %v1419_v43 }
 0x13e   :  { %v1517_v11 = vadd.f32 %v2057_v8, %v1468_v10  ;;  %v2030_v12 = vpop.f32.mrb[20].mxu0 }
 0x13f   :  { %v2031_v13 = vpop.f32.mrb[21].mxu0  ;;  %v2058_v16 = vpop.f32.mrb[20].mxu1 }
 0x140   :  { %v2032_v14 = vadd.f32 %v2031_v13, %v2030_v12  ;;  %v2033_v15 = vpop.f32.mrb[22].mxu0  ;;  %v2059_v20 = vpop.f32.mrb[21].mxu1 }
 0x141   :  { %v2034_v17 = vpop.f32.mrb[23].mxu0  ;;  %v2060_v21 = vadd.f32 %v2059_v20, %v2058_v16  ;;  %v2061_v22 = vpop.f32.mrb[22].mxu1 }
 0x142   :  { %v1473_v18 = vadd.f32 %v2032_v14, %v1424_v57  ;;  %v2035_v19 = vadd.f32 %v2034_v17, %v2033_v15  ;;  %v2062_v24 = vpop.f32.mrb[23].mxu1 }
 0x143   :  { %v2063_v26 = vadd.f32 %v2062_v24, %v2061_v22 }
 0x144   :  { %v1476_v23 = vadd.f32 %v2035_v19, %v1427_v59  ;;  %v1522_v25 = vadd.f32 %v2060_v21, %v1473_v18 }
 0x146   :  { %v1525_v27 = vadd.f32 %v2063_v26, %v1476_v23 }
 0x156   :  { %v2080_v28 = vpop.f32.mrb[24].mxu0 }
 0x157   :  { %v2108_v29 = vpop.f32.mrb[24].mxu1  ;;  %v2081_v30 = vpop.f32.mrb[25].mxu0 }
 0x158   :  { %v2082_v31 = vadd.f32 %v2081_v30, %v2080_v28  ;;  %v2109_v32 = vpop.f32.mrb[25].mxu1  ;;  %v2083_v33 = vpop.f32.mrb[26].mxu0  ;;  %v1661_v28 = vlaneseq  ;;  %v1655_v30 = vld [vmem:[%s2775_s2] sm:$0x1] }
 0x159   :  { %v2110_v34 = vadd.f32 %v2109_v32, %v2108_v29  ;;  %v2111_v35 = vpop.f32.mrb[26].mxu1  ;;  %v2084_v36 = vpop.f32.mrb[27].mxu0 }
 0x15a   :  { %v1563_v37 = vadd.f32 %v2082_v31, %v1514_v9  ;;  %v2085_v38 = vadd.f32 %v2084_v36, %v2083_v33  ;;  %v2112_v39 = vpop.f32.mrb[27].mxu1  ;;  %v1662_v29 = vshrl.u32 %v1661_v28, 7 }
 0x15b   :  { %v2113_v40 = vadd.f32 %v2112_v39, %v2111_v35  ;;  %v1876_v35 = vld [vmem:[%s2776_s3] ss:$0 sm:$0xff] }
 0x15c   :  { %v2755_v41 = vadd.f32 %v2110_v34, %v1563_v37  ;;  %v1566_v42 = vadd.f32 %v2085_v38, %v1517_v11  ;;  %v1663_v31 = vsub.s32 0, %v1662_v29 }
 0x15e   :  { %v1615_v43 = vadd.f32 %v2113_v40, %v1566_v42  ;;  %v2086_v44 = vpop.f32.mrb[28].mxu0  ;;  %v1635_v47 = vmul.f32 %v2755_v41, %v2755_v41 }
 0x15f   :  { %v2114_v45 = vpop.f32.mrb[28].mxu1  ;;  %v2087_v46 = vpop.f32.mrb[29].mxu0 }
 0x160   :  { %v1626_v48 = vadd.f32 %v1615_v43, %v2755_v41  ;;  %v1636_v49 = vmul.f32 %v1615_v43, %v1615_v43  ;;  %v2088_v50 = vadd.f32 %v2087_v46, %v2086_v44  ;;  %v2115_v51 = vpop.f32.mrb[29].mxu1  ;;  %v2089_v52 = vpop.f32.mrb[30].mxu0 }
 0x161   :  { %v2116_v53 = vadd.f32 %v2115_v51, %v2114_v45  ;;  %v2117_v54 = vpop.f32.mrb[30].mxu1  ;;  %v2090_v55 = vpop.f32.mrb[31].mxu0 }
 0x162   :  { %v1639_v56 = vadd.f32 %v1636_v49, %v1635_v47  ;;  %v1571_v57 = vadd.f32 %v2088_v50, %v1522_v25  ;;  %v2091_v58 = vadd.f32 %v2090_v55, %v2089_v52  ;;  %v2118_v59 = vpop.f32.mrb[31].mxu1 }
 0x163   :  { %v2119_v60 = vadd.f32 %v2118_v59, %v2117_v54 }
 0x164   :  { %v1620_v61 = vadd.f32 %v2116_v53, %v1571_v57  ;;  %v1574_v62 = vadd.f32 %v2091_v58, %v1525_v27 }
 0x166   :  { %v1627_v63 = vadd.f32 %v1626_v48, %v1620_v61  ;;  %v1637_v0 = vmul.f32 %v1620_v61, %v1620_v61  ;;  %v1623_v1 = vadd.f32 %v2119_v60, %v1574_v62 }
 0x168   :  { %v1640_v2 = vadd.f32 %v1639_v56, %v1637_v0  ;;  %v1628_v3 = vadd.f32 %v1627_v63, %v1623_v1  ;;  %v1638_v4 = vmul.f32 %v1623_v1, %v1623_v1 }
 0x16a   :  { %v1629_v5 = vrot.slane %v1628_v3, 4  ;;  %v1641_v6 = vadd.f32 %v1640_v2, %v1638_v4 }
 0x16c   :  { %v1630_v7 = vadd.f32 %v1629_v5, %v1628_v3  ;;  %v1642_v8 = vrot.slane %v1641_v6, 4 }
 0x16e   :  { %v1631_v9 = vrot.slane %v1630_v7, 2  ;;  %v1643_v10 = vadd.f32 %v1642_v8, %v1641_v6 }
 0x170   :  { %v1632_v11 = vadd.f32 %v1631_v9, %v1630_v7  ;;  %v1644_v12 = vrot.slane %v1643_v10, 2 }
 0x172   :  { %v1633_v13 = vrot.slane %v1632_v11, 1  ;;  %v1645_v14 = vadd.f32 %v1644_v12, %v1643_v10 }
 0x174   :  { %v1634_v15 = vadd.f32 %v1633_v13, %v1632_v11  ;;  %v1646_v16 = vrot.slane %v1645_v14, 1 }
 0x176   :  { %v1647_v17 = vadd.f32 %v1646_v16, %v1645_v14  ;;  %v1648_v18 = vmul.f32 0.03125, %v1634_v15 }
 0x178   :  { %v1649_v19 = vmul.f32 0.03125, %v1647_v17  ;;  %v1650_v20 = vmul.f32 %v1648_v18, %v1648_v18  ;;  %v1657_v21 = vsub.f32 %v2755_v41, %v1648_v18  ;;  %v1658_v22 = vsub.f32 %v1615_v43, %v1648_v18 }
 0x179   :  { %v1659_v23 = vsub.f32 %v1620_v61, %v1648_v18  ;;  %v1660_v24 = vsub.f32 %v1623_v1, %v1648_v18 }
 0x17a   :  { %v1651_v25 = vsub.f32 %v1649_v19, %v1650_v20 }
 0x17c   :  { %v1652_v26 = vmax.f32 %v1651_v25, 0.0 }
 0x17e   :  { %v1653_v27 = vadd.f32 1e-05, %v1652_v26 }
 0x180   :  { %2248 = vrsqrt.f32 %v1653_v27 }
 0x18a   :  { %v2249_v32 = vpop.eup %2248 }
 0x18b   :  { %v1656_v33 = vmul.f32 %v2249_v32, %v1655_v30 }
 0x18d   :  { %v1664_v34 = vrot.slane %v1656_v33, %v1663_v31 }
 0x18f   :  { %v1665_v36 = vmul.f32 %v1664_v34, %v1657_v21  ;;  %v1666_v37 = vmul.f32 %v1664_v34, %v1658_v22  ;;  %v1667_v38 = vmul.f32 %v1664_v34, %v1659_v23  ;;  %v1668_v39 = vmul.f32 %v1664_v34, %v1660_v24 }
 0x191   :  { %v1676_v40 = vadd.f32 %v1876_v35, %v1665_v36  ;;  %v1677_v41 = vadd.f32 %v1876_v35, %v1666_v37  ;;  %v1678_v42 = vadd.f32 %v1876_v35, %v1667_v38  ;;  %v1679_v43 = vadd.f32 %v1876_v35, %v1668_v39 }
 0x193   :  { %vm1680_vm0 = vcmp.gt.f32.partialorder %v1676_v40, 0.0  ;;  %vm1681_vm1 = vcmp.gt.f32.partialorder %v1677_v41, 0.0  ;;  %vm1682_vm2 = vcmp.gt.f32.partialorder %v1678_v42, 0.0  ;;  %vm1683_vm3 = vcmp.gt.f32.partialorder %v1679_v43, 0.0 }
 0x194   :  { %v1684_v44 = vmul.f32 0.2, %v1676_v40  ;;  %v1685_v45 = vmul.f32 0.2, %v1677_v41  ;;  %v1686_v46 = vmul.f32 0.2, %v1678_v42 }
 0x195   :  { %v1687_v47 = vmul.f32 0.2, %v1679_v43 }
 0x196   :  { %v1688_v48 = vsel %vm1680_vm0, %v1676_v40, %v1684_v44  ;;  %v1689_v49 = vsel %vm1681_vm1, %v1677_v41, %v1685_v45  ;;  %v1690_v50 = vsel %vm1682_vm2, %v1678_v42, %v1686_v46 }
 0x197   :  { %v1691_v51 = vsel %vm1683_vm3, %v1679_v43, %v1687_v47  ;;  %v1888_v52 = vpack.c.bf16 %v1689_v49, %v1688_v48 }
 0x198   :  { %v1893_v53 = vpack.c.bf16 %v1691_v51, %v1690_v50 }
 0x199   :  { %1889 = vst [vmem:[%s2777_s4] sm:$0xff] %v1888_v52  }
 0x19a   :  { %1895 = vst [vmem:[%s2777_s4 + $0x8] sm:$0xff] %v1893_v53  }

// kernel: discriminator_forward.9
= control target key start
LH: loop header
LB: loop body
LE: loop exit
PB: predicated region body
PF: predicated region fallthrough
CT: control target
= control target key end

     0   :  { %s1184_s1 = inlined_call_operand.vmem [shape: bf16[1024,128], index: 1, kind: input, shape index: {}]   ;;  %s1185_s0 = inlined_call_operand.vmem [shape: bf16[8,1024], index: 0, kind: input, shape index: {}]   ;;  %s1186_s2 = inlined_call_operand.vmem [shape: f32[8,128], index: 2, kind: output, shape index: {}]  }
   0x1   :  { %v886_v0 = vld [vmem:[%s1184_s1 + $0x40] sm:$0xff]   ;;  %v890_v4 = vld [vmem:[%s1184_s1 + $0x48] sm:$0xff]   ;;  %v894_v8 = vld [vmem:[%s1184_s1 + $0x50] sm:$0xff]  }
   0x2   :  { %v887_v1 = vld [vmem:[%s1184_s1 + $0xc0] sm:$0xff]   ;;  %798 = vmatprep.subr.bf16.mxu0 %v886_v0  ;;  %v891_v5 = vld [vmem:[%s1184_s1 + $0xc8] sm:$0xff]   ;;  %v895_v9 = vld [vmem:[%s1184_s1 + $0xd0] sm:$0xff]  }
   0x3   :  { %v888_v2 = vld [vmem:[%s1184_s1] sm:$0xff]   ;;  %820 = vmatprep.subr.bf16.mxu1 %v887_v1  ;;  %v892_v6 = vld [vmem:[%s1184_s1 + $0x8] sm:$0xff]   ;;  %v896_v10 = vld [vmem:[%s1184_s1 + $0x10] sm:$0xff]  }
   0x4   :  { %v889_v3 = vld [vmem:[%s1184_s1 + $0x80] sm:$0xff]   ;;  %799 = vmatpush3.bf16.msra.mxu0 %v888_v2  ;;  %v893_v7 = vld [vmem:[%s1184_s1 + $0x88] sm:$0xff]   ;;  %v897_v11 = vld [vmem:[%s1184_s1 + $0x90] sm:$0xff]  }
   0x5   :  { %821 = vmatpush3.bf16.msra.mxu1 %v889_v3  ;;  %800 = vmatprep.subr.bf16.mxu0 %v890_v4  ;;  %v898_v12 = vld [vmem:[%s1184_s1 + $0x58] sm:$0xff]   ;;  %v902_v16 = vld [vmem:[%s1184_s1 + $0x60] sm:$0xff]   ;;  %v906_v20 = vld [vmem:[%s1184_s1 + $0x68] sm:$0xff]  }
   0x6   :  { %822 = vmatprep.subr.bf16.mxu1 %v891_v5  ;;  %v899_v13 = vld [vmem:[%s1184_s1 + $0xd8] sm:$0xff]   ;;  %v903_v17 = vld [vmem:[%s1184_s1 + $0xe0] sm:$0xff]   ;;  %v907_v21 = vld [vmem:[%s1184_s1 + $0xe8] sm:$0xff]  }
   0x7   :  { %v900_v14 = vld [vmem:[%s1184_s1 + $0x18] sm:$0xff]   ;;  %v904_v18 = vld [vmem:[%s1184_s1 + $0x20] sm:$0xff]   ;;  %v908_v22 = vld [vmem:[%s1184_s1 + $0x28] sm:$0xff]  }
   0x8   :  { %801 = vmatpush3.bf16.msra.mxu0 %v892_v6  ;;  %v901_v15 = vld [vmem:[%s1184_s1 + $0x98] sm:$0xff]   ;;  %v905_v19 = vld [vmem:[%s1184_s1 + $0xa0] sm:$0xff]   ;;  %v909_v23 = vld [vmem:[%s1184_s1 + $0xa8] sm:$0xff]  }
   0x9   :  { %823 = vmatpush3.bf16.msra.mxu1 %v893_v7  ;;  %802 = vmatprep.subr.bf16.mxu0 %v894_v8  ;;  %v910_v24 = vld [vmem:[%s1184_s1 + $0x70] sm:$0xff]   ;;  %v914_v28 = vld [vmem:[%s1184_s1 + $0x78] sm:$0xff]   ;;  %v12_v32 = vld [vmem:[%s1185_s0] sm:$0xff] }
   0xa   :  { %824 = vmatprep.subr.bf16.mxu1 %v895_v9  ;;  %v911_v25 = vld [vmem:[%s1184_s1 + $0xf0] sm:$0xff]   ;;  %v915_v29 = vld [vmem:[%s1184_s1 + $0xf8] sm:$0xff]   ;;  %v13_v33 = vld [vmem:[%s1185_s0 + $0x8] sm:$0xff]  ;;  %v726_v34 = vcombine.low %v12_v32, %v12_v32  ;;  %v727_v35 = vcombine.high %v12_v32, %v12_v32 }
   0xb   :  { %v912_v26 = vld [vmem:[%s1184_s1 + $0x30] sm:$0xff]   ;;  %v916_v30 = vld [vmem:[%s1184_s1 + $0x38] sm:$0xff]   ;;  %v728_v36 = vcombine.low %v13_v33, %v13_v33  ;;  %v729_v37 = vcombine.high %v13_v33, %v13_v33  ;;  %v922_v38 = vld [vmem:[%s1184_s1 + $0x140] sm:$0xff]  }
   0xc   :  { %803 = vmatpush3.bf16.msra.mxu0 %v896_v10  ;;  %v913_v27 = vld [vmem:[%s1184_s1 + $0xb0] sm:$0xff]   ;;  %v917_v31 = vld [vmem:[%s1184_s1 + $0xb8] sm:$0xff]   ;;  %v923_v39 = vld [vmem:[%s1184_s1 + $0x1c0] sm:$0xff]   ;;  %588 = vmatprep.mubr.bf16.mxu0 %v727_v35 }
   0xd   :  { %825 = vmatpush3.bf16.msra.mxu1 %v897_v11  ;;  %804 = vmatprep.subr.bf16.mxu0 %v898_v12  ;;  %v924_v40 = vld [vmem:[%s1184_s1 + $0x100] sm:$0xff]   ;;  %v926_v42 = vld [vmem:[%s1184_s1 + $0x148] sm:$0xff]   ;;  %v930_v46 = vld [vmem:[%s1184_s1 + $0x150] sm:$0xff]  }
   0xe   :  { %826 = vmatprep.subr.bf16.mxu1 %v899_v13  ;;  %628 = vmatprep.mubr.bf16.mxu1 %v729_v37  ;;  %v925_v41 = vld [vmem:[%s1184_s1 + $0x180] sm:$0xff]   ;;  %v927_v43 = vld [vmem:[%s1184_s1 + $0x1c8] sm:$0xff]   ;;  %v931_v47 = vld [vmem:[%s1184_s1 + $0x1d0] sm:$0xff]  }
   0xf   :  { %v928_v44 = vld [vmem:[%s1184_s1 + $0x108] sm:$0xff]   ;;  %v932_v48 = vld [vmem:[%s1184_s1 + $0x110] sm:$0xff]   ;;  %v934_v50 = vld [vmem:[%s1184_s1 + $0x158] sm:$0xff]  }
  0x10   :  { %805 = vmatpush3.bf16.msra.mxu0 %v900_v14  ;;  %v929_v45 = vld [vmem:[%s1184_s1 + $0x188] sm:$0xff]   ;;  %v933_v49 = vld [vmem:[%s1184_s1 + $0x190] sm:$0xff]   ;;  %v935_v51 = vld [vmem:[%s1184_s1 + $0x1d8] sm:$0xff]  }
  0x11   :  { %827 = vmatpush3.bf16.msra.mxu1 %v901_v15  ;;  %806 = vmatprep.subr.bf16.mxu0 %v902_v16  ;;  %v936_v52 = vld [vmem:[%s1184_s1 + $0x118] sm:$0xff]   ;;  %v938_v54 = vld [vmem:[%s1184_s1 + $0x160] sm:$0xff]   ;;  %v942_v58 = vld [vmem:[%s1184_s1 + $0x168] sm:$0xff]  }
  0x12   :  { %828 = vmatprep.subr.bf16.mxu1 %v903_v17  ;;  %v937_v53 = vld [vmem:[%s1184_s1 + $0x198] sm:$0xff]   ;;  %v939_v55 = vld [vmem:[%s1184_s1 + $0x1e0] sm:$0xff]   ;;  %v943_v59 = vld [vmem:[%s1184_s1 + $0x1e8] sm:$0xff]  }
  0x13   :  { %v940_v56 = vld [vmem:[%s1184_s1 + $0x120] sm:$0xff]   ;;  %v944_v60 = vld [vmem:[%s1184_s1 + $0x128] sm:$0xff]   ;;  %v946_v62 = vld [vmem:[%s1184_s1 + $0x170] sm:$0xff]  }
  0x14   :  { %807 = vmatpush3.bf16.msra.mxu0 %v904_v18  ;;  %v941_v57 = vld [vmem:[%s1184_s1 + $0x1a0] sm:$0xff]   ;;  %v945_v61 = vld [vmem:[%s1184_s1 + $0x1a8] sm:$0xff]   ;;  %v947_v63 = vld [vmem:[%s1184_s1 + $0x1f0] sm:$0xff]  }
  0x15   :  { %829 = vmatpush3.bf16.msra.mxu1 %v905_v19  ;;  %808 = vmatprep.subr.bf16.mxu0 %v906_v20  ;;  %v948_v0 = vld [vmem:[%s1184_s1 + $0x130] sm:$0xff]   ;;  %v950_v2 = vld [vmem:[%s1184_s1 + $0x178] sm:$0xff]  }
  0x16   :  { %830 = vmatprep.subr.bf16.mxu1 %v907_v21  ;;  %v949_v1 = vld [vmem:[%s1184_s1 + $0x1b0] sm:$0xff]   ;;  %v951_v3 = vld [vmem:[%s1184_s1 + $0x1f8] sm:$0xff]  }
  0x17   :  { %v952_v4 = vld [vmem:[%s1184_s1 + $0x138] sm:$0xff]   ;;  %v14_v6 = vld [vmem:[%s1185_s0 + $0x10] sm:$0xff] }
  0x18   :  { %809 = vmatpush3.bf16.msra.mxu0 %v908_v22  ;;  %v953_v5 = vld [vmem:[%s1184_s1 + $0x1b8] sm:$0xff]   ;;  %v730_v7 = vcombine.low %v14_v6, %v14_v6  ;;  %v731_v8 = vcombine.high %v14_v6, %v14_v6 }
  0x19   :  { %831 = vmatpush3.bf16.msra.mxu1 %v909_v23  ;;  %810 = vmatprep.subr.bf16.mxu0 %v910_v24  ;;  %v15_v9 = vld [vmem:[%s1185_s0 + $0x18] sm:$0xff] }
  0x1a   :  { %832 = vmatprep.subr.bf16.mxu1 %v911_v25  ;;  %v732_v10 = vcombine.low %v15_v9, %v15_v9  ;;  %v733_v11 = vcombine.high %v15_v9, %v15_v9 }
  0x1c   :  { %811 = vmatpush3.bf16.msra.mxu0 %v912_v26 }
  0x1d   :  { %833 = vmatpush3.bf16.msra.mxu1 %v913_v27  ;;  %812 = vmatprep.subr.bf16.mxu0 %v914_v28 }
  0x1e   :  { %834 = vmatprep.subr.bf16.mxu1 %v915_v29 }
  0x20   :  { %813 = vmatpush3.bf16.msra.mxu0 %v916_v30 }
  0x21   :  { %835 = vmatpush3.bf16.msra.mxu1 %v917_v31  ;;  %842 = vmatprep.subr.bf16.mxu0 %v922_v38 }
  0x22   :  { %864 = vmatprep.subr.bf16.mxu1 %v923_v39 }
  0x23   :  { %589 = vmatmul.mubr.bf16.vlgmr.msra.gmra.mrb[0].mxu0 %v726_v34 }
  0x24   :  { %629 = vmatmul.mubr.bf16.vlgmr.msra.gmra.mrb[0].mxu1 %v728_v36  ;;  %843 = vmatpush3.bf16.msra.mxu0 %v924_v40 }
  0x25   :  { %865 = vmatpush3.bf16.msra.mxu1 %v925_v41  ;;  %844 = vmatprep.subr.bf16.mxu0 %v926_v42 }
  0x26   :  { %866 = vmatprep.subr.bf16.mxu1 %v927_v43  ;;  %668 = vmatprep.mubr.bf16.mxu0 %v731_v8 }
  0x27   :  { %708 = vmatprep.mubr.bf16.mxu1 %v733_v11 }
  0x28   :  { %845 = vmatpush3.bf16.msra.mxu0 %v928_v44 }
  0x29   :  { %867 = vmatpush3.bf16.msra.mxu1 %v929_v45  ;;  %846 = vmatprep.subr.bf16.mxu0 %v930_v46 }
  0x2a   :  { %868 = vmatprep.subr.bf16.mxu1 %v931_v47 }
  0x2c   :  { %847 = vmatpush3.bf16.msra.mxu0 %v932_v48 }
  0x2d   :  { %869 = vmatpush3.bf16.msra.mxu1 %v933_v49  ;;  %848 = vmatprep.subr.bf16.mxu0 %v934_v50 }
  0x2e   :  { %870 = vmatprep.subr.bf16.mxu1 %v935_v51 }
  0x30   :  { %849 = vmatpush3.bf16.msra.mxu0 %v936_v52 }
  0x31   :  { %871 = vmatpush3.bf16.msra.mxu1 %v937_v53  ;;  %850 = vmatprep.subr.bf16.mxu0 %v938_v54 }
  0x32   :  { %872 = vmatprep.subr.bf16.mxu1 %v939_v55 }
  0x34   :  { %851 = vmatpush3.bf16.msra.mxu0 %v940_v56 }
  0x35   :  { %873 = vmatpush3.bf16.msra.mxu1 %v941_v57  ;;  %852 = vmatprep.subr.bf16.mxu0 %v942_v58 }
  0x36   :  { %874 = vmatprep.subr.bf16.mxu1 %v943_v59 }
  0x38   :  { %853 = vmatpush3.bf16.msra.mxu0 %v944_v60 }
  0x39   :  { %875 = vmatpush3.bf16.msra.mxu1 %v945_v61  ;;  %854 = vmatprep.subr.bf16.mxu0 %v946_v62 }
  0x3a   :  { %876 = vmatprep.subr.bf16.mxu1 %v947_v63 }
  0x3c   :  { %855 = vmatpush3.bf16.msra.mxu0 %v948_v0 }
  0x3d   :  { %877 = vmatpush3.bf16.msra.mxu1 %v949_v1  ;;  %856 = vmatprep.subr.bf16.mxu0 %v950_v2 }
  0x3e   :  { %878 = vmatprep.subr.bf16.mxu1 %v951_v3 }
  0x40   :  { %857 = vmatpush3.bf16.msra.mxu0 %v952_v4 }
  0x41   :  { %879 = vmatpush3.bf16.msra.mxu1 %v953_v5 }
  0x43   :  { %669 = vmatmul.mubr.bf16.vlgmr.msra.gmra.mrb[4].mxu0 %v730_v7 }
  0x44   :  { %709 = vmatmul.mubr.bf16.vlgmr.msra.gmra.mrb[4].mxu1 %v732_v10 }
  0xf6   :  { %v814_v12 = vpop.f32.mrb[0].mxu0 }
  0xf7   :  { %v836_v13 = vpop.f32.mrb[0].mxu1  ;;  %v815_v14 = vpop.f32.mrb[1].mxu0 }
  0xf8   :  { %v837_v15 = vpop.f32.mrb[1].mxu1  ;;  %v816_v16 = vadd.f32 %v815_v14, %v814_v12  ;;  %v817_v18 = vpop.f32.mrb[2].mxu0 }
  0xf9   :  { %v838_v17 = vadd.f32 %v837_v15, %v836_v13  ;;  %v839_v19 = vpop.f32.mrb[2].mxu1  ;;  %v818_v20 = vpop.f32.mrb[3].mxu0 }
  0xfa   :  { %v840_v21 = vpop.f32.mrb[3].mxu1 }
  0xfb   :  { %v631_v22 = vadd.f32 %v838_v17, %v816_v16 }
 0x116   :  { %v858_v23 = vpop.f32.mrb[4].mxu0 }
 0x117   :  { %v880_v24 = vpop.f32.mrb[4].mxu1  ;;  %v859_v25 = vpop.f32.mrb[5].mxu0 }
 0x118   :  { %v881_v26 = vpop.f32.mrb[5].mxu1  ;;  %v860_v27 = vadd.f32 %v859_v25, %v858_v23  ;;  %v861_v29 = vpop.f32.mrb[6].mxu0 }
 0x119   :  { %v882_v28 = vadd.f32 %v881_v26, %v880_v24  ;;  %v883_v30 = vpop.f32.mrb[6].mxu1  ;;  %v862_v31 = vpop.f32.mrb[7].mxu0 }
 0x11a   :  { %v884_v32 = vpop.f32.mrb[7].mxu1  ;;  %v671_v33 = vadd.f32 %v860_v27, %v631_v22 }
 0x11c   :  { %v711_v34 = vadd.f32 %v882_v28, %v671_v33 }
 0x11e   :  { %v716_v35 = vsub.f32 0.0, %v711_v34 }
 0x120   :  { %v717_v36 = vmul.f32 1.442695, %v716_v35 }
 0x122   :  { %958 = vpow2.f32 %v717_v36 }
 0x12c   :  { %v959_v37 = vpop.eup %958 }
 0x12d   :  { %v719_v38 = vadd.f32 1.0, %v959_v37 }
 0x12f   :  { %960 = vrcp.f32 %v719_v38 }
 0x139   :  { %v961_v39 = vpop.eup %960 }
 0x13a   :  { %721 = vst [vmem:[%s1186_s2] sm:$0xff] %v961_v39 }

// kernel: discriminator_forward.8
= control target key start
LH: loop header
LB: loop body
LE: loop exit
PB: predicated region body
PF: predicated region fallthrough
CT: control target
= control target key end

     0   :  { %s3624_s1 = inlined_call_operand.vmem [shape: bf16[2048,256], index: 1, kind: input, shape index: {}]   ;;  %s3625_s0 = inlined_call_operand.vmem [shape: bf16[8,2048], index: 0, kind: input, shape index: {}]   ;;  %s3626_s2 = inlined_call_operand.vmem [shape: f32[1,256], index: 2, kind: input, shape index: {}]   ;;  %s3627_s3 = inlined_call_operand.vmem [shape: f32[1,256], index: 3, kind: input, shape index: {}]   ;;  %s3628_s4 = inlined_call_operand.vmem [shape: bf16[8,256], index: 4, kind: output, shape index: {}]  }
   0x1   :  { %v2344_v0 = vld [vmem:[%s3624_s1 + $0x4] ss:$8 sps:$4 sm:$0xff]   ;;  %v2348_v2 = vld [vmem:[%s3624_s1] ss:$8 sps:$4 sm:$0xff]   ;;  %v2350_v4 = vld [vmem:[%s3624_s1 + $0x14] ss:$8 sps:$4 sm:$0xff]  }
   0x2   :  { %v2346_v1 = vld [vmem:[%s3624_s1 + $0x404] ss:$8 sps:$4 sm:$0xff]   ;;  %1617 = vmatprep.subr.bf16.mxu1 %v2344_v0  ;;  %v2349_v3 = vld [vmem:[%s3624_s1 + $0x400] ss:$8 sps:$4 sm:$0xff]   ;;  %v2352_v5 = vld [vmem:[%s3624_s1 + $0x414] ss:$8 sps:$4 sm:$0xff]  }
   0x3   :  { %1781 = vmatprep.subr.bf16.mxu0 %v2346_v1  ;;  %1618 = vmatpush1.bf16.msra.mxu1 %v2348_v2  ;;  %v2354_v6 = vld [vmem:[%s3624_s1 + $0x10] ss:$8 sps:$4 sm:$0xff]   ;;  %v2356_v8 = vld [vmem:[%s3624_s1 + $0x24] ss:$8 sps:$4 sm:$0xff]   ;;  %v2360_v10 = vld [vmem:[%s3624_s1 + $0x20] ss:$8 sps:$4 sm:$0xff]  }
   0x4   :  { %1782 = vmatpush1.bf16.msra.mxu0 %v2349_v3  ;;  %1619 = vmatprep.subr.bf16.mxu1 %v2350_v4  ;;  %v2355_v7 = vld [vmem:[%s3624_s1 + $0x410] ss:$8 sps:$4 sm:$0xff]   ;;  %v2358_v9 = vld [vmem:[%s3624_s1 + $0x424] ss:$8 sps:$4 sm:$0xff]   ;;  %v2361_v11 = vld [vmem:[%s3624_s1 + $0x420] ss:$8 sps:$4 sm:$0xff]  }
   0x5   :  { %1783 = vmatprep.subr.bf16.mxu0 %v2352_v5  ;;  %v2362_v12 = vld [vmem:[%s3624_s1 + $0x34] ss:$8 sps:$4 sm:$0xff]   ;;  %v2366_v14 = vld [vmem:[%s3624_s1 + $0x30] ss:$8 sps:$4 sm:$0xff]   ;;  %v2368_v16 = vld [vmem:[%s3624_s1 + $0x44] ss:$8 sps:$4 sm:$0xff]  }
   0x6   :  { %v2364_v13 = vld [vmem:[%s3624_s1 + $0x434] ss:$8 sps:$4 sm:$0xff]   ;;  %v2367_v15 = vld [vmem:[%s3624_s1 + $0x430] ss:$8 sps:$4 sm:$0xff]   ;;  %v2370_v17 = vld [vmem:[%s3624_s1 + $0x444] ss:$8 sps:$4 sm:$0xff]  }
   0x7   :  { %1620 = vmatpush1.bf16.msra.mxu1 %v2354_v6  ;;  %v2372_v18 = vld [vmem:[%s3624_s1 + $0x40] ss:$8 sps:$4 sm:$0xff]   ;;  %v2374_v20 = vld [vmem:[%s3624_s1 + $0x54] ss:$8 sps:$4 sm:$0xff]   ;;  %v2378_v22 = vld [vmem:[%s3624_s1 + $0x50] ss:$8 sps:$4 sm:$0xff]  }
   0x8   :  { %1784 = vmatpush1.bf16.msra.mxu0 %v2355_v7  ;;  %1621 = vmatprep.subr.bf16.mxu1 %v2356_v8  ;;  %v2373_v19 = vld [vmem:[%s3624_s1 + $0x440] ss:$8 sps:$4 sm:$0xff]   ;;  %v2376_v21 = vld [vmem:[%s3624_s1 + $0x454] ss:$8 sps:$4 sm:$0xff]   ;;  %v2379_v23 = vld [vmem:[%s3624_s1 + $0x450] ss:$8 sps:$4 sm:$0xff]  }
   0x9   :  { %1785 = vmatprep.subr.bf16.mxu0 %v2358_v9  ;;  %v2380_v24 = vld [vmem:[%s3624_s1 + $0x64] ss:$8 sps:$4 sm:$0xff]   ;;  %v2384_v26 = vld [vmem:[%s3624_s1 + $0x60] ss:$8 sps:$4 sm:$0xff]   ;;  %v2386_v28 = vld [vmem:[%s3624_s1 + $0x74] ss:$8 sps:$4 sm:$0xff]  }
   0xa   :  { %v2382_v25 = vld [vmem:[%s3624_s1 + $0x464] ss:$8 sps:$4 sm:$0xff]   ;;  %v2385_v27 = vld [vmem:[%s3624_s1 + $0x460] ss:$8 sps:$4 sm:$0xff]   ;;  %v2388_v29 = vld [vmem:[%s3624_s1 + $0x474] ss:$8 sps:$4 sm:$0xff]  }
   0xb   :  { %1622 = vmatpush1.bf16.msra.mxu1 %v2360_v10  ;;  %v2390_v30 = vld [vmem:[%s3624_s1 + $0x70] ss:$8 sps:$4 sm:$0xff]   ;;  %v2392_v32 = vld [vmem:[%s3624_s1 + $0x84] ss:$8 sps:$4 sm:$0xff]   ;;  %v2396_v34 = vld [vmem:[%s3624_s1 + $0x80] ss:$8 sps:$4 sm:$0xff]  }
   0xc   :  { %1786 = vmatpush1.bf16.msra.mxu0 %v2361_v11  ;;  %1623 = vmatprep.subr.bf16.mxu1 %v2362_v12  ;;  %v2391_v31 = vld [vmem:[%s3624_s1 + $0x470] ss:$8 sps:$4 sm:$0xff]   ;;  %v2394_v33 = vld [vmem:[%s3624_s1 + $0x484] ss:$8 sps:$4 sm:$0xff]   ;;  %v2397_v35 = vld [vmem:[%s3624_s1 + $0x480] ss:$8 sps:$4 sm:$0xff]  }
   0xd   :  { %1787 = vmatprep.subr.bf16.mxu0 %v2364_v13  ;;  %v2398_v36 = vld [vmem:[%s3624_s1 + $0x94] ss:$8 sps:$4 sm:$0xff]   ;;  %v2402_v38 = vld [vmem:[%s3624_s1 + $0x90] ss:$8 sps:$4 sm:$0xff]   ;;  %v2404_v40 = vld [vmem:[%s3624_s1 + $0xa4] ss:$8 sps:$4 sm:$0xff]  }
   0xe   :  { %v2400_v37 = vld [vmem:[%s3624_s1 + $0x494] ss:$8 sps:$4 sm:$0xff]   ;;  %v2403_v39 = vld [vmem:[%s3624_s1 + $0x490] ss:$8 sps:$4 sm:$0xff]   ;;  %v2406_v41 = vld [vmem:[%s3624_s1 + $0x4a4] ss:$8 sps:$4 sm:$0xff]  }
   0xf   :  { %1624 = vmatpush1.bf16.msra.mxu1 %v2366_v14  ;;  %v2408_v42 = vld [vmem:[%s3624_s1 + $0xa0] ss:$8 sps:$4 sm:$0xff]   ;;  %v2410_v44 = vld [vmem:[%s3624_s1 + $0xb4] ss:$8 sps:$4 sm:$0xff]   ;;  %v2414_v47 = vld [vmem:[%s3624_s1 + $0xb0] ss:$8 sps:$4 sm:$0xff]  }
  0x10   :  { %1788 = vmatpush1.bf16.msra.mxu0 %v2367_v15  ;;  %1625 = vmatprep.subr.bf16.mxu1 %v2368_v16  ;;  %v2409_v43 = vld [vmem:[%s3624_s1 + $0x4a0] ss:$8 sps:$4 sm:$0xff]   ;;  %v2412_v45 = vld [vmem:[%s3624_s1 + $0x4b4] ss:$8 sps:$4 sm:$0xff]   ;;  %v2415_v49 = vld [vmem:[%s3624_s1 + $0x4b0] ss:$8 sps:$4 sm:$0xff]  }
  0x11   :  { %1789 = vmatprep.subr.bf16.mxu0 %v2370_v17  ;;  %v17_v46 = vld [vmem:[%s3625_s0] sm:$0xff]  ;;  %v2422_v56 = vld [vmem:[%s3624_s1 + $0xd4] ss:$8 sps:$4 sm:$0xff]   ;;  %v2426_v58 = vld [vmem:[%s3624_s1 + $0xd0] ss:$8 sps:$4 sm:$0xff]  }
  0x12   :  { %v2045_v48 = vcombine.high %v17_v46, %v17_v46  ;;  %v21_v50 = vld [vmem:[%s3625_s0 + $0x20] sm:$0xff]  ;;  %v2424_v57 = vld [vmem:[%s3624_s1 + $0x4d4] ss:$8 sps:$4 sm:$0xff]   ;;  %v2427_v59 = vld [vmem:[%s3624_s1 + $0x4d0] ss:$8 sps:$4 sm:$0xff]   ;;  %v2044_v6 = vcombine.low %v17_v46, %v17_v46 }
  0x13   :  { %1626 = vmatpush1.bf16.msra.mxu1 %v2372_v18  ;;  %v2416_v51 = vld [vmem:[%s3624_s1 + $0xc4] ss:$8 sps:$4 sm:$0xff]   ;;  %v2053_v53 = vcombine.high %v21_v50, %v21_v50  ;;  %v2420_v54 = vld [vmem:[%s3624_s1 + $0xc0] ss:$8 sps:$4 sm:$0xff]   ;;  %v2434_v0 = vld [vmem:[%s3624_s1 + $0xf4] ss:$8 sps:$4 sm:$0xff]   ;;  %v2052_v7 = vcombine.low %v21_v50, %v21_v50 }
  0x14   :  { %1790 = vmatpush1.bf16.msra.mxu0 %v2373_v19  ;;  %1627 = vmatprep.subr.bf16.mxu1 %v2374_v20  ;;  %v2418_v52 = vld [vmem:[%s3624_s1 + $0x4c4] ss:$8 sps:$4 sm:$0xff]   ;;  %v2421_v55 = vld [vmem:[%s3624_s1 + $0x4c0] ss:$8 sps:$4 sm:$0xff]   ;;  %v2436_v1 = vld [vmem:[%s3624_s1 + $0x4f4] ss:$8 sps:$4 sm:$0xff]  }
  0x15   :  { %1791 = vmatprep.subr.bf16.mxu0 %v2376_v21  ;;  %1649 = vmatprep.mubr.bf16.mxu1 %v2045_v48  ;;  %v2428_v60 = vld [vmem:[%s3624_s1 + $0xe4] ss:$8 sps:$4 sm:$0xff]   ;;  %v2432_v62 = vld [vmem:[%s3624_s1 + $0xe0] ss:$8 sps:$4 sm:$0xff]   ;;  %v2438_v2 = vld [vmem:[%s3624_s1 + $0xf0] ss:$8 sps:$4 sm:$0xff]  }
  0x16   :  { %1813 = vmatprep.mubr.bf16.mxu0 %v2053_v53  ;;  %v2430_v61 = vld [vmem:[%s3624_s1 + $0x4e4] ss:$8 sps:$4 sm:$0xff]   ;;  %v2433_v63 = vld [vmem:[%s3624_s1 + $0x4e0] ss:$8 sps:$4 sm:$0xff]   ;;  %v2439_v3 = vld [vmem:[%s3624_s1 + $0x4f0] ss:$8 sps:$4 sm:$0xff]  }
  0x17   :  { %1628 = vmatpush1.bf16.msra.mxu1 %v2378_v22  ;;  %v2444_v4 = vld [vmem:[%s3624_s1 + $0x104] ss:$8 sps:$4 sm:$0xff]   ;;  %v2442_v8 = vld [vmem:[%s3624_s1 + $0x100] ss:$8 sps:$4 sm:$0xff]   ;;  %v2452_v10 = vld [vmem:[%s3624_s1 + $0x114] ss:$8 sps:$4 sm:$0xff]  }
  0x18   :  { %1792 = vmatpush1.bf16.msra.mxu0 %v2379_v23  ;;  %1629 = vmatprep.subr.bf16.mxu1 %v2380_v24  ;;  %v2449_v5 = vld [vmem:[%s3624_s1 + $0x504] ss:$8 sps:$4 sm:$0xff]   ;;  %v2447_v9 = vld [vmem:[%s3624_s1 + $0x500] ss:$8 sps:$4 sm:$0xff]   ;;  %v2455_v11 = vld [vmem:[%s3624_s1 + $0x514] ss:$8 sps:$4 sm:$0xff]  }
  0x19   :  { %1793 = vmatprep.subr.bf16.mxu0 %v2382_v25  ;;  %v2450_v12 = vld [vmem:[%s3624_s1 + $0x110] ss:$8 sps:$4 sm:$0xff]   ;;  %v2458_v14 = vld [vmem:[%s3624_s1 + $0x124] ss:$8 sps:$4 sm:$0xff]   ;;  %v2456_v16 = vld [vmem:[%s3624_s1 + $0x120] ss:$8 sps:$4 sm:$0xff]  }
  0x1a   :  { %v2453_v13 = vld [vmem:[%s3624_s1 + $0x510] ss:$8 sps:$4 sm:$0xff]   ;;  %v2461_v15 = vld [vmem:[%s3624_s1 + $0x524] ss:$8 sps:$4 sm:$0xff]   ;;  %v2459_v17 = vld [vmem:[%s3624_s1 + $0x520] ss:$8 sps:$4 sm:$0xff]  }
  0x1b   :  { %1630 = vmatpush1.bf16.msra.mxu1 %v2384_v26  ;;  %v2464_v18 = vld [vmem:[%s3624_s1 + $0x134] ss:$8 sps:$4 sm:$0xff]   ;;  %v2462_v20 = vld [vmem:[%s3624_s1 + $0x130] ss:$8 sps:$4 sm:$0xff]   ;;  %v2470_v22 = vld [vmem:[%s3624_s1 + $0x144] ss:$8 sps:$4 sm:$0xff]  }
  0x1c   :  { %1794 = vmatpush1.bf16.msra.mxu0 %v2385_v27  ;;  %1631 = vmatprep.subr.bf16.mxu1 %v2386_v28  ;;  %v2467_v19 = vld [vmem:[%s3624_s1 + $0x534] ss:$8 sps:$4 sm:$0xff]   ;;  %v2465_v21 = vld [vmem:[%s3624_s1 + $0x530] ss:$8 sps:$4 sm:$0xff]   ;;  %v2473_v23 = vld [vmem:[%s3624_s1 + $0x544] ss:$8 sps:$4 sm:$0xff]  }
  0x1d   :  { %1795 = vmatprep.subr.bf16.mxu0 %v2388_v29  ;;  %v2468_v24 = vld [vmem:[%s3624_s1 + $0x140] ss:$8 sps:$4 sm:$0xff]   ;;  %v2476_v26 = vld [vmem:[%s3624_s1 + $0x154] ss:$8 sps:$4 sm:$0xff]   ;;  %v2474_v28 = vld [vmem:[%s3624_s1 + $0x150] ss:$8 sps:$4 sm:$0xff]  }
  0x1e   :  { %v2471_v25 = vld [vmem:[%s3624_s1 + $0x540] ss:$8 sps:$4 sm:$0xff]   ;;  %v2479_v27 = vld [vmem:[%s3624_s1 + $0x554] ss:$8 sps:$4 sm:$0xff]   ;;  %v2477_v29 = vld [vmem:[%s3624_s1 + $0x550] ss:$8 sps:$4 sm:$0xff]  }
  0x1f   :  { %1632 = vmatpush1.bf16.msra.mxu1 %v2390_v30  ;;  %v2482_v30 = vld [vmem:[%s3624_s1 + $0x164] ss:$8 sps:$4 sm:$0xff]   ;;  %v2500_v46 = vld [vmem:[%s3624_s1 + $0x194] ss:$8 sps:$4 sm:$0xff]   ;;  %v2498_v48 = vld [vmem:[%s3624_s1 + $0x190] ss:$8 sps:$4 sm:$0xff]  }
  0x20   :  { %1796 = vmatpush1.bf16.msra.mxu0 %v2391_v31  ;;  %1633 = vmatprep.subr.bf16.mxu1 %v2392_v32  ;;  %v2485_v31 = vld [vmem:[%s3624_s1 + $0x564] ss:$8 sps:$4 sm:$0xff]   ;;  %v2507_v53 = vld [vmem:[%s3624_s1 + $0x5a0] ss:$8 sps:$4 sm:$0xff]  }
  0x21   :  { %1797 = vmatprep.subr.bf16.mxu0 %v2394_v33  ;;  %v3052_v32 = vld [vmem:[%s3625_s0 + $0x8] sm:$0xff] }
  0x22   :  { %v2480_v33 = vld [vmem:[%s3624_s1 + $0x160] ss:$8 sps:$4 sm:$0xff]   ;;  %v2506_v50 = vld [vmem:[%s3624_s1 + $0x1a4] ss:$8 sps:$4 sm:$0xff]  }
  0x23   :  { %1634 = vmatpush1.bf16.msra.mxu1 %v2396_v34  ;;  %v2483_v34 = vld [vmem:[%s3624_s1 + $0x560] ss:$8 sps:$4 sm:$0xff]  }
  0x24   :  { %1798 = vmatpush1.bf16.msra.mxu0 %v2397_v35  ;;  %1635 = vmatprep.subr.bf16.mxu1 %v2398_v36  ;;  %v2047_v35 = vcombine.high %v3052_v32, %v3052_v32  ;;  %v3065_v36 = vld [vmem:[%s3625_s0 + $0x28] sm:$0xff] }
  0x25   :  { %1799 = vmatprep.subr.bf16.mxu0 %v2400_v37  ;;  %v2488_v37 = vld [vmem:[%s3624_s1 + $0x174] ss:$8 sps:$4 sm:$0xff]  }
  0x27   :  { %1636 = vmatpush1.bf16.msra.mxu1 %v2402_v38  ;;  %v2055_v38 = vcombine.high %v3065_v36, %v3065_v36 }
  0x28   :  { %1800 = vmatpush1.bf16.msra.mxu0 %v2403_v39  ;;  %1637 = vmatprep.subr.bf16.mxu1 %v2404_v40  ;;  %v2491_v39 = vld [vmem:[%s3624_s1 + $0x574] ss:$8 sps:$4 sm:$0xff]   ;;  %v2486_v40 = vld [vmem:[%s3624_s1 + $0x170] ss:$8 sps:$4 sm:$0xff]  }
  0x29   :  { %1801 = vmatprep.subr.bf16.mxu0 %v2406_v41  ;;  %v2489_v41 = vld [vmem:[%s3624_s1 + $0x570] ss:$8 sps:$4 sm:$0xff]  }
  0x2b   :  { %1638 = vmatpush1.bf16.msra.mxu1 %v2408_v42  ;;  %v2494_v42 = vld [vmem:[%s3624_s1 + $0x184] ss:$8 sps:$4 sm:$0xff]  }
  0x2c   :  { %1802 = vmatpush1.bf16.msra.mxu0 %v2409_v43  ;;  %1639 = vmatprep.subr.bf16.mxu1 %v2410_v44  ;;  %v2497_v43 = vld [vmem:[%s3624_s1 + $0x584] ss:$8 sps:$4 sm:$0xff]   ;;  %v2492_v44 = vld [vmem:[%s3624_s1 + $0x180] ss:$8 sps:$4 sm:$0xff]  }
  0x2d   :  { %1803 = vmatprep.subr.bf16.mxu0 %v2412_v45  ;;  %v2495_v45 = vld [vmem:[%s3624_s1 + $0x580] ss:$8 sps:$4 sm:$0xff]  }
  0x2f   :  { %1640 = vmatpush1.bf16.msra.mxu1 %v2414_v47  ;;  %v2503_v47 = vld [vmem:[%s3624_s1 + $0x594] ss:$8 sps:$4 sm:$0xff]  }
  0x30   :  { %1804 = vmatpush1.bf16.msra.mxu0 %v2415_v49  ;;  %1641 = vmatprep.subr.bf16.mxu1 %v2416_v51  ;;  %v2501_v49 = vld [vmem:[%s3624_s1 + $0x590] ss:$8 sps:$4 sm:$0xff]   ;;  %v2509_v51 = vld [vmem:[%s3624_s1 + $0x5a4] ss:$8 sps:$4 sm:$0xff]  }
  0x31   :  { %1805 = vmatprep.subr.bf16.mxu0 %v2418_v52  ;;  %v2504_v52 = vld [vmem:[%s3624_s1 + $0x1a0] ss:$8 sps:$4 sm:$0xff]  }
  0x33   :  { %1642 = vmatpush1.bf16.msra.mxu1 %v2420_v54  ;;  %v2512_v54 = vld [vmem:[%s3624_s1 + $0x1b4] ss:$8 sps:$4 sm:$0xff]  }
  0x34   :  { %1806 = vmatpush1.bf16.msra.mxu0 %v2421_v55  ;;  %1643 = vmatprep.subr.bf16.mxu1 %v2422_v56  ;;  %v2515_v55 = vld [vmem:[%s3624_s1 + $0x5b4] ss:$8 sps:$4 sm:$0xff]   ;;  %v2510_v56 = vld [vmem:[%s3624_s1 + $0x1b0] ss:$8 sps:$4 sm:$0xff]  }
  0x35   :  { %1807 = vmatprep.subr.bf16.mxu0 %v2424_v57  ;;  %v2513_v57 = vld [vmem:[%s3624_s1 + $0x5b0] ss:$8 sps:$4 sm:$0xff]  }
  0x37   :  { %1644 = vmatpush1.bf16.msra.mxu1 %v2426_v58  ;;  %v2518_v58 = vld [vmem:[%s3624_s1 + $0x1c4] ss:$8 sps:$4 sm:$0xff]  }
  0x38   :  { %1808 = vmatpush1.bf16.msra.mxu0 %v2427_v59  ;;  %1645 = vmatprep.subr.bf16.mxu1 %v2428_v60  ;;  %v2521_v59 = vld [vmem:[%s3624_s1 + $0x5c4] ss:$8 sps:$4 sm:$0xff]   ;;  %v2516_v60 = vld [vmem:[%s3624_s1 + $0x1c0] ss:$8 sps:$4 sm:$0xff]  }
  0x39   :  { %1809 = vmatprep.subr.bf16.mxu0 %v2430_v61  ;;  %v2519_v61 = vld [vmem:[%s3624_s1 + $0x5c0] ss:$8 sps:$4 sm:$0xff]  }
  0x3b   :  { %1646 = vmatpush1.bf16.msra.mxu1 %v2432_v62  ;;  %v2524_v62 = vld [vmem:[%s3624_s1 + $0x1d4] ss:$8 sps:$4 sm:$0xff]  }
  0x3c   :  { %1810 = vmatpush1.bf16.msra.mxu0 %v2433_v63  ;;  %1647 = vmatprep.subr.bf16.mxu1 %v2434_v0  ;;  %v2527_v63 = vld [vmem:[%s3624_s1 + $0x5d4] ss:$8 sps:$4 sm:$0xff]   ;;  %v2522_v0 = vld [vmem:[%s3624_s1 + $0x1d0] ss:$8 sps:$4 sm:$0xff]  }
  0x3d   :  { %1811 = vmatprep.subr.bf16.mxu0 %v2436_v1  ;;  %v2525_v1 = vld [vmem:[%s3624_s1 + $0x5d0] ss:$8 sps:$4 sm:$0xff]  }
  0x3f   :  { %1648 = vmatpush1.bf16.msra.mxu1 %v2438_v2  ;;  %v2530_v2 = vld [vmem:[%s3624_s1 + $0x1e4] ss:$8 sps:$4 sm:$0xff]  }
  0x40   :  { %1812 = vmatpush1.bf16.msra.mxu0 %v2439_v3  ;;  %1658 = vmatprep.subr.bf16.mxu1 %v2444_v4  ;;  %v2533_v3 = vld [vmem:[%s3624_s1 + $0x5e4] ss:$8 sps:$4 sm:$0xff]   ;;  %v2528_v4 = vld [vmem:[%s3624_s1 + $0x1e0] ss:$8 sps:$4 sm:$0xff]  }
  0x41   :  { %1822 = vmatprep.subr.bf16.mxu0 %v2449_v5  ;;  %v2531_v5 = vld [vmem:[%s3624_s1 + $0x5e0] ss:$8 sps:$4 sm:$0xff]  }
  0x42   :  { %1650 = vmatmul.mubr.bf16.vlgmr.msra.gmra.mrb[0].mxu1 %v2044_v6  ;;  %v2536_v6 = vld [vmem:[%s3624_s1 + $0x1f4] ss:$8 sps:$4 sm:$0xff]  }
  0x43   :  { %1814 = vmatmul.mubr.bf16.vlgmr.msra.gmra.mrb[0].mxu0 %v2052_v7  ;;  %1659 = vmatpush1.bf16.msra.mxu1 %v2442_v8  ;;  %v2539_v7 = vld [vmem:[%s3624_s1 + $0x5f4] ss:$8 sps:$4 sm:$0xff]   ;;  %v2534_v8 = vld [vmem:[%s3624_s1 + $0x1f0] ss:$8 sps:$4 sm:$0xff]  }
  0x44   :  { %1823 = vmatpush1.bf16.msra.mxu0 %v2447_v9  ;;  %1660 = vmatprep.subr.bf16.mxu1 %v2452_v10  ;;  %v2537_v9 = vld [vmem:[%s3624_s1 + $0x5f0] ss:$8 sps:$4 sm:$0xff]   ;;  %v2544_v10 = vld [vmem:[%s3624_s1 + $0x204] ss:$8 sps:$4 sm:$0xff]  }
  0x45   :  { %1824 = vmatprep.subr.bf16.mxu0 %v2455_v11  ;;  %1690 = vmatprep.mubr.bf16.mxu1 %v2047_v35  ;;  %v2549_v11 = vld [vmem:[%s3624_s1 + $0x604] ss:$8 sps:$4 sm:$0xff]   ;;  %v2571_v35 = vld [vmem:[%s3624_s1 + $0x640] ss:$8 sps:$4 sm:$0xff]  }
  0x46   :  { %1854 = vmatprep.mubr.bf16.mxu0 %v2055_v38  ;;  %v2574_v38 = vld [vmem:[%s3624_s1 + $0x250] ss:$8 sps:$4 sm:$0xff]  }
  0x47   :  { %1661 = vmatpush1.bf16.msra.mxu1 %v2450_v12  ;;  %v2046_v12 = vcombine.low %v3052_v32, %v3052_v32  ;;  %v2570_v32 = vld [vmem:[%s3624_s1 + $0x244] ss:$8 sps:$4 sm:$0xff]  }
  0x48   :  { %1825 = vmatpush1.bf16.msra.mxu0 %v2453_v13  ;;  %1662 = vmatprep.subr.bf16.mxu1 %v2458_v14  ;;  %v2542_v13 = vld [vmem:[%s3624_s1 + $0x200] ss:$8 sps:$4 sm:$0xff]   ;;  %v2054_v14 = vcombine.low %v3065_v36, %v3065_v36  ;;  %v2576_v36 = vld [vmem:[%s3624_s1 + $0x254] ss:$8 sps:$4 sm:$0xff]  }
  0x49   :  { %1826 = vmatprep.subr.bf16.mxu0 %v2461_v15  ;;  %v2547_v15 = vld [vmem:[%s3624_s1 + $0x600] ss:$8 sps:$4 sm:$0xff]  }
  0x4b   :  { %1663 = vmatpush1.bf16.msra.mxu1 %v2456_v16  ;;  %v2552_v16 = vld [vmem:[%s3624_s1 + $0x214] ss:$8 sps:$4 sm:$0xff]  }
  0x4c   :  { %1827 = vmatpush1.bf16.msra.mxu0 %v2459_v17  ;;  %1664 = vmatprep.subr.bf16.mxu1 %v2464_v18  ;;  %v2555_v17 = vld [vmem:[%s3624_s1 + $0x614] ss:$8 sps:$4 sm:$0xff]  }
  0x4d   :  { %1828 = vmatprep.subr.bf16.mxu0 %v2467_v19  ;;  %v3202_v18 = vld [vmem:[%s3625_s0 + $0x10] sm:$0xff] }
  0x4e   :  { %v2049_v19 = vcombine.high %v3202_v18, %v3202_v18 }
  0x4f   :  { %1665 = vmatpush1.bf16.msra.mxu1 %v2462_v20  ;;  %v3209_v20 = vld [vmem:[%s3625_s0 + $0x30] sm:$0xff] }
  0x50   :  { %1829 = vmatpush1.bf16.msra.mxu0 %v2465_v21  ;;  %1666 = vmatprep.subr.bf16.mxu1 %v2470_v22  ;;  %v2550_v21 = vld [vmem:[%s3624_s1 + $0x210] ss:$8 sps:$4 sm:$0xff]  }
  0x51   :  { %1830 = vmatprep.subr.bf16.mxu0 %v2473_v23  ;;  %v2553_v22 = vld [vmem:[%s3624_s1 + $0x610] ss:$8 sps:$4 sm:$0xff]   ;;  %v2057_v23 = vcombine.high %v3209_v20, %v3209_v20 }
  0x53   :  { %1667 = vmatpush1.bf16.msra.mxu1 %v2468_v24  ;;  %v2558_v24 = vld [vmem:[%s3624_s1 + $0x224] ss:$8 sps:$4 sm:$0xff]  }
  0x54   :  { %1831 = vmatpush1.bf16.msra.mxu0 %v2471_v25  ;;  %1668 = vmatprep.subr.bf16.mxu1 %v2476_v26  ;;  %v2561_v25 = vld [vmem:[%s3624_s1 + $0x624] ss:$8 sps:$4 sm:$0xff]   ;;  %v2556_v26 = vld [vmem:[%s3624_s1 + $0x220] ss:$8 sps:$4 sm:$0xff]  }
  0x55   :  { %1832 = vmatprep.subr.bf16.mxu0 %v2479_v27  ;;  %v2559_v27 = vld [vmem:[%s3624_s1 + $0x620] ss:$8 sps:$4 sm:$0xff]  }
  0x57   :  { %1669 = vmatpush1.bf16.msra.mxu1 %v2474_v28  ;;  %v2564_v28 = vld [vmem:[%s3624_s1 + $0x234] ss:$8 sps:$4 sm:$0xff]  }
  0x58   :  { %1833 = vmatpush1.bf16.msra.mxu0 %v2477_v29  ;;  %1670 = vmatprep.subr.bf16.mxu1 %v2482_v30  ;;  %v2567_v29 = vld [vmem:[%s3624_s1 + $0x634] ss:$8 sps:$4 sm:$0xff]   ;;  %v2562_v30 = vld [vmem:[%s3624_s1 + $0x230] ss:$8 sps:$4 sm:$0xff]  }
  0x59   :  { %1834 = vmatprep.subr.bf16.mxu0 %v2485_v31  ;;  %v2565_v31 = vld [vmem:[%s3624_s1 + $0x630] ss:$8 sps:$4 sm:$0xff]  }
  0x5b   :  { %1671 = vmatpush1.bf16.msra.mxu1 %v2480_v33  ;;  %v2573_v33 = vld [vmem:[%s3624_s1 + $0x644] ss:$8 sps:$4 sm:$0xff]  }
  0x5c   :  { %1835 = vmatpush1.bf16.msra.mxu0 %v2483_v34  ;;  %1672 = vmatprep.subr.bf16.mxu1 %v2488_v37  ;;  %v2568_v34 = vld [vmem:[%s3624_s1 + $0x240] ss:$8 sps:$4 sm:$0xff]   ;;  %v2579_v37 = vld [vmem:[%s3624_s1 + $0x654] ss:$8 sps:$4 sm:$0xff]  }
  0x5d   :  { %1836 = vmatprep.subr.bf16.mxu0 %v2491_v39  ;;  %v2577_v39 = vld [vmem:[%s3624_s1 + $0x650] ss:$8 sps:$4 sm:$0xff]  }
  0x5f   :  { %1673 = vmatpush1.bf16.msra.mxu1 %v2486_v40  ;;  %v2582_v40 = vld [vmem:[%s3624_s1 + $0x264] ss:$8 sps:$4 sm:$0xff]  }
  0x60   :  { %1837 = vmatpush1.bf16.msra.mxu0 %v2489_v41  ;;  %1674 = vmatprep.subr.bf16.mxu1 %v2494_v42  ;;  %v2585_v41 = vld [vmem:[%s3624_s1 + $0x664] ss:$8 sps:$4 sm:$0xff]   ;;  %v2580_v42 = vld [vmem:[%s3624_s1 + $0x260] ss:$8 sps:$4 sm:$0xff]  }
  0x61   :  { %1838 = vmatprep.subr.bf16.mxu0 %v2497_v43  ;;  %v2583_v43 = vld [vmem:[%s3624_s1 + $0x660] ss:$8 sps:$4 sm:$0xff]  }
  0x63   :  { %1675 = vmatpush1.bf16.msra.mxu1 %v2492_v44  ;;  %v2588_v44 = vld [vmem:[%s3624_s1 + $0x274] ss:$8 sps:$4 sm:$0xff]  }
  0x64   :  { %1839 = vmatpush1.bf16.msra.mxu0 %v2495_v45  ;;  %1676 = vmatprep.subr.bf16.mxu1 %v2500_v46  ;;  %v2591_v45 = vld [vmem:[%s3624_s1 + $0x674] ss:$8 sps:$4 sm:$0xff]   ;;  %v2586_v46 = vld [vmem:[%s3624_s1 + $0x270] ss:$8 sps:$4 sm:$0xff]  }
  0x65   :  { %1840 = vmatprep.subr.bf16.mxu0 %v2503_v47  ;;  %v2589_v47 = vld [vmem:[%s3624_s1 + $0x670] ss:$8 sps:$4 sm:$0xff]  }
  0x67   :  { %1677 = vmatpush1.bf16.msra.mxu1 %v2498_v48  ;;  %v2594_v48 = vld [vmem:[%s3624_s1 + $0x284] ss:$8 sps:$4 sm:$0xff]  }
  0x68   :  { %1841 = vmatpush1.bf16.msra.mxu0 %v2501_v49  ;;  %1678 = vmatprep.subr.bf16.mxu1 %v2506_v50  ;;  %v2597_v49 = vld [vmem:[%s3624_s1 + $0x684] ss:$8 sps:$4 sm:$0xff]   ;;  %v2592_v50 = vld [vmem:[%s3624_s1 + $0x280] ss:$8 sps:$4 sm:$0xff]  }
  0x69   :  { %1842 = vmatprep.subr.bf16.mxu0 %v2509_v51  ;;  %v2595_v51 = vld [vmem:[%s3624_s1 + $0x680] ss:$8 sps:$4 sm:$0xff]  }
  0x6b   :  { %1679 = vmatpush1.bf16.msra.mxu1 %v2504_v52  ;;  %v2600_v52 = vld [vmem:[%s3624_s1 + $0x294] ss:$8 sps:$4 sm:$0xff]  }
  0x6c   :  { %1843 = vmatpush1.bf16.msra.mxu0 %v2507_v53  ;;  %1680 = vmatprep.subr.bf16.mxu1 %v2512_v54  ;;  %v2603_v53 = vld [vmem:[%s3624_s1 + $0x694] ss:$8 sps:$4 sm:$0xff]   ;;  %v2598_v54 = vld [vmem:[%s3624_s1 + $0x290] ss:$8 sps:$4 sm:$0xff]  }
  0x6d   :  { %1844 = vmatprep.subr.bf16.mxu0 %v2515_v55  ;;  %v2601_v55 = vld [vmem:[%s3624_s1 + $0x690] ss:$8 sps:$4 sm:$0xff]  }
  0x6f   :  { %1681 = vmatpush1.bf16.msra.mxu1 %v2510_v56  ;;  %v2606_v56 = vld [vmem:[%s3624_s1 + $0x2a4] ss:$8 sps:$4 sm:$0xff]  }
  0x70   :  { %1845 = vmatpush1.bf16.msra.mxu0 %v2513_v57  ;;  %1682 = vmatprep.subr.bf16.mxu1 %v2518_v58  ;;  %v2609_v57 = vld [vmem:[%s3624_s1 + $0x6a4] ss:$8 sps:$4 sm:$0xff]   ;;  %v2604_v58 = vld [vmem:[%s3624_s1 + $0x2a0] ss:$8 sps:$4 sm:$0xff]  }
  0x71   :  { %1846 = vmatprep.subr.bf16.mxu0 %v2521_v59  ;;  %v2607_v59 = vld [vmem:[%s3624_s1 + $0x6a0] ss:$8 sps:$4 sm:$0xff]  }
  0x73   :  { %1683 = vmatpush1.bf16.msra.mxu1 %v2516_v60  ;;  %v2612_v60 = vld [vmem:[%s3624_s1 + $0x2b4] ss:$8 sps:$4 sm:$0xff]  }
  0x74   :  { %1847 = vmatpush1.bf16.msra.mxu0 %v2519_v61  ;;  %1684 = vmatprep.subr.bf16.mxu1 %v2524_v62  ;;  %v2615_v61 = vld [vmem:[%s3624_s1 + $0x6b4] ss:$8 sps:$4 sm:$0xff]   ;;  %v2610_v62 = vld [vmem:[%s3624_s1 + $0x2b0] ss:$8 sps:$4 sm:$0xff]  }
  0x75   :  { %1848 = vmatprep.subr.bf16.mxu0 %v2527_v63  ;;  %v2613_v63 = vld [vmem:[%s3624_s1 + $0x6b0] ss:$8 sps:$4 sm:$0xff]  }
  0x77   :  { %1685 = vmatpush1.bf16.msra.mxu1 %v2522_v0  ;;  %v2618_v0 = vld [vmem:[%s3624_s1 + $0x2c4] ss:$8 sps:$4 sm:$0xff]  }
  0x78   :  { %1849 = vmatpush1.bf16.msra.mxu0 %v2525_v1  ;;  %1686 = vmatprep.subr.bf16.mxu1 %v2530_v2  ;;  %v2621_v1 = vld [vmem:[%s3624_s1 + $0x6c4] ss:$8 sps:$4 sm:$0xff]   ;;  %v2616_v2 = vld [vmem:[%s3624_s1 + $0x2c0] ss:$8 sps:$4 sm:$0xff]  }
  0x79   :  { %1850 = vmatprep.subr.bf16.mxu0 %v2533_v3  ;;  %v2619_v3 = vld [vmem:[%s3624_s1 + $0x6c0] ss:$8 sps:$4 sm:$0xff]  }
  0x7b   :  { %1687 = vmatpush1.bf16.msra.mxu1 %v2528_v4  ;;  %v2624_v4 = vld [vmem:[%s3624_s1 + $0x2d4] ss:$8 sps:$4 sm:$0xff]  }
  0x7c   :  { %1851 = vmatpush1.bf16.msra.mxu0 %v2531_v5  ;;  %1688 = vmatprep.subr.bf16.mxu1 %v2536_v6  ;;  %v2627_v5 = vld [vmem:[%s3624_s1 + $0x6d4] ss:$8 sps:$4 sm:$0xff]   ;;  %v2622_v6 = vld [vmem:[%s3624_s1 + $0x2d0] ss:$8 sps:$4 sm:$0xff]  }
  0x7d   :  { %1852 = vmatprep.subr.bf16.mxu0 %v2539_v7  ;;  %v2625_v7 = vld [vmem:[%s3624_s1 + $0x6d0] ss:$8 sps:$4 sm:$0xff]  }
  0x7f   :  { %1689 = vmatpush1.bf16.msra.mxu1 %v2534_v8  ;;  %v2630_v8 = vld [vmem:[%s3624_s1 + $0x2e4] ss:$8 sps:$4 sm:$0xff]  }
  0x80   :  { %1853 = vmatpush1.bf16.msra.mxu0 %v2537_v9  ;;  %1699 = vmatprep.subr.bf16.mxu1 %v2544_v10  ;;  %v2633_v9 = vld [vmem:[%s3624_s1 + $0x6e4] ss:$8 sps:$4 sm:$0xff]   ;;  %v2628_v10 = vld [vmem:[%s3624_s1 + $0x2e0] ss:$8 sps:$4 sm:$0xff]  }
  0x81   :  { %1863 = vmatprep.subr.bf16.mxu0 %v2549_v11  ;;  %v2631_v11 = vld [vmem:[%s3624_s1 + $0x6e0] ss:$8 sps:$4 sm:$0xff]  }
  0x82   :  { %1691 = vmatmul.mubr.bf16.vlgmr.msra.gmra.mrb[0].mxu1 %v2046_v12  ;;  %v2636_v12 = vld [vmem:[%s3624_s1 + $0x2f4] ss:$8 sps:$4 sm:$0xff]  }
  0x83   :  { %1855 = vmatmul.mubr.bf16.vlgmr.msra.gmra.mrb[0].mxu0 %v2054_v14  ;;  %1700 = vmatpush1.bf16.msra.mxu1 %v2542_v13  ;;  %v2639_v13 = vld [vmem:[%s3624_s1 + $0x6f4] ss:$8 sps:$4 sm:$0xff]   ;;  %v2634_v14 = vld [vmem:[%s3624_s1 + $0x2f0] ss:$8 sps:$4 sm:$0xff]  }
  0x84   :  { %1864 = vmatpush1.bf16.msra.mxu0 %v2547_v15  ;;  %1701 = vmatprep.subr.bf16.mxu1 %v2552_v16  ;;  %v2637_v15 = vld [vmem:[%s3624_s1 + $0x6f0] ss:$8 sps:$4 sm:$0xff]   ;;  %v2644_v16 = vld [vmem:[%s3624_s1 + $0x304] ss:$8 sps:$4 sm:$0xff]  }
  0x85   :  { %1865 = vmatprep.subr.bf16.mxu0 %v2555_v17  ;;  %1731 = vmatprep.mubr.bf16.mxu1 %v2049_v19  ;;  %v2649_v17 = vld [vmem:[%s3624_s1 + $0x704] ss:$8 sps:$4 sm:$0xff]   ;;  %v2048_v19 = vcombine.low %v3202_v18, %v3202_v18  ;;  %v2647_v18 = vld [vmem:[%s3624_s1 + $0x700] ss:$8 sps:$4 sm:$0xff]  }
  0x86   :  { %1895 = vmatprep.mubr.bf16.mxu0 %v2057_v23  ;;  %v3405_v23 = vld [vmem:[%s3625_s0 + $0x38] sm:$0xff] }
  0x87   :  { %1702 = vmatpush1.bf16.msra.mxu1 %v2550_v21  ;;  %v2056_v21 = vcombine.low %v3209_v20, %v3209_v20  ;;  %v2652_v20 = vld [vmem:[%s3624_s1 + $0x314] ss:$8 sps:$4 sm:$0xff]  }
  0x88   :  { %1866 = vmatpush1.bf16.msra.mxu0 %v2553_v22  ;;  %1703 = vmatprep.subr.bf16.mxu1 %v2558_v24  ;;  %v3400_v22 = vld [vmem:[%s3625_s0 + $0x18] sm:$0xff]  ;;  %v2642_v24 = vld [vmem:[%s3624_s1 + $0x300] ss:$8 sps:$4 sm:$0xff]  }
  0x89   :  { %1867 = vmatprep.subr.bf16.mxu0 %v2561_v25  ;;  %v2655_v25 = vld [vmem:[%s3624_s1 + $0x714] ss:$8 sps:$4 sm:$0xff]  }
  0x8b   :  { %1704 = vmatpush1.bf16.msra.mxu1 %v2556_v26  ;;  %v2051_v26 = vcombine.high %v3400_v22, %v3400_v22 }
  0x8c   :  { %1868 = vmatpush1.bf16.msra.mxu0 %v2559_v27  ;;  %1705 = vmatprep.subr.bf16.mxu1 %v2564_v28  ;;  %v2059_v27 = vcombine.high %v3405_v23, %v3405_v23  ;;  %v2650_v28 = vld [vmem:[%s3624_s1 + $0x310] ss:$8 sps:$4 sm:$0xff]  }
  0x8d   :  { %1869 = vmatprep.subr.bf16.mxu0 %v2567_v29  ;;  %v2653_v29 = vld [vmem:[%s3624_s1 + $0x710] ss:$8 sps:$4 sm:$0xff]  }
  0x8f   :  { %1706 = vmatpush1.bf16.msra.mxu1 %v2562_v30  ;;  %v2658_v30 = vld [vmem:[%s3624_s1 + $0x324] ss:$8 sps:$4 sm:$0xff]  }
  0x90   :  { %1870 = vmatpush1.bf16.msra.mxu0 %v2565_v31  ;;  %1707 = vmatprep.subr.bf16.mxu1 %v2570_v32  ;;  %v2661_v31 = vld [vmem:[%s3624_s1 + $0x724] ss:$8 sps:$4 sm:$0xff]   ;;  %v2656_v32 = vld [vmem:[%s3624_s1 + $0x320] ss:$8 sps:$4 sm:$0xff]  }
  0x91   :  { %1871 = vmatprep.subr.bf16.mxu0 %v2573_v33  ;;  %v2659_v33 = vld [vmem:[%s3624_s1 + $0x720] ss:$8 sps:$4 sm:$0xff]  }
  0x93   :  { %1708 = vmatpush1.bf16.msra.mxu1 %v2568_v34  ;;  %v2664_v34 = vld [vmem:[%s3624_s1 + $0x334] ss:$8 sps:$4 sm:$0xff]  }
  0x94   :  { %1872 = vmatpush1.bf16.msra.mxu0 %v2571_v35  ;;  %1709 = vmatprep.subr.bf16.mxu1 %v2576_v36  ;;  %v2667_v35 = vld [vmem:[%s3624_s1 + $0x734] ss:$8 sps:$4 sm:$0xff]   ;;  %v2662_v36 = vld [vmem:[%s3624_s1 + $0x330] ss:$8 sps:$4 sm:$0xff]  }
  0x95   :  { %1873 = vmatprep.subr.bf16.mxu0 %v2579_v37  ;;  %v2665_v37 = vld [vmem:[%s3624_s1 + $0x730] ss:$8 sps:$4 sm:$0xff]  }
  0x97   :  { %1710 = vmatpush1.bf16.msra.mxu1 %v2574_v38  ;;  %v2670_v38 = vld [vmem:[%s3624_s1 + $0x344] ss:$8 sps:$4 sm:$0xff]  }
  0x98   :  { %1874 = vmatpush1.bf16.msra.mxu0 %v2577_v39  ;;  %1711 = vmatprep.subr.bf16.mxu1 %v2582_v40  ;;  %v2673_v39 = vld [vmem:[%s3624_s1 + $0x744] ss:$8 sps:$4 sm:$0xff]   ;;  %v2668_v40 = vld [vmem:[%s3624_s1 + $0x340] ss:$8 sps:$4 sm:$0xff]  }
  0x99   :  { %1875 = vmatprep.subr.bf16.mxu0 %v2585_v41  ;;  %v2671_v41 = vld [vmem:[%s3624_s1 + $0x740] ss:$8 sps:$4 sm:$0xff]  }
  0x9b   :  { %1712 = vmatpush1.bf16.msra.mxu1 %v2580_v42  ;;  %v2676_v42 = vld [vmem:[%s3624_s1 + $0x354] ss:$8 sps:$4 sm:$0xff]  }
  0x9c   :  { %1876 = vmatpush1.bf16.msra.mxu0 %v2583_v43  ;;  %1713 = vmatprep.subr.bf16.mxu1 %v2588_v44  ;;  %v2679_v43 = vld [vmem:[%s3624_s1 + $0x754] ss:$8 sps:$4 sm:$0xff]   ;;  %v2674_v44 = vld [vmem:[%s3624_s1 + $0x350] ss:$8 sps:$4 sm:$0xff]  }
  0x9d   :  { %1877 = vmatprep.subr.bf16.mxu0 %v2591_v45  ;;  %v2677_v45 = vld [vmem:[%s3624_s1 + $0x750] ss:$8 sps:$4 sm:$0xff]  }
  0x9f   :  { %1714 = vmatpush1.bf16.msra.mxu1 %v2586_v46  ;;  %v2682_v46 = vld [vmem:[%s3624_s1 + $0x364] ss:$8 sps:$4 sm:$0xff]  }
  0xa0   :  { %1878 = vmatpush1.bf16.msra.mxu0 %v2589_v47  ;;  %1715 = vmatprep.subr.bf16.mxu1 %v2594_v48  ;;  %v2685_v47 = vld [vmem:[%s3624_s1 + $0x764] ss:$8 sps:$4 sm:$0xff]   ;;  %v2680_v48 = vld [vmem:[%s3624_s1 + $0x360] ss:$8 sps:$4 sm:$0xff]  }
  0xa1   :  { %1879 = vmatprep.subr.bf16.mxu0 %v2597_v49  ;;  %v2683_v49 = vld [vmem:[%s3624_s1 + $0x760] ss:$8 sps:$4 sm:$0xff]  }
  0xa3   :  { %1716 = vmatpush1.bf16.msra.mxu1 %v2592_v50  ;;  %v2688_v50 = vld [vmem:[%s3624_s1 + $0x374] ss:$8 sps:$4 sm:$0xff]  }
  0xa4   :  { %1880 = vmatpush1.bf16.msra.mxu0 %v2595_v51  ;;  %1717 = vmatprep.subr.bf16.mxu1 %v2600_v52  ;;  %v2691_v51 = vld [vmem:[%s3624_s1 + $0x774] ss:$8 sps:$4 sm:$0xff]   ;;  %v2686_v52 = vld [vmem:[%s3624_s1 + $0x370] ss:$8 sps:$4 sm:$0xff]  }
  0xa5   :  { %1881 = vmatprep.subr.bf16.mxu0 %v2603_v53  ;;  %v2689_v53 = vld [vmem:[%s3624_s1 + $0x770] ss:$8 sps:$4 sm:$0xff]  }
  0xa7   :  { %1718 = vmatpush1.bf16.msra.mxu1 %v2598_v54  ;;  %v2694_v54 = vld [vmem:[%s3624_s1 + $0x384] ss:$8 sps:$4 sm:$0xff]  }
  0xa8   :  { %1882 = vmatpush1.bf16.msra.mxu0 %v2601_v55  ;;  %1719 = vmatprep.subr.bf16.mxu1 %v2606_v56  ;;  %v2697_v55 = vld [vmem:[%s3624_s1 + $0x784] ss:$8 sps:$4 sm:$0xff]   ;;  %v2692_v56 = vld [vmem:[%s3624_s1 + $0x380] ss:$8 sps:$4 sm:$0xff]  }
  0xa9   :  { %1883 = vmatprep.subr.bf16.mxu0 %v2609_v57  ;;  %v2695_v57 = vld [vmem:[%s3624_s1 + $0x780] ss:$8 sps:$4 sm:$0xff]  }
  0xab   :  { %1720 = vmatpush1.bf16.msra.mxu1 %v2604_v58  ;;  %v2700_v58 = vld [vmem:[%s3624_s1 + $0x394] ss:$8 sps:$4 sm:$0xff]  }
  0xac   :  { %1884 = vmatpush1.bf16.msra.mxu0 %v2607_v59  ;;  %1721 = vmatprep.subr.bf16.mxu1 %v2612_v60  ;;  %v2703_v59 = vld [vmem:[%s3624_s1 + $0x794] ss:$8 sps:$4 sm:$0xff]   ;;  %v2698_v60 = vld [vmem:[%s3624_s1 + $0x390] ss:$8 sps:$4 sm:$0xff]  }
  0xad   :  { %1885 = vmatprep.subr.bf16.mxu0 %v2615_v61  ;;  %v2701_v61 = vld [vmem:[%s3624_s1 + $0x790] ss:$8 sps:$4 sm:$0xff]  }
  0xaf   :  { %1722 = vmatpush1.bf16.msra.mxu1 %v2610_v62  ;;  %v2706_v62 = vld [vmem:[%s3624_s1 + $0x3a4] ss:$8 sps:$4 sm:$0xff]  }
  0xb0   :  { %1886 = vmatpush1.bf16.msra.mxu0 %v2613_v63  ;;  %1723 = vmatprep.subr.bf16.mxu1 %v2618_v0  ;;  %v2709_v63 = vld [vmem:[%s3624_s1 + $0x7a4] ss:$8 sps:$4 sm:$0xff]   ;;  %v2704_v0 = vld [vmem:[%s3624_s1 + $0x3a0] ss:$8 sps:$4 sm:$0xff]  }
  0xb1   :  { %1887 = vmatprep.subr.bf16.mxu0 %v2621_v1  ;;  %v2707_v1 = vld [vmem:[%s3624_s1 + $0x7a0] ss:$8 sps:$4 sm:$0xff]  }
  0xb3   :  { %1724 = vmatpush1.bf16.msra.mxu1 %v2616_v2  ;;  %v2712_v2 = vld [vmem:[%s3624_s1 + $0x3b4] ss:$8 sps:$4 sm:$0xff]  }
  0xb4   :  { %1888 = vmatpush1.bf16.msra.mxu0 %v2619_v3  ;;  %1725 = vmatprep.subr.bf16.mxu1 %v2624_v4  ;;  %v2715_v3 = vld [vmem:[%s3624_s1 + $0x7b4] ss:$8 sps:$4 sm:$0xff]   ;;  %v2710_v4 = vld [vmem:[%s3624_s1 + $0x3b0] ss:$8 sps:$4 sm:$0xff]  }
  0xb5   :  { %1889 = vmatprep.subr.bf16.mxu0 %v2627_v5  ;;  %v2713_v5 = vld [vmem:[%s3624_s1 + $0x7b0] ss:$8 sps:$4 sm:$0xff]  }
  0xb7   :  { %1726 = vmatpush1.bf16.msra.mxu1 %v2622_v6  ;;  %v2718_v6 = vld [vmem:[%s3624_s1 + $0x3c4] ss:$8 sps:$4 sm:$0xff]  }
  0xb8   :  { %1890 = vmatpush1.bf16.msra.mxu0 %v2625_v7  ;;  %1727 = vmatprep.subr.bf16.mxu1 %v2630_v8  ;;  %v2721_v7 = vld [vmem:[%s3624_s1 + $0x7c4] ss:$8 sps:$4 sm:$0xff]   ;;  %v2716_v8 = vld [vmem:[%s3624_s1 + $0x3c0] ss:$8 sps:$4 sm:$0xff]  }
  0xb9   :  { %1891 = vmatprep.subr.bf16.mxu0 %v2633_v9  ;;  %v2719_v9 = vld [vmem:[%s3624_s1 + $0x7c0] ss:$8 sps:$4 sm:$0xff]  }
  0xbb   :  { %1728 = vmatpush1.bf16.msra.mxu1 %v2628_v10  ;;  %v2724_v10 = vld [vmem:[%s3624_s1 + $0x3d4] ss:$8 sps:$4 sm:$0xff]  }
  0xbc   :  { %1892 = vmatpush1.bf16.msra.mxu0 %v2631_v11  ;;  %1729 = vmatprep.subr.bf16.mxu1 %v2636_v12  ;;  %v2727_v11 = vld [vmem:[%s3624_s1 + $0x7d4] ss:$8 sps:$4 sm:$0xff]   ;;  %v2722_v12 = vld [vmem:[%s3624_s1 + $0x3d0] ss:$8 sps:$4 sm:$0xff]  }
  0xbd   :  { %1893 = vmatprep.subr.bf16.mxu0 %v2639_v13  ;;  %v2725_v13 = vld [vmem:[%s3624_s1 + $0x7d0] ss:$8 sps:$4 sm:$0xff]  }
  0xbf   :  { %1730 = vmatpush1.bf16.msra.mxu1 %v2634_v14  ;;  %v2730_v14 = vld [vmem:[%s3624_s1 + $0x3e4] ss:$8 sps:$4 sm:$0xff]  }
  0xc0   :  { %1894 = vmatpush1.bf16.msra.mxu0 %v2637_v15  ;;  %1740 = vmatprep.subr.bf16.mxu1 %v2644_v16  ;;  %v2733_v15 = vld [vmem:[%s3624_s1 + $0x7e4] ss:$8 sps:$4 sm:$0xff]   ;;  %v2728_v16 = vld [vmem:[%s3624_s1 + $0x3e0] ss:$8 sps:$4 sm:$0xff]  }
  0xc1   :  { %1904 = vmatprep.subr.bf16.mxu0 %v2649_v17  ;;  %v2731_v17 = vld [vmem:[%s3624_s1 + $0x7e0] ss:$8 sps:$4 sm:$0xff]  }
  0xc2   :  { %1732 = vmatmul.mubr.bf16.vlgmr.msra.gmra.mrb[0].mxu1 %v2048_v19  ;;  %v2736_v19 = vld [vmem:[%s3624_s1 + $0x3f4] ss:$8 sps:$4 sm:$0xff]  }
  0xc3   :  { %1896 = vmatmul.mubr.bf16.vlgmr.msra.gmra.mrb[0].mxu0 %v2056_v21  ;;  %1741 = vmatpush1.bf16.msra.mxu1 %v2642_v24  ;;  %v2739_v21 = vld [vmem:[%s3624_s1 + $0x7f4] ss:$8 sps:$4 sm:$0xff]   ;;  %v2734_v24 = vld [vmem:[%s3624_s1 + $0x3f0] ss:$8 sps:$4 sm:$0xff]  }
  0xc4   :  { %1905 = vmatpush1.bf16.msra.mxu0 %v2647_v18  ;;  %1742 = vmatprep.subr.bf16.mxu1 %v2652_v20  ;;  %v2737_v18 = vld [vmem:[%s3624_s1 + $0x7f0] ss:$8 sps:$4 sm:$0xff]   ;;  %v2050_v20 = vcombine.low %v3400_v22, %v3400_v22 }
  0xc5   :  { %1906 = vmatprep.subr.bf16.mxu0 %v2655_v25  ;;  %1772 = vmatprep.mubr.bf16.mxu1 %v2051_v26  ;;  %v2058_v25 = vcombine.low %v3405_v23, %v3405_v23 }
  0xc6   :  { %1936 = vmatprep.mubr.bf16.mxu0 %v2059_v27 }
  0xc7   :  { %1743 = vmatpush1.bf16.msra.mxu1 %v2650_v28 }
  0xc8   :  { %1907 = vmatpush1.bf16.msra.mxu0 %v2653_v29  ;;  %1744 = vmatprep.subr.bf16.mxu1 %v2658_v30 }
  0xc9   :  { %1908 = vmatprep.subr.bf16.mxu0 %v2661_v31 }
  0xcb   :  { %1745 = vmatpush1.bf16.msra.mxu1 %v2656_v32 }
  0xcc   :  { %1909 = vmatpush1.bf16.msra.mxu0 %v2659_v33  ;;  %1746 = vmatprep.subr.bf16.mxu1 %v2664_v34 }
  0xcd   :  { %1910 = vmatprep.subr.bf16.mxu0 %v2667_v35 }
  0xcf   :  { %1747 = vmatpush1.bf16.msra.mxu1 %v2662_v36 }
  0xd0   :  { %1911 = vmatpush1.bf16.msra.mxu0 %v2665_v37  ;;  %1748 = vmatprep.subr.bf16.mxu1 %v2670_v38 }
  0xd1   :  { %1912 = vmatprep.subr.bf16.mxu0 %v2673_v39 }
  0xd3   :  { %1749 = vmatpush1.bf16.msra.mxu1 %v2668_v40 }
  0xd4   :  { %1913 = vmatpush1.bf16.msra.mxu0 %v2671_v41  ;;  %1750 = vmatprep.subr.bf16.mxu1 %v2676_v42 }
  0xd5   :  { %1914 = vmatprep.subr.bf16.mxu0 %v2679_v43 }
  0xd7   :  { %1751 = vmatpush1.bf16.msra.mxu1 %v2674_v44 }
  0xd8   :  { %1915 = vmatpush1.bf16.msra.mxu0 %v2677_v45  ;;  %1752 = vmatprep.subr.bf16.mxu1 %v2682_v46 }
  0xd9   :  { %1916 = vmatprep.subr.bf16.mxu0 %v2685_v47 }
  0xdb   :  { %1753 = vmatpush1.bf16.msra.mxu1 %v2680_v48 }
  0xdc   :  { %1917 = vmatpush1.bf16.msra.mxu0 %v2683_v49  ;;  %1754 = vmatprep.subr.bf16.mxu1 %v2688_v50 }
  0xdd   :  { %1918 = vmatprep.subr.bf16.mxu0 %v2691_v51 }
  0xdf   :  { %1755 = vmatpush1.bf16.msra.mxu1 %v2686_v52 }
  0xe0   :  { %1919 = vmatpush1.bf16.msra.mxu0 %v2689_v53  ;;  %1756 = vmatprep.subr.bf16.mxu1 %v2694_v54 }
  0xe1   :  { %1920 = vmatprep.subr.bf16.mxu0 %v2697_v55 }
  0xe3   :  { %1757 = vmatpush1.bf16.msra.mxu1 %v2692_v56 }
  0xe4   :  { %1921 = vmatpush1.bf16.msra.mxu0 %v2695_v57  ;;  %1758 = vmatprep.subr.bf16.mxu1 %v2700_v58 }
  0xe5   :  { %1922 = vmatprep.subr.bf16.mxu0 %v2703_v59 }
  0xe7   :  { %1759 = vmatpush1.bf16.msra.mxu1 %v2698_v60 }
  0xe8   :  { %1923 = vmatpush1.bf16.msra.mxu0 %v2701_v61  ;;  %1760 = vmatprep.subr.bf16.mxu1 %v2706_v62 }
  0xe9   :  { %1924 = vmatprep.subr.bf16.mxu0 %v2709_v63 }
  0xeb   :  { %1761 = vmatpush1.bf16.msra.mxu1 %v2704_v0 }
  0xec   :  { %1925 = vmatpush1.bf16.msra.mxu0 %v2707_v1  ;;  %1762 = vmatprep.subr.bf16.mxu1 %v2712_v2 }
  0xed   :  { %1926 = vmatprep.subr.bf16.mxu0 %v2715_v3  ;;  %v1987_v3 = vlaneseq }
  0xef   :  { %1763 = vmatpush1.bf16.msra.mxu1 %v2710_v4 }
  0xf0   :  { %1927 = vmatpush1.bf16.msra.mxu0 %v2713_v5  ;;  %1764 = vmatprep.subr.bf16.mxu1 %v2718_v6 }
  0xf1   :  { %1928 = vmatprep.subr.bf16.mxu0 %v2721_v7 }
  0xf3   :  { %1765 = vmatpush1.bf16.msra.mxu1 %v2716_v8  ;;  %v1988_v8 = vshrl.u32 %v1987_v3, 7 }
  0xf4   :  { %1929 = vmatpush1.bf16.msra.mxu0 %v2719_v9  ;;  %1766 = vmatprep.subr.bf16.mxu1 %v2724_v10 }
  0xf5   :  { %1930 = vmatprep.subr.bf16.mxu0 %v2727_v11  ;;  %v1989_v10 = vsub.s32 0, %v1988_v8  ;;  %v1985_v11 = vld [vmem:[%s3626_s2] sm:$0x3] }
  0xf7   :  { %1767 = vmatpush1.bf16.msra.mxu1 %v2722_v12  ;;  %v1993_v12 = vsub.s32 1, %v1988_v8 }
  0xf8   :  { %1931 = vmatpush1.bf16.msra.mxu0 %v2725_v13  ;;  %1768 = vmatprep.subr.bf16.mxu1 %v2730_v14  ;;  %v1990_v13 = vrot.slane %v1985_v11, %v1989_v10 }
  0xf9   :  { %1932 = vmatprep.subr.bf16.mxu0 %v2733_v15  ;;  %v1994_v14 = vrot.slane %v1985_v11, %v1993_v12 }
  0xfb   :  { %1769 = vmatpush1.bf16.msra.mxu1 %v2728_v16  ;;  %v2011_v16 = vld [vmem:[%s3627_s3] sm:$0x3] }
  0xfc   :  { %1933 = vmatpush1.bf16.msra.mxu0 %v2731_v17  ;;  %1770 = vmatprep.subr.bf16.mxu1 %v2736_v19 }
  0xfd   :  { %1934 = vmatprep.subr.bf16.mxu0 %v2739_v21 }
  0xff   :  { %1771 = vmatpush1.bf16.msra.mxu1 %v2734_v24 }
 0x100   :  { %1935 = vmatpush1.bf16.msra.mxu0 %v2737_v18 }
 0x102   :  { %1773 = vmatmul.mubr.bf16.vlgmr.msra.gmra.mrb[0].mxu1 %v2050_v20  ;;  %v2016_v20 = vrot.slane %v2011_v16, %v1989_v10 }
 0x103   :  { %1937 = vmatmul.mubr.bf16.vlgmr.msra.gmra.mrb[0].mxu0 %v2058_v25 }
 0x1d5   :  { %v1774_v26 = vpop.f32.mrb[0].mxu1 }
 0x1d6   :  { %v1938_v27 = vpop.f32.mrb[0].mxu0  ;;  %v1776_v29 = vpop.f32.mrb[1].mxu1 }
 0x1d7   :  { %v3601_v28 = vadd.f32 %v1938_v27, %v1774_v26  ;;  %v1940_v30 = vpop.f32.mrb[1].mxu0  ;;  %v1778_v32 = vpop.f32.mrb[2].mxu1  ;;  %v2020_v27 = vrot.slane %v2011_v16, %v1993_v12 }
 0x1d8   :  { %v3603_v31 = vadd.f32 %v1940_v30, %v1776_v29  ;;  %v1942_v33 = vpop.f32.mrb[2].mxu0  ;;  %v1779_v23 = vpop.f32.mrb[3].mxu1 }
 0x1d9   :  { %v1945_v34 = vrot.slane %v3601_v28, 4  ;;  %v1957_v22 = vmul.f32 %v3601_v28, %v3601_v28  ;;  %v1943_v35 = vpop.f32.mrb[3].mxu0 }
 0x1da   :  { %v1951_v36 = vrot.slane %v3603_v31, 4  ;;  %v1958_v37 = vmul.f32 %v3603_v31, %v3603_v31 }
 0x1db   :  { %v1946_v38 = vadd.f32 %v3601_v28, %v1945_v34  ;;  %v1959_v39 = vrot.slane %v1957_v22, 4 }
 0x1dc   :  { %v1952_v40 = vadd.f32 %v3603_v31, %v1951_v36  ;;  %v1965_v41 = vrot.slane %v1958_v37, 4 }
 0x1dd   :  { %v1947_v42 = vrot.slane %v1946_v38, 2  ;;  %v1960_v43 = vadd.f32 %v1959_v39, %v1957_v22 }
 0x1de   :  { %v1953_v44 = vrot.slane %v1952_v40, 2  ;;  %v1966_v45 = vadd.f32 %v1965_v41, %v1958_v37 }
 0x1df   :  { %v1948_v46 = vadd.f32 %v1947_v42, %v1946_v38  ;;  %v1961_v47 = vrot.slane %v1960_v43, 2 }
 0x1e0   :  { %v1954_v48 = vadd.f32 %v1953_v44, %v1952_v40  ;;  %v1967_v49 = vrot.slane %v1966_v45, 2 }
 0x1e1   :  { %v1949_v50 = vrot.slane %v1948_v46, 1  ;;  %v1962_v51 = vadd.f32 %v1961_v47, %v1960_v43 }
 0x1e2   :  { %v1955_v52 = vrot.slane %v1954_v48, 1  ;;  %v1968_v53 = vadd.f32 %v1967_v49, %v1966_v45 }
 0x1e3   :  { %v1950_v54 = vadd.f32 %v1949_v50, %v1948_v46  ;;  %v1963_v55 = vrot.slane %v1962_v51, 1 }
 0x1e4   :  { %v1956_v56 = vadd.f32 %v1955_v52, %v1954_v48  ;;  %v1969_v57 = vrot.slane %v1968_v53, 1 }
 0x1e5   :  { %v1964_v58 = vadd.f32 %v1963_v55, %v1962_v51  ;;  %v1971_v59 = vmul.f32 0.125, %v1950_v54 }
 0x1e6   :  { %v1970_v60 = vadd.f32 %v1969_v57, %v1968_v53  ;;  %v1972_v61 = vmul.f32 0.125, %v1956_v56 }
 0x1e7   :  { %v1973_v62 = vmul.f32 0.125, %v1964_v58  ;;  %v1975_v63 = vmul.f32 %v1971_v59, %v1971_v59  ;;  %v1999_v24 = vsub.f32 %v3601_v28, %v1971_v59 }
 0x1e8   :  { %v1974_v0 = vmul.f32 0.125, %v1970_v60  ;;  %v1976_v1 = vmul.f32 %v1972_v61, %v1972_v61  ;;  %v2000_v25 = vsub.f32 %v3603_v31, %v1972_v61 }
 0x1e9   :  { %v1977_v2 = vsub.f32 %v1973_v62, %v1975_v63 }
 0x1ea   :  { %v1978_v4 = vsub.f32 %v1974_v0, %v1976_v1 }
 0x1eb   :  { %v1979_v5 = vmax.f32 %v1977_v2, 0.0 }
 0x1ec   :  { %v1980_v6 = vmax.f32 %v1978_v4, 0.0 }
 0x1ed   :  { %v1981_v7 = vadd.f32 1e-05, %v1979_v5 }
 0x1ee   :  { %v1982_v9 = vadd.f32 1e-05, %v1980_v6 }
 0x1ef   :  { %2744 = vrsqrt.f32 %v1981_v7 }
 0x1f0   :  { %2746 = vrsqrt.f32 %v1982_v9 }
 0x1f9   :  { %v2745_v15 = vpop.eup %2744 }
 0x1fa   :  { %v2747_v17 = vpop.eup %2746  ;;  %v1997_v19 = vmul.f32 %v2745_v15, %v1990_v13 }
 0x1fb   :  { %v1998_v21 = vmul.f32 %v2747_v17, %v1994_v14 }
 0x1fc   :  { %v2004_v18 = vrot.slane %v1997_v19, %v1989_v10 }
 0x1fd   :  { %v2008_v26 = vrot.slane %v1998_v21, %v1989_v10 }
 0x1fe   :  { %v2009_v29 = vmul.f32 %v2004_v18, %v1999_v24 }
 0x1ff   :  { %v2010_v30 = vmul.f32 %v2008_v26, %v2000_v25 }
 0x200   :  { %v2023_v32 = vadd.f32 %v2016_v20, %v2009_v29 }
 0x201   :  { %v2024_v33 = vadd.f32 %v2020_v27, %v2010_v30 }
 0x202   :  { %vm2025_vm0 = vcmp.gt.f32.partialorder %v2023_v32, 0.0  ;;  %v2027_v34 = vmul.f32 0.2, %v2023_v32 }
 0x203   :  { %vm2026_vm1 = vcmp.gt.f32.partialorder %v2024_v33, 0.0  ;;  %v2028_v22 = vmul.f32 0.2, %v2024_v33 }
 0x204   :  { %v2029_v23 = vsel %vm2025_vm0, %v2023_v32, %v2027_v34 }
 0x205   :  { %v2030_v35 = vsel %vm2026_vm1, %v2024_v33, %v2028_v22 }
 0x206   :  { %v2317_v36 = vpack.c.bf16 %v2030_v35, %v2029_v23 }
 0x208   :  { %2039 = vst [vmem:[%s3628_s4] sm:$0xff] %v2317_v36 }

</bundles_post_ra>
